<compile_context>
chip_gen: v7x
topology: tpu7x:2x2x1
jax: 0.10.0
libtpu: 0.0.40
codegen_flags: <defaults>
</compile_context>

<pallas_src>
import functools

import jax
import jax.numpy as jnp
from jax.experimental import pallas as pl
from jax.experimental.pallas import tpu as pltpu

EPS = 1e-5            # PyTorch BatchNorm default eps
LANES = 128
ROW_TILE = 128        # conv-block rows-grid tile (pooled pixels per step)
FC_K_TILE = 800       # FC1 contraction tile (1600 = 2 * 800, no padding waste)
VMEM_LIMIT = 32 * 1024 * 1024


def _round_up(n, m):
    return -(-n // m) * m


# ---------------------------------------------------------------------------
# Kernels
# ---------------------------------------------------------------------------
def conv_block_kernel(p_ref, w_ref, b_ref, g_ref, be_ref, o_ref,
                      sum_ref, sq_ref, scale_ref, shift_ref, *, n_valid):
    """Fused Conv (im2col matmul) + bias + ReLU + BatchNorm2d + MaxPool2d(2).

    Grid = (phase, row_tile), rows fastest.  Phase 0: accumulate BN batch
    statistics (masked to the n_valid real rows).  Phase 1: finalize stats,
    normalize, 2x2 max-pool (elementwise max of the 4 window blocks), store.

    p_ref : (1, 4*TR, K) bf16  im2col patches for this row tile; the 4 pool-
                               window blocks are stacked contiguously on rows.
    w_ref : (K, 128)     bf16  conv weight, Cout zero-padded to 128 lanes.
    b/g/be: (1, 128)     f32   bias / BN gamma / BN beta (padded lanes = 0).
    o_ref : (TR, 128)    bf16  pooled output rows in (b, ph, pw) order.
    """
    phase = pl.program_id(0)
    t = pl.program_id(1)
    tr = o_ref.shape[0]

    # One merged matmul per tile: (4*TR, K) x (K, 128), f32 accumulation.
    y = jnp.dot(p_ref[0], w_ref[...], preferred_element_type=jnp.float32)
    y = jnp.maximum(y + b_ref[...], 0.0)
    y0 = y[0 * tr:1 * tr]
    y1 = y[1 * tr:2 * tr]
    y2 = y[2 * tr:3 * tr]
    y3 = y[3 * tr:4 * tr]

    @pl.when((phase == 0) & (t == 0))
    def _init_stats():
        sum_ref[...] = jnp.zeros_like(sum_ref)
        sq_ref[...] = jnp.zeros_like(sq_ref)

    @pl.when(phase == 0)
    def _accumulate():
        # Mask padded rows out of the batch statistics.
        rows = t * tr + jax.lax.broadcasted_iota(jnp.int32, (tr, 1), 0)
        m = (rows < n_valid).astype(jnp.float32)
        tot = ((y0 + y1) + (y2 + y3)) * m
        tot2 = ((y0 * y0 + y1 * y1) + (y2 * y2 + y3 * y3)) * m
        sum_ref[...] = sum_ref[...] + jnp.sum(tot, axis=0, keepdims=True)
        sq_ref[...] = sq_ref[...] + jnp.sum(tot2, axis=0, keepdims=True)
        o_ref[...] = jnp.zeros_like(o_ref)   # placeholder; real write in phase 1

    @pl.when((phase == 1) & (t == 0))
    def _finalize_stats():
        inv_cnt = 1.0 / (4.0 * n_valid)      # B*OH*OW conv outputs per channel
        mean = sum_ref[...] * inv_cnt
        var = sq_ref[...] * inv_cnt - mean * mean
        s = jax.lax.rsqrt(var + EPS) * g_ref[...]
        scale_ref[...] = s
        shift_ref[...] = be_ref[...] - mean * s

    @pl.when(phase == 1)
    def _normalize_pool():
        s = scale_ref[...]
        sh = shift_ref[...]
        # BN affine can have negative scale, so normalize before the max.
        o_ref[...] = jnp.maximum(
            jnp.maximum(y0 * s + sh, y1 * s + sh),
            jnp.maximum(y2 * s + sh, y3 * s + sh),
        ).astype(o_ref.dtype)


def fc_block_kernel(x_ref, w1_ref, b1_ref, g1_ref, be1_ref, w2_ref, b2_ref,
                    o_ref, acc_ref, *, batch):
    """Fused Linear(1600->500) + BatchNorm1d + ReLU + Linear(500->10).

    Grid = (K tiles,): standard P3 accumulator pattern over FC1's contraction
    so the packed weight stream (800, 512) double-buffers against the MXU.

    x_ref : (1, B, TK) bf16   FC1 activation chunk.
    w1_ref: (TK, 512)  bf16   packed FC1 weight tile.
    w2_ref: (512, 128) bf16   FC2 weight (padded).
    o_ref : (B, 128)   f32    logits (first 10 lanes real).
    """
    k = pl.program_id(0)

    @pl.when(k == 0)
    def _init():
        acc_ref[...] = jnp.zeros_like(acc_ref)

    acc_ref[...] += jnp.dot(x_ref[0], w1_ref[...],
                            preferred_element_type=jnp.float32)

    @pl.when(k == pl.num_programs(0) - 1)
    def _head():
        h = acc_ref[...] + b1_ref[...]
        inv_n = 1.0 / batch
        mean = jnp.sum(h, axis=0, keepdims=True) * inv_n
        var = jnp.sum(h * h, axis=0, keepdims=True) * inv_n - mean * mean
        h = (h - mean) * (jax.lax.rsqrt(var + EPS) * g1_ref[...]) + be1_ref[...]
        h = jnp.maximum(h, 0.0)
        o_ref[...] = (jnp.dot(h.astype(w2_ref.dtype), w2_ref[...],
                              preferred_element_type=jnp.float32) + b2_ref[...])


# ---------------------------------------------------------------------------
# pallas_call wrappers
# ---------------------------------------------------------------------------
def _conv_block(p, w, b, g, be):
    """p: (4, N, K) pool-ordered im2col patches (bf16) -> (N_pad, 128) bf16."""
    _, n, kdim = p.shape
    tr = min(ROW_TILE, _round_up(n, 8))
    n_tiles = -(-n // tr)
    n_pad = n_tiles * tr
    p = jnp.pad(p, ((0, 0), (0, n_pad - n), (0, 0)))
    # Regroup so each row tile's 4 pool-window blocks are contiguous:
    # (4, n_pad, K) -> (n_tiles, 4*tr, K).  One-off XLA relayout of a tiny
    # tensor; lets the kernel run a single merged matmul per tile.
    p = (p.reshape(4, n_tiles, tr, kdim)
          .transpose(1, 0, 2, 3)
          .reshape(n_tiles, 4 * tr, kdim))

    kernel = functools.partial(conv_block_kernel, n_valid=n)
    flops = int(2 * 2 * 4 * n_pad * kdim * LANES)          # two passes
    bytes_acc = int(2 * p.size * p.dtype.itemsize
                    + w.size * w.dtype.itemsize
                    + n_pad * LANES * 2 + 3 * LANES * 4)

    return pl.pallas_call(
        kernel,
        out_shape=jax.ShapeDtypeStruct((n_pad, LANES), jnp.bfloat16),
        grid_spec=pltpu.PrefetchScalarGridSpec(
            num_scalar_prefetch=0,
            grid=(2, n_tiles),                 # (phase, row tile); rows fastest
            in_specs=[
                pl.BlockSpec((1, 4 * tr, kdim), lambda ph, t: (t, 0, 0)),
                pl.BlockSpec((kdim, LANES), lambda ph, t: (0, 0)),
                pl.BlockSpec((1, LANES), lambda ph, t: (0, 0)),
                pl.BlockSpec((1, LANES), lambda ph, t: (0, 0)),
                pl.BlockSpec((1, LANES), lambda ph, t: (0, 0)),
            ],
            out_specs=pl.BlockSpec((tr, LANES), lambda ph, t: (t, 0)),
            scratch_shapes=[pltpu.VMEM((1, LANES), jnp.float32)
                            for _ in range(4)],
        ),
        compiler_params=pltpu.CompilerParams(
            # Both axes "arbitrary": BN batch stats are a cross-tile carry in
            # scratch (phase 0) consumed by phase 1.
            dimension_semantics=("arbitrary", "arbitrary"),
            vmem_limit_bytes=VMEM_LIMIT,
        ),
        cost_estimate=pl.CostEstimate(
            flops=flops, transcendentals=0, bytes_accessed=bytes_acc),
    )(p, w, b, g, be)


def _fc_block(xk, params, batch):
    nk, _, tk = xk.shape
    wf1, wf2 = params["wf1"], params["wf2"]
    kernel = functools.partial(fc_block_kernel, batch=batch)
    flops = int(2 * batch * wf1.shape[0] * wf1.shape[1]
                + 2 * batch * wf2.shape[0] * LANES)
    bytes_acc = int(wf1.size * wf1.dtype.itemsize + wf2.size * wf2.dtype.itemsize
                    + xk.size * xk.dtype.itemsize + batch * LANES * 4)

    return pl.pallas_call(
        kernel,
        out_shape=jax.ShapeDtypeStruct((batch, LANES), jnp.float32),
        grid_spec=pltpu.PrefetchScalarGridSpec(
            num_scalar_prefetch=0,
            grid=(nk,),                         # K-grid over packed wf1
            in_specs=[
                pl.BlockSpec((1, batch, tk), lambda k: (k, 0, 0)),
                pl.BlockSpec((tk, 512), lambda k: (k, 0)),
                pl.BlockSpec((1, 512), lambda k: (0, 0)),
                pl.BlockSpec((1, 512), lambda k: (0, 0)),
                pl.BlockSpec((1, 512), lambda k: (0, 0)),
                pl.BlockSpec((512, LANES), lambda k: (0, 0)),
                pl.BlockSpec((1, LANES), lambda k: (0, 0)),
            ],
            out_specs=pl.BlockSpec((batch, LANES), lambda k: (0, 0)),
            scratch_shapes=[pltpu.VMEM((batch, 512), jnp.float32)],
        ),
        compiler_params=pltpu.CompilerParams(
            dimension_semantics=("arbitrary",),
            vmem_limit_bytes=VMEM_LIMIT,
        ),
        cost_estimate=pl.CostEstimate(
            flops=flops, transcendentals=0, bytes_accessed=bytes_acc),
    )(xk, wf1, params["bf1"], params["gf1"], params["bef1"],
      wf2, params["bf2"])


# ---------------------------------------------------------------------------
# Plain-JAX glue: pool-ordered im2col (fuses with surrounding XLA ops).
# ---------------------------------------------------------------------------
def _pool_ordered_patches(x, k):
    """x: (B,H,W,C) -> patches (4, B*PH*PW, k*k*C).

    Leading axis = 2x2 pool-window position (wy*2+wx); rows within a block are
    in (b, ph, pw) order; patch features in (kh, kw, cin) order (matches a
    PyTorch conv weight transposed as (2,3,1,0))."""
    B, H, W, C = x.shape
    oh, ow = H - k + 1, W - k + 1
    ph, pw = oh // 2, ow // 2
    cols = [x[:, i: i + oh, j: j + ow, :] for i in range(k) for j in range(k)]
    p = jnp.concatenate(cols, axis=-1)                 # (B, oh, ow, k*k*C)
    p = p.reshape(B, ph, 2, pw, 2, k * k * C)
    p = jnp.transpose(p, (2, 4, 0, 1, 3, 5))           # (wy, wx, B, ph, pw, K)
    return p.reshape(4, B * ph * pw, k * k * C), (ph, pw)


def network_forward(x_nchw, params):
    x = jnp.transpose(x_nchw, (0, 2, 3, 1)).astype(jnp.bfloat16)   # NHWC, bf16
    B = x.shape[0]

    # --- Block 1: Conv(1->32, k5) + ReLU + BN2d + MaxPool(2) ---
    p1, (ph1, pw1) = _pool_ordered_patches(x, 5)                   # (4, B*144, 25)
    p1 = jnp.pad(p1, ((0, 0), (0, 0), (0, 32 - p1.shape[2])))      # K: 25 -> 32
    h1 = _conv_block(p1, params["w1"], params["b1"], params["g1"], params["be1"])
    h1 = h1[:B * ph1 * pw1, :32].reshape(B, ph1, pw1, 32)          # (B,12,12,32)

    # --- Block 2: Conv(32->64, k3) + ReLU + BN2d + MaxPool(2) ---
    p2, (ph2, pw2) = _pool_ordered_patches(h1, 3)                  # (4, B*25, 288)
    h2 = _conv_block(p2, params["w2"], params["b2"], params["g2"], params["be2"])

    # --- FC head: Linear(1600->500) + BN1d + ReLU + Linear(500->10) ---
    # Packed flatten: drop the zero-padded channel lanes so FC1 sees 1600 real
    # features (wf1 is (1600, 512), not (3200, 512)).  Feature j = p*64 + c.
    n2 = B * ph2 * pw2
    feat = h2[:n2, :64].reshape(B, ph2 * pw2 * 64)                 # (B, 1600)
    xk = feat.reshape(B, 1600 // FC_K_TILE, FC_K_TILE).transpose(1, 0, 2)
    logits = _fc_block(xk, params, B)                              # (B, 128) f32
    return logits[:, :10]


# ---------------------------------------------------------------------------
# Parameters, stored directly in kernel-friendly (padded, pre-permuted, bf16
# for matmul operands) layouts.  Mapping from PyTorch layouts noted inline.
# ---------------------------------------------------------------------------
def init_params(key):
    ks = jax.random.split(key, 7)

    def vec(v, n):
        v = v.astype(jnp.float32).reshape(1, -1)
        return jnp.pad(v, ((0, 0), (0, n - v.shape[1])))

    # Conv weights: PyTorch (Cout,Cin,KH,KW) -> (KH*KW*Cin, Cout) via
    # transpose(2,3,1,0).reshape(-1,Cout); generated directly in that layout,
    # then zero-padded (conv1 K 25->32, Cout -> 128 lanes) and cast to bf16.
    w1 = 0.05 * jax.random.normal(ks[0], (25, 32), jnp.float32)
    w1 = jnp.pad(w1, ((0, 32 - 25), (0, LANES - 32))).astype(jnp.bfloat16)
    w2 = 0.05 * jax.random.normal(ks[1], (288, 64), jnp.float32)
    w2 = jnp.pad(w2, ((0, 0), (0, LANES - 64))).astype(jnp.bfloat16)

    # FC1 packed: row j = p*64 + c (p = 5*h + w pooled pixel, c = channel)
    # corresponds to PyTorch W[f, c*25 + p]; generated directly in this layout,
    # feature dim padded 500 -> 512.
    wf1 = 0.02 * jax.random.normal(ks[2], (25, 64, 500), jnp.float32)
    wf1 = jnp.pad(wf1, ((0, 0), (0, 0), (0, 512 - 500)))
    wf1 = wf1.reshape(25 * 64, 512).astype(jnp.bfloat16)

    # FC2: PyTorch (10, 500) stored transposed (500, 10), padded to (512, 128).
    wf2 = 0.05 * jax.random.normal(ks[3], (500, 10), jnp.float32)
    wf2 = jnp.pad(wf2, ((0, 512 - 500), (0, LANES - 10))).astype(jnp.bfloat16)

    return {
        "w1": w1,
        "b1": vec(0.05 * jax.random.normal(ks[4], (32,), jnp.float32), LANES),
        "g1": vec(jnp.ones((32,), jnp.float32), LANES),
        "be1": vec(jnp.zeros((32,), jnp.float32), LANES),
        "w2": w2,
        "b2": vec(0.05 * jax.random.normal(ks[5], (64,), jnp.float32), LANES),
        "g2": vec(jnp.ones((64,), jnp.float32), LANES),
        "be2": vec(jnp.zeros((64,), jnp.float32), LANES),
        "wf1": wf1,
        "bf1": vec(0.02 * jax.random.normal(ks[6], (500,), jnp.float32), 512),
        "gf1": vec(jnp.ones((500,), jnp.float32), 512),
        "bef1": vec(jnp.zeros((500,), jnp.float32), 512),
        "wf2": wf2,
        "bf2": vec(jnp.zeros((10,), jnp.float32), LANES),
    }


if __name__ == "__main__":
    key = jax.random.PRNGKey(0)
    kx, kp = jax.random.split(key)
    # MNIST-shaped input (28x28 is required by the 5*5*64 flatten).
    x = jax.random.normal(kx, (2, 1, 28, 28), jnp.float32)
    params = init_params(kp)

    fwd = jax.jit(network_forward)
    logits = fwd(x, params)
    jax.block_until_ready(logits)
    assert logits.shape == (2, 10) and logits.dtype == jnp.float32
    print("KERNEL_OK")
</pallas_src>

<mosaic_0001>
module attributes {stable_mosaic.version = 11 : i64} {
  func.func @conv_block_kernel(%arg0: i32, %arg1: i32, %arg2: memref<1x512x32xbf16, #tpu.memory_space<vmem>>, %arg3: memref<32x128xbf16, #tpu.memory_space<vmem>>, %arg4: memref<1x128xf32, #tpu.memory_space<vmem>>, %arg5: memref<1x128xf32, #tpu.memory_space<vmem>>, %arg6: memref<1x128xf32, #tpu.memory_space<vmem>>, %arg7: memref<128x128xbf16, #tpu.memory_space<vmem>>, %arg8: memref<1x128xf32, #tpu.memory_space<vmem>>, %arg9: memref<1x128xf32, #tpu.memory_space<vmem>>, %arg10: memref<1x128xf32, #tpu.memory_space<vmem>>, %arg11: memref<1x128xf32, #tpu.memory_space<vmem>>) attributes {dimension_semantics = [#tpu.dimension_semantics<arbitrary>, #tpu.dimension_semantics<arbitrary>], iteration_bounds = array<i64: 2, 3>, scalar_prefetch = 0 : i64, scratch_operands = 4 : i64, tpu.core_type = #tpu.core_type<tc>, window_params = [{transform_indices = @transform_0, window_bounds = array<i64: 1, 512, 32>}, {pipeline_mode = #tpu.pipeline_mode<synchronous>, transform_indices = @transform_1, window_bounds = array<i64: 32, 128>}, {pipeline_mode = #tpu.pipeline_mode<synchronous>, transform_indices = @transform_2, window_bounds = array<i64: 1, 128>}, {pipeline_mode = #tpu.pipeline_mode<synchronous>, transform_indices = @transform_3, window_bounds = array<i64: 1, 128>}, {pipeline_mode = #tpu.pipeline_mode<synchronous>, transform_indices = @transform_4, window_bounds = array<i64: 1, 128>}, {transform_indices = @transform_5, window_bounds = array<i64: 128, 128>}]} {
    %c0 = arith.constant 0 : index
    %c0_0 = arith.constant 0 : index
    %c0_1 = arith.constant 0 : index
    %0 = vector.load %arg2[%c0, %c0_0, %c0_1] : memref<1x512x32xbf16, #tpu.memory_space<vmem>>, vector<1x512x32xbf16>
    %1 = vector.shape_cast %0 : vector<1x512x32xbf16> to vector<512x32xbf16>
    %c0_2 = arith.constant 0 : index
    %c0_3 = arith.constant 0 : index
    %2 = vector.load %arg3[%c0_2, %c0_3] : memref<32x128xbf16, #tpu.memory_space<vmem>>, vector<32x128xbf16>
    %cst = arith.constant dense<0.000000e+00> : vector<512x128xf32>
    %3 = tpu.matmul %1, %2, %cst {dimension_numbers = #tpu.dot_dimension_numbers<[1], [0], [0], [1], [0, 0, 1, 1], [], []>} : vector<512x32xbf16>, vector<32x128xbf16>, vector<512x128xf32> -> vector<512x128xf32>
    %c0_4 = arith.constant 0 : index
    %c0_5 = arith.constant 0 : index
    %4 = vector.load %arg4[%c0_4, %c0_5] : memref<1x128xf32, #tpu.memory_space<vmem>>, vector<1x128xf32>
    %5 = vector.broadcast %4 : vector<1x128xf32> to vector<512x128xf32>
    %6 = arith.addf %3, %5 : vector<512x128xf32>
    %cst_6 = arith.constant 0.000000e+00 : f32
    %7 = vector.broadcast %cst_6 : f32 to vector<512x128xf32>
    %8 = arith.maximumf %6, %7 : vector<512x128xf32>
    %9 = vector.extract_strided_slice %8 {offsets = [0, 0], sizes = [128, 128], strides = [1, 1]} : vector<512x128xf32> to vector<128x128xf32>
    %10 = vector.extract_strided_slice %8 {offsets = [128, 0], sizes = [128, 128], strides = [1, 1]} : vector<512x128xf32> to vector<128x128xf32>
    %11 = vector.extract_strided_slice %8 {offsets = [256, 0], sizes = [128, 128], strides = [1, 1]} : vector<512x128xf32> to vector<128x128xf32>
    %12 = vector.extract_strided_slice %8 {offsets = [384, 0], sizes = [128, 128], strides = [1, 1]} : vector<512x128xf32> to vector<128x128xf32>
    %c0_i32 = arith.constant 0 : i32
    %13 = arith.cmpi eq, %arg0, %c0_i32 : i32
    %c0_i32_7 = arith.constant 0 : i32
    %14 = arith.cmpi eq, %arg1, %c0_i32_7 : i32
    %15 = arith.andi %13, %14 : i1
    %16 = arith.extui %15 : i1 to i32
    %c0_i32_8 = arith.constant 0 : i32
    %17 = arith.cmpi ne, %16, %c0_i32_8 : i32
    scf.if %17 {
      %cst_15 = arith.constant 0.000000e+00 : f32
      %29 = vector.broadcast %cst_15 : f32 to vector<1x128xf32>
      %c0_16 = arith.constant 0 : index
      %c0_17 = arith.constant 0 : index
      %30 = vector.load %arg8[%c0_16, %c0_17] : memref<1x128xf32, #tpu.memory_space<vmem>>, vector<1x128xf32>
      tpu.vector_store %arg8[%c0_16, %c0_17], %29 {strides = array<i32>} : memref<1x128xf32, #tpu.memory_space<vmem>>, vector<1x128xf32>,
      %cst_18 = arith.constant 0.000000e+00 : f32
      %31 = vector.broadcast %cst_18 : f32 to vector<1x128xf32>
      %c0_19 = arith.constant 0 : index
      %c0_20 = arith.constant 0 : index
      %32 = vector.load %arg9[%c0_19, %c0_20] : memref<1x128xf32, #tpu.memory_space<vmem>>, vector<1x128xf32>
      tpu.vector_store %arg9[%c0_19, %c0_20], %31 {strides = array<i32>} : memref<1x128xf32, #tpu.memory_space<vmem>>, vector<1x128xf32>,
    } else {
    }
    %c0_i32_9 = arith.constant 0 : i32
    %18 = arith.cmpi eq, %arg0, %c0_i32_9 : i32
    %19 = arith.extui %18 : i1 to i32
    %c0_i32_10 = arith.constant 0 : i32
    %20 = arith.cmpi ne, %19, %c0_i32_10 : i32
    scf.if %20 {
      %c128_i32 = arith.constant 128 : i32
      %29 = arith.muli %arg1, %c128_i32 : i32
      %30 = tpu.iota {dimensions = array<i32: 0>} : vector<128x1xi32>
      %31 = vector.broadcast %29 : i32 to vector<128x1xi32>
      %32 = arith.addi %31, %30 : vector<128x1xi32>
      %c288_i32 = arith.constant 288 : i32
      %33 = vector.broadcast %c288_i32 : i32 to vector<128x1xi32>
      %34 = arith.cmpi slt, %32, %33 : vector<128x1xi32>
      %35 = arith.extui %34 : vector<128x1xi1> to vector<128x1xi32>
      %36 = arith.sitofp %35 : vector<128x1xi32> to vector<128x1xf32>
      %37 = arith.addf %9, %10 : vector<128x128xf32>
      %38 = arith.addf %11, %12 : vector<128x128xf32>
      %39 = arith.addf %37, %38 : vector<128x128xf32>
      %40 = vector.broadcast %36 : vector<128x1xf32> to vector<128x128xf32>
      %41 = arith.mulf %39, %40 : vector<128x128xf32>
      %42 = arith.mulf %9, %9 : vector<128x128xf32>
      %43 = arith.mulf %10, %10 : vector<128x128xf32>
      %44 = arith.addf %42, %43 : vector<128x128xf32>
      %45 = arith.mulf %11, %11 : vector<128x128xf32>
      %46 = arith.mulf %12, %12 : vector<128x128xf32>
      %47 = arith.addf %45, %46 : vector<128x128xf32>
      %48 = arith.addf %44, %47 : vector<128x128xf32>
      %49 = vector.broadcast %36 : vector<128x1xf32> to vector<128x128xf32>
      %50 = arith.mulf %48, %49 : vector<128x128xf32>
      %c0_15 = arith.constant 0 : index
      %c0_16 = arith.constant 0 : index
      %51 = vector.load %arg8[%c0_15, %c0_16] : memref<1x128xf32, #tpu.memory_space<vmem>>, vector<1x128xf32>
      %cst_17 = arith.constant dense<0.000000e+00> : vector<128xf32>
      %52 = vector.multi_reduction <add>, %41, %cst_17 [0] : vector<128x128xf32> to vector<128xf32>
      %53 = vector.shape_cast %52 : vector<128xf32> to vector<1x128xf32>
      %54 = arith.addf %51, %53 : vector<1x128xf32>
      %c0_18 = arith.constant 0 : index
      %c0_19 = arith.constant 0 : index
      %55 = vector.load %arg8[%c0_18, %c0_19] : memref<1x128xf32, #tpu.memory_space<vmem>>, vector<1x128xf32>
      tpu.vector_store %arg8[%c0_18, %c0_19], %54 {strides = array<i32>} : memref<1x128xf32, #tpu.memory_space<vmem>>, vector<1x128xf32>,
      %c0_20 = arith.constant 0 : index
      %c0_21 = arith.constant 0 : index
      %56 = vector.load %arg9[%c0_20, %c0_21] : memref<1x128xf32, #tpu.memory_space<vmem>>, vector<1x128xf32>
      %cst_22 = arith.constant dense<0.000000e+00> : vector<128xf32>
      %57 = vector.multi_reduction <add>, %50, %cst_22 [0] : vector<128x128xf32> to vector<128xf32>
      %58 = vector.shape_cast %57 : vector<128xf32> to vector<1x128xf32>
      %59 = arith.addf %56, %58 : vector<1x128xf32>
      %c0_23 = arith.constant 0 : index
      %c0_24 = arith.constant 0 : index
      %60 = vector.load %arg9[%c0_23, %c0_24] : memref<1x128xf32, #tpu.memory_space<vmem>>, vector<1x128xf32>
      tpu.vector_store %arg9[%c0_23, %c0_24], %59 {strides = array<i32>} : memref<1x128xf32, #tpu.memory_space<vmem>>, vector<1x128xf32>,
      %cst_25 = arith.constant 0.000000e+00 : bf16
      %61 = vector.broadcast %cst_25 : bf16 to vector<128x128xbf16>
      %c0_26 = arith.constant 0 : index
      %c0_27 = arith.constant 0 : index
      %62 = vector.load %arg7[%c0_26, %c0_27] : memref<128x128xbf16, #tpu.memory_space<vmem>>, vector<128x128xbf16>
      tpu.vector_store %arg7[%c0_26, %c0_27], %61 {strides = array<i32>} : memref<128x128xbf16, #tpu.memory_space<vmem>>, vector<128x128xbf16>,
    } else {
    }
    %c1_i32 = arith.constant 1 : i32
    %21 = arith.cmpi eq, %arg0, %c1_i32 : i32
    %c0_i32_11 = arith.constant 0 : i32
    %22 = arith.cmpi eq, %arg1, %c0_i32_11 : i32
    %23 = arith.andi %21, %22 : i1
    %24 = arith.extui %23 : i1 to i32
    %c0_i32_12 = arith.constant 0 : i32
    %25 = arith.cmpi ne, %24, %c0_i32_12 : i32
    scf.if %25 {
      %c0_15 = arith.constant 0 : index
      %c0_16 = arith.constant 0 : index
      %29 = vector.load %arg8[%c0_15, %c0_16] : memref<1x128xf32, #tpu.memory_space<vmem>>, vector<1x128xf32>
      %cst_17 = arith.constant 8.68055562E-4 : f32
      %30 = vector.broadcast %cst_17 : f32 to vector<1x128xf32>
      %31 = arith.mulf %29, %30 : vector<1x128xf32>
      %c0_18 = arith.constant 0 : index
      %c0_19 = arith.constant 0 : index
      %32 = vector.load %arg9[%c0_18, %c0_19] : memref<1x128xf32, #tpu.memory_space<vmem>>, vector<1x128xf32>
      %cst_20 = arith.constant 8.68055562E-4 : f32
      %33 = vector.broadcast %cst_20 : f32 to vector<1x128xf32>
      %34 = arith.mulf %32, %33 : vector<1x128xf32>
      %35 = arith.mulf %31, %31 : vector<1x128xf32>
      %36 = arith.subf %34, %35 : vector<1x128xf32>
      %cst_21 = arith.constant 9.99999974E-6 : f32
      %37 = vector.broadcast %cst_21 : f32 to vector<1x128xf32>
      %38 = arith.addf %36, %37 : vector<1x128xf32>
      %39 = math.rsqrt %38 : vector<1x128xf32>
      %c0_22 = arith.constant 0 : index
      %c0_23 = arith.constant 0 : index
      %40 = vector.load %arg5[%c0_22, %c0_23] : memref<1x128xf32, #tpu.memory_space<vmem>>, vector<1x128xf32>
      %41 = arith.mulf %39, %40 : vector<1x128xf32>
      %c0_24 = arith.constant 0 : index
      %c0_25 = arith.constant 0 : index
      %42 = vector.load %arg10[%c0_24, %c0_25] : memref<1x128xf32, #tpu.memory_space<vmem>>, vector<1x128xf32>
      tpu.vector_store %arg10[%c0_24, %c0_25], %41 {strides = array<i32>} : memref<1x128xf32, #tpu.memory_space<vmem>>, vector<1x128xf32>,
      %c0_26 = arith.constant 0 : index
      %c0_27 = arith.constant 0 : index
      %43 = vector.load %arg6[%c0_26, %c0_27] : memref<1x128xf32, #tpu.memory_space<vmem>>, vector<1x128xf32>
      %44 = arith.mulf %31, %41 : vector<1x128xf32>
      %45 = arith.subf %43, %44 : vector<1x128xf32>
      %c0_28 = arith.constant 0 : index
      %c0_29 = arith.constant 0 : index
      %46 = vector.load %arg11[%c0_28, %c0_29] : memref<1x128xf32, #tpu.memory_space<vmem>>, vector<1x128xf32>
      tpu.vector_store %arg11[%c0_28, %c0_29], %45 {strides = array<i32>} : memref<1x128xf32, #tpu.memory_space<vmem>>, vector<1x128xf32>,
    } else {
    }
    %c1_i32_13 = arith.constant 1 : i32
    %26 = arith.cmpi eq, %arg0, %c1_i32_13 : i32
    %27 = arith.extui %26 : i1 to i32
    %c0_i32_14 = arith.constant 0 : i32
    %28 = arith.cmpi ne, %27, %c0_i32_14 : i32
    scf.if %28 {
      %c0_15 = arith.constant 0 : index
      %c0_16 = arith.constant 0 : index
      %29 = vector.load %arg10[%c0_15, %c0_16] : memref<1x128xf32, #tpu.memory_space<vmem>>, vector<1x128xf32>
      %c0_17 = arith.constant 0 : index
      %c0_18 = arith.constant 0 : index
      %30 = vector.load %arg11[%c0_17, %c0_18] : memref<1x128xf32, #tpu.memory_space<vmem>>, vector<1x128xf32>
      %31 = vector.broadcast %29 : vector<1x128xf32> to vector<128x128xf32>
      %32 = arith.mulf %9, %31 : vector<128x128xf32>
      %33 = vector.broadcast %30 : vector<1x128xf32> to vector<128x128xf32>
      %34 = arith.addf %32, %33 : vector<128x128xf32>
      %35 = vector.broadcast %29 : vector<1x128xf32> to vector<128x128xf32>
      %36 = arith.mulf %10, %35 : vector<128x128xf32>
      %37 = vector.broadcast %30 : vector<1x128xf32> to vector<128x128xf32>
      %38 = arith.addf %36, %37 : vector<128x128xf32>
      %39 = arith.maximumf %34, %38 : vector<128x128xf32>
      %40 = vector.broadcast %29 : vector<1x128xf32> to vector<128x128xf32>
      %41 = arith.mulf %11, %40 : vector<128x128xf32>
      %42 = vector.broadcast %30 : vector<1x128xf32> to vector<128x128xf32>
      %43 = arith.addf %41, %42 : vector<128x128xf32>
      %44 = vector.broadcast %29 : vector<1x128xf32> to vector<128x128xf32>
      %45 = arith.mulf %12, %44 : vector<128x128xf32>
      %46 = vector.broadcast %30 : vector<1x128xf32> to vector<128x128xf32>
      %47 = arith.addf %45, %46 : vector<128x128xf32>
      %48 = arith.maximumf %43, %47 : vector<128x128xf32>
      %49 = arith.maximumf %39, %48 : vector<128x128xf32>
      %50 = arith.truncf %49 : vector<128x128xf32> to vector<128x128xbf16>
      %c0_19 = arith.constant 0 : index
      %c0_20 = arith.constant 0 : index
      %51 = vector.load %arg7[%c0_19, %c0_20] : memref<128x128xbf16, #tpu.memory_space<vmem>>, vector<128x128xbf16>
      tpu.vector_store %arg7[%c0_19, %c0_20], %50 {strides = array<i32>} : memref<128x128xbf16, #tpu.memory_space<vmem>>, vector<128x128xbf16>,
    } else {
    }
    return
  }
  func.func @transform_0(%arg0: i32, %arg1: i32) -> (i32, i32, i32) {
    %c0_i32 = arith.constant 0 : i32
    %c0_i32_0 = arith.constant 0 : i32
    %c0_i32_1 = arith.constant 0 : i32
    return %arg1, %c0_i32, %c0_i32_0 : i32, i32, i32
  }
  func.func @transform_1(%arg0: i32, %arg1: i32) -> (i32, i32) {
    %c0_i32 = arith.constant 0 : i32
    %c0_i32_0 = arith.constant 0 : i32
    %c0_i32_1 = arith.constant 0 : i32
    return %c0_i32, %c0_i32_0 : i32, i32
  }
  func.func @transform_2(%arg0: i32, %arg1: i32) -> (i32, i32) {
    %c0_i32 = arith.constant 0 : i32
    %c0_i32_0 = arith.constant 0 : i32
    %c0_i32_1 = arith.constant 0 : i32
    return %c0_i32, %c0_i32_0 : i32, i32
  }
  func.func @transform_3(%arg0: i32, %arg1: i32) -> (i32, i32) {
    %c0_i32 = arith.constant 0 : i32
    %c0_i32_0 = arith.constant 0 : i32
    %c0_i32_1 = arith.constant 0 : i32
    return %c0_i32, %c0_i32_0 : i32, i32
  }
  func.func @transform_4(%arg0: i32, %arg1: i32) -> (i32, i32) {
    %c0_i32 = arith.constant 0 : i32
    %c0_i32_0 = arith.constant 0 : i32
    %c0_i32_1 = arith.constant 0 : i32
    return %c0_i32, %c0_i32_0 : i32, i32
  }
  func.func @transform_5(%arg0: i32, %arg1: i32) -> (i32, i32) {
    %c0_i32 = arith.constant 0 : i32
    %c0_i32_0 = arith.constant 0 : i32
    return %arg1, %c0_i32 : i32, i32
  }
}

module attributes {stable_mosaic.version = 11 : i64} {
  func.func @conv_block_kernel(%arg0: i32, %arg1: i32, %arg2: memref<1x224x288xbf16, #tpu.memory_space<vmem>>, %arg3: memref<288x128xbf16, #tpu.memory_space<vmem>>, %arg4: memref<1x128xf32, #tpu.memory_space<vmem>>, %arg5: memref<1x128xf32, #tpu.memory_space<vmem>>, %arg6: memref<1x128xf32, #tpu.memory_space<vmem>>, %arg7: memref<56x128xbf16, #tpu.memory_space<vmem>>, %arg8: memref<1x128xf32, #tpu.memory_space<vmem>>, %arg9: memref<1x128xf32, #tpu.memory_space<vmem>>, %arg10: memref<1x128xf32, #tpu.memory_space<vmem>>, %arg11: memref<1x128xf32, #tpu.memory_space<vmem>>) attributes {dimension_semantics = [#tpu.dimension_semantics<arbitrary>, #tpu.dimension_semantics<arbitrary>], iteration_bounds = array<i64: 2, 1>, scalar_prefetch = 0 : i64, scratch_operands = 4 : i64, tpu.core_type = #tpu.core_type<tc>, window_params = [{transform_indices = @transform_0, window_bounds = array<i64: 1, 224, 288>}, {pipeline_mode = #tpu.pipeline_mode<synchronous>, transform_indices = @transform_1, window_bounds = array<i64: 288, 128>}, {pipeline_mode = #tpu.pipeline_mode<synchronous>, transform_indices = @transform_2, window_bounds = array<i64: 1, 128>}, {pipeline_mode = #tpu.pipeline_mode<synchronous>, transform_indices = @transform_3, window_bounds = array<i64: 1, 128>}, {pipeline_mode = #tpu.pipeline_mode<synchronous>, transform_indices = @transform_4, window_bounds = array<i64: 1, 128>}, {transform_indices = @transform_5, window_bounds = array<i64: 56, 128>}]} {
    %c0 = arith.constant 0 : index
    %c0_0 = arith.constant 0 : index
    %c0_1 = arith.constant 0 : index
    %0 = vector.load %arg2[%c0, %c0_0, %c0_1] : memref<1x224x288xbf16, #tpu.memory_space<vmem>>, vector<1x224x288xbf16>
    %1 = vector.shape_cast %0 : vector<1x224x288xbf16> to vector<224x288xbf16>
    %c0_2 = arith.constant 0 : index
    %c0_3 = arith.constant 0 : index
    %2 = vector.load %arg3[%c0_2, %c0_3] : memref<288x128xbf16, #tpu.memory_space<vmem>>, vector<288x128xbf16>
    %cst = arith.constant dense<0.000000e+00> : vector<224x128xf32>
    %3 = tpu.matmul %1, %2, %cst {dimension_numbers = #tpu.dot_dimension_numbers<[1], [0], [0], [1], [0, 0, 1, 1], [], []>} : vector<224x288xbf16>, vector<288x128xbf16>, vector<224x128xf32> -> vector<224x128xf32>
    %c0_4 = arith.constant 0 : index
    %c0_5 = arith.constant 0 : index
    %4 = vector.load %arg4[%c0_4, %c0_5] : memref<1x128xf32, #tpu.memory_space<vmem>>, vector<1x128xf32>
    %5 = vector.broadcast %4 : vector<1x128xf32> to vector<224x128xf32>
    %6 = arith.addf %3, %5 : vector<224x128xf32>
    %cst_6 = arith.constant 0.000000e+00 : f32
    %7 = vector.broadcast %cst_6 : f32 to vector<224x128xf32>
    %8 = arith.maximumf %6, %7 : vector<224x128xf32>
    %9 = vector.extract_strided_slice %8 {offsets = [0, 0], sizes = [56, 128], strides = [1, 1]} : vector<224x128xf32> to vector<56x128xf32>
    %10 = vector.extract_strided_slice %8 {offsets = [56, 0], sizes = [56, 128], strides = [1, 1]} : vector<224x128xf32> to vector<56x128xf32>
    %11 = vector.extract_strided_slice %8 {offsets = [112, 0], sizes = [56, 128], strides = [1, 1]} : vector<224x128xf32> to vector<56x128xf32>
    %12 = vector.extract_strided_slice %8 {offsets = [168, 0], sizes = [56, 128], strides = [1, 1]} : vector<224x128xf32> to vector<56x128xf32>
    %c0_i32 = arith.constant 0 : i32
    %13 = arith.cmpi eq, %arg0, %c0_i32 : i32
    %c0_i32_7 = arith.constant 0 : i32
    %14 = arith.cmpi eq, %arg1, %c0_i32_7 : i32
    %15 = arith.andi %13, %14 : i1
    %16 = arith.extui %15 : i1 to i32
    %c0_i32_8 = arith.constant 0 : i32
    %17 = arith.cmpi ne, %16, %c0_i32_8 : i32
    scf.if %17 {
      %cst_15 = arith.constant 0.000000e+00 : f32
      %29 = vector.broadcast %cst_15 : f32 to vector<1x128xf32>
      %c0_16 = arith.constant 0 : index
      %c0_17 = arith.constant 0 : index
      %30 = vector.load %arg8[%c0_16, %c0_17] : memref<1x128xf32, #tpu.memory_space<vmem>>, vector<1x128xf32>
      tpu.vector_store %arg8[%c0_16, %c0_17], %29 {strides = array<i32>} : memref<1x128xf32, #tpu.memory_space<vmem>>, vector<1x128xf32>,
      %cst_18 = arith.constant 0.000000e+00 : f32
      %31 = vector.broadcast %cst_18 : f32 to vector<1x128xf32>
      %c0_19 = arith.constant 0 : index
      %c0_20 = arith.constant 0 : index
      %32 = vector.load %arg9[%c0_19, %c0_20] : memref<1x128xf32, #tpu.memory_space<vmem>>, vector<1x128xf32>
      tpu.vector_store %arg9[%c0_19, %c0_20], %31 {strides = array<i32>} : memref<1x128xf32, #tpu.memory_space<vmem>>, vector<1x128xf32>,
    } else {
    }
    %c0_i32_9 = arith.constant 0 : i32
    %18 = arith.cmpi eq, %arg0, %c0_i32_9 : i32
    %19 = arith.extui %18 : i1 to i32
    %c0_i32_10 = arith.constant 0 : i32
    %20 = arith.cmpi ne, %19, %c0_i32_10 : i32
    scf.if %20 {
      %c56_i32 = arith.constant 56 : i32
      %29 = arith.muli %arg1, %c56_i32 : i32
      %30 = tpu.iota {dimensions = array<i32: 0>} : vector<56x1xi32>
      %31 = vector.broadcast %29 : i32 to vector<56x1xi32>
      %32 = arith.addi %31, %30 : vector<56x1xi32>
      %c50_i32 = arith.constant 50 : i32
      %33 = vector.broadcast %c50_i32 : i32 to vector<56x1xi32>
      %34 = arith.cmpi slt, %32, %33 : vector<56x1xi32>
      %35 = arith.extui %34 : vector<56x1xi1> to vector<56x1xi32>
      %36 = arith.sitofp %35 : vector<56x1xi32> to vector<56x1xf32>
      %37 = arith.addf %9, %10 : vector<56x128xf32>
      %38 = arith.addf %11, %12 : vector<56x128xf32>
      %39 = arith.addf %37, %38 : vector<56x128xf32>
      %40 = vector.broadcast %36 : vector<56x1xf32> to vector<56x128xf32>
      %41 = arith.mulf %39, %40 : vector<56x128xf32>
      %42 = arith.mulf %9, %9 : vector<56x128xf32>
      %43 = arith.mulf %10, %10 : vector<56x128xf32>
      %44 = arith.addf %42, %43 : vector<56x128xf32>
      %45 = arith.mulf %11, %11 : vector<56x128xf32>
      %46 = arith.mulf %12, %12 : vector<56x128xf32>
      %47 = arith.addf %45, %46 : vector<56x128xf32>
      %48 = arith.addf %44, %47 : vector<56x128xf32>
      %49 = vector.broadcast %36 : vector<56x1xf32> to vector<56x128xf32>
      %50 = arith.mulf %48, %49 : vector<56x128xf32>
      %c0_15 = arith.constant 0 : index
      %c0_16 = arith.constant 0 : index
      %51 = vector.load %arg8[%c0_15, %c0_16] : memref<1x128xf32, #tpu.memory_space<vmem>>, vector<1x128xf32>
      %cst_17 = arith.constant dense<0.000000e+00> : vector<128xf32>
      %52 = vector.multi_reduction <add>, %41, %cst_17 [0] : vector<56x128xf32> to vector<128xf32>
      %53 = vector.shape_cast %52 : vector<128xf32> to vector<1x128xf32>
      %54 = arith.addf %51, %53 : vector<1x128xf32>
      %c0_18 = arith.constant 0 : index
      %c0_19 = arith.constant 0 : index
      %55 = vector.load %arg8[%c0_18, %c0_19] : memref<1x128xf32, #tpu.memory_space<vmem>>, vector<1x128xf32>
      tpu.vector_store %arg8[%c0_18, %c0_19], %54 {strides = array<i32>} : memref<1x128xf32, #tpu.memory_space<vmem>>, vector<1x128xf32>,
      %c0_20 = arith.constant 0 : index
      %c0_21 = arith.constant 0 : index
      %56 = vector.load %arg9[%c0_20, %c0_21] : memref<1x128xf32, #tpu.memory_space<vmem>>, vector<1x128xf32>
      %cst_22 = arith.constant dense<0.000000e+00> : vector<128xf32>
      %57 = vector.multi_reduction <add>, %50, %cst_22 [0] : vector<56x128xf32> to vector<128xf32>
      %58 = vector.shape_cast %57 : vector<128xf32> to vector<1x128xf32>
      %59 = arith.addf %56, %58 : vector<1x128xf32>
      %c0_23 = arith.constant 0 : index
      %c0_24 = arith.constant 0 : index
      %60 = vector.load %arg9[%c0_23, %c0_24] : memref<1x128xf32, #tpu.memory_space<vmem>>, vector<1x128xf32>
      tpu.vector_store %arg9[%c0_23, %c0_24], %59 {strides = array<i32>} : memref<1x128xf32, #tpu.memory_space<vmem>>, vector<1x128xf32>,
      %cst_25 = arith.constant 0.000000e+00 : bf16
      %61 = vector.broadcast %cst_25 : bf16 to vector<56x128xbf16>
      %c0_26 = arith.constant 0 : index
      %c0_27 = arith.constant 0 : index
      %62 = vector.load %arg7[%c0_26, %c0_27] : memref<56x128xbf16, #tpu.memory_space<vmem>>, vector<56x128xbf16>
      tpu.vector_store %arg7[%c0_26, %c0_27], %61 {strides = array<i32>} : memref<56x128xbf16, #tpu.memory_space<vmem>>, vector<56x128xbf16>,
    } else {
    }
    %c1_i32 = arith.constant 1 : i32
    %21 = arith.cmpi eq, %arg0, %c1_i32 : i32
    %c0_i32_11 = arith.constant 0 : i32
    %22 = arith.cmpi eq, %arg1, %c0_i32_11 : i32
    %23 = arith.andi %21, %22 : i1
    %24 = arith.extui %23 : i1 to i32
    %c0_i32_12 = arith.constant 0 : i32
    %25 = arith.cmpi ne, %24, %c0_i32_12 : i32
    scf.if %25 {
      %c0_15 = arith.constant 0 : index
      %c0_16 = arith.constant 0 : index
      %29 = vector.load %arg8[%c0_15, %c0_16] : memref<1x128xf32, #tpu.memory_space<vmem>>, vector<1x128xf32>
      %cst_17 = arith.constant 5.000000e-03 : f32
      %30 = vector.broadcast %cst_17 : f32 to vector<1x128xf32>
      %31 = arith.mulf %29, %30 : vector<1x128xf32>
      %c0_18 = arith.constant 0 : index
      %c0_19 = arith.constant 0 : index
      %32 = vector.load %arg9[%c0_18, %c0_19] : memref<1x128xf32, #tpu.memory_space<vmem>>, vector<1x128xf32>
      %cst_20 = arith.constant 5.000000e-03 : f32
      %33 = vector.broadcast %cst_20 : f32 to vector<1x128xf32>
      %34 = arith.mulf %32, %33 : vector<1x128xf32>
      %35 = arith.mulf %31, %31 : vector<1x128xf32>
      %36 = arith.subf %34, %35 : vector<1x128xf32>
      %cst_21 = arith.constant 9.99999974E-6 : f32
      %37 = vector.broadcast %cst_21 : f32 to vector<1x128xf32>
      %38 = arith.addf %36, %37 : vector<1x128xf32>
      %39 = math.rsqrt %38 : vector<1x128xf32>
      %c0_22 = arith.constant 0 : index
      %c0_23 = arith.constant 0 : index
      %40 = vector.load %arg5[%c0_22, %c0_23] : memref<1x128xf32, #tpu.memory_space<vmem>>, vector<1x128xf32>
      %41 = arith.mulf %39, %40 : vector<1x128xf32>
      %c0_24 = arith.constant 0 : index
      %c0_25 = arith.constant 0 : index
      %42 = vector.load %arg10[%c0_24, %c0_25] : memref<1x128xf32, #tpu.memory_space<vmem>>, vector<1x128xf32>
      tpu.vector_store %arg10[%c0_24, %c0_25], %41 {strides = array<i32>} : memref<1x128xf32, #tpu.memory_space<vmem>>, vector<1x128xf32>,
      %c0_26 = arith.constant 0 : index
      %c0_27 = arith.constant 0 : index
      %43 = vector.load %arg6[%c0_26, %c0_27] : memref<1x128xf32, #tpu.memory_space<vmem>>, vector<1x128xf32>
      %44 = arith.mulf %31, %41 : vector<1x128xf32>
      %45 = arith.subf %43, %44 : vector<1x128xf32>
      %c0_28 = arith.constant 0 : index
      %c0_29 = arith.constant 0 : index
      %46 = vector.load %arg11[%c0_28, %c0_29] : memref<1x128xf32, #tpu.memory_space<vmem>>, vector<1x128xf32>
      tpu.vector_store %arg11[%c0_28, %c0_29], %45 {strides = array<i32>} : memref<1x128xf32, #tpu.memory_space<vmem>>, vector<1x128xf32>,
    } else {
    }
    %c1_i32_13 = arith.constant 1 : i32
    %26 = arith.cmpi eq, %arg0, %c1_i32_13 : i32
    %27 = arith.extui %26 : i1 to i32
    %c0_i32_14 = arith.constant 0 : i32
    %28 = arith.cmpi ne, %27, %c0_i32_14 : i32
    scf.if %28 {
      %c0_15 = arith.constant 0 : index
      %c0_16 = arith.constant 0 : index
      %29 = vector.load %arg10[%c0_15, %c0_16] : memref<1x128xf32, #tpu.memory_space<vmem>>, vector<1x128xf32>
      %c0_17 = arith.constant 0 : index
      %c0_18 = arith.constant 0 : index
      %30 = vector.load %arg11[%c0_17, %c0_18] : memref<1x128xf32, #tpu.memory_space<vmem>>, vector<1x128xf32>
      %31 = vector.broadcast %29 : vector<1x128xf32> to vector<56x128xf32>
      %32 = arith.mulf %9, %31 : vector<56x128xf32>
      %33 = vector.broadcast %30 : vector<1x128xf32> to vector<56x128xf32>
      %34 = arith.addf %32, %33 : vector<56x128xf32>
      %35 = vector.broadcast %29 : vector<1x128xf32> to vector<56x128xf32>
      %36 = arith.mulf %10, %35 : vector<56x128xf32>
      %37 = vector.broadcast %30 : vector<1x128xf32> to vector<56x128xf32>
      %38 = arith.addf %36, %37 : vector<56x128xf32>
      %39 = arith.maximumf %34, %38 : vector<56x128xf32>
      %40 = vector.broadcast %29 : vector<1x128xf32> to vector<56x128xf32>
      %41 = arith.mulf %11, %40 : vector<56x128xf32>
      %42 = vector.broadcast %30 : vector<1x128xf32> to vector<56x128xf32>
      %43 = arith.addf %41, %42 : vector<56x128xf32>
      %44 = vector.broadcast %29 : vector<1x128xf32> to vector<56x128xf32>
      %45 = arith.mulf %12, %44 : vector<56x128xf32>
      %46 = vector.broadcast %30 : vector<1x128xf32> to vector<56x128xf32>
      %47 = arith.addf %45, %46 : vector<56x128xf32>
      %48 = arith.maximumf %43, %47 : vector<56x128xf32>
      %49 = arith.maximumf %39, %48 : vector<56x128xf32>
      %50 = arith.truncf %49 : vector<56x128xf32> to vector<56x128xbf16>
      %c0_19 = arith.constant 0 : index
      %c0_20 = arith.constant 0 : index
      %51 = vector.load %arg7[%c0_19, %c0_20] : memref<56x128xbf16, #tpu.memory_space<vmem>>, vector<56x128xbf16>
      tpu.vector_store %arg7[%c0_19, %c0_20], %50 {strides = array<i32>} : memref<56x128xbf16, #tpu.memory_space<vmem>>, vector<56x128xbf16>,
    } else {
    }
    return
  }
  func.func @transform_0(%arg0: i32, %arg1: i32) -> (i32, i32, i32) {
    %c0_i32 = arith.constant 0 : i32
    %c0_i32_0 = arith.constant 0 : i32
    %c0_i32_1 = arith.constant 0 : i32
    return %arg1, %c0_i32, %c0_i32_0 : i32, i32, i32
  }
  func.func @transform_1(%arg0: i32, %arg1: i32) -> (i32, i32) {
    %c0_i32 = arith.constant 0 : i32
    %c0_i32_0 = arith.constant 0 : i32
    %c0_i32_1 = arith.constant 0 : i32
    return %c0_i32, %c0_i32_0 : i32, i32
  }
  func.func @transform_2(%arg0: i32, %arg1: i32) -> (i32, i32) {
    %c0_i32 = arith.constant 0 : i32
    %c0_i32_0 = arith.constant 0 : i32
    %c0_i32_1 = arith.constant 0 : i32
    return %c0_i32, %c0_i32_0 : i32, i32
  }
  func.func @transform_3(%arg0: i32, %arg1: i32) -> (i32, i32) {
    %c0_i32 = arith.constant 0 : i32
    %c0_i32_0 = arith.constant 0 : i32
    %c0_i32_1 = arith.constant 0 : i32
    return %c0_i32, %c0_i32_0 : i32, i32
  }
  func.func @transform_4(%arg0: i32, %arg1: i32) -> (i32, i32) {
    %c0_i32 = arith.constant 0 : i32
    %c0_i32_0 = arith.constant 0 : i32
    %c0_i32_1 = arith.constant 0 : i32
    return %c0_i32, %c0_i32_0 : i32, i32
  }
  func.func @transform_5(%arg0: i32, %arg1: i32) -> (i32, i32) {
    %c0_i32 = arith.constant 0 : i32
    %c0_i32_0 = arith.constant 0 : i32
    return %arg1, %c0_i32 : i32, i32
  }
}

module attributes {stable_mosaic.version = 11 : i64} {
  func.func @fc_block_kernel(%arg0: i32, %arg1: memref<1x2x800xbf16, #tpu.memory_space<vmem>>, %arg2: memref<800x512xbf16, #tpu.memory_space<vmem>>, %arg3: memref<1x512xf32, #tpu.memory_space<vmem>>, %arg4: memref<1x512xf32, #tpu.memory_space<vmem>>, %arg5: memref<1x512xf32, #tpu.memory_space<vmem>>, %arg6: memref<512x128xbf16, #tpu.memory_space<vmem>>, %arg7: memref<1x128xf32, #tpu.memory_space<vmem>>, %arg8: memref<2x128xf32, #tpu.memory_space<vmem>>, %arg9: memref<2x512xf32, #tpu.memory_space<vmem>>) attributes {dimension_semantics = [#tpu.dimension_semantics<arbitrary>], iteration_bounds = array<i64: 2>, scalar_prefetch = 0 : i64, scratch_operands = 1 : i64, tpu.core_type = #tpu.core_type<tc>, window_params = [{transform_indices = @transform_0, window_bounds = array<i64: 1, 2, 800>}, {transform_indices = @transform_1, window_bounds = array<i64: 800, 512>}, {pipeline_mode = #tpu.pipeline_mode<synchronous>, transform_indices = @transform_2, window_bounds = array<i64: 1, 512>}, {pipeline_mode = #tpu.pipeline_mode<synchronous>, transform_indices = @transform_3, window_bounds = array<i64: 1, 512>}, {pipeline_mode = #tpu.pipeline_mode<synchronous>, transform_indices = @transform_4, window_bounds = array<i64: 1, 512>}, {pipeline_mode = #tpu.pipeline_mode<synchronous>, transform_indices = @transform_5, window_bounds = array<i64: 512, 128>}, {pipeline_mode = #tpu.pipeline_mode<synchronous>, transform_indices = @transform_6, window_bounds = array<i64: 1, 128>}, {pipeline_mode = #tpu.pipeline_mode<synchronous>, transform_indices = @transform_7, window_bounds = array<i64: 2, 128>}]} {
    %c0_i32 = arith.constant 0 : i32
    %0 = arith.cmpi eq, %arg0, %c0_i32 : i32
    %1 = arith.extui %0 : i1 to i32
    %c0_i32_0 = arith.constant 0 : i32
    %2 = arith.cmpi ne, %1, %c0_i32_0 : i32
    scf.if %2 {
      %cst_10 = arith.constant 0.000000e+00 : f32
      %13 = vector.broadcast %cst_10 : f32 to vector<2x512xf32>
      %c0_11 = arith.constant 0 : index
      %c0_12 = arith.constant 0 : index
      %14 = vector.load %arg9[%c0_11, %c0_12] : memref<2x512xf32, #tpu.memory_space<vmem>>, vector<2x512xf32>
      tpu.vector_store %arg9[%c0_11, %c0_12], %13 {strides = array<i32>} : memref<2x512xf32, #tpu.memory_space<vmem>>, vector<2x512xf32>,
    } else {
    }
    %c0 = arith.constant 0 : index
    %c0_1 = arith.constant 0 : index
    %3 = vector.load %arg9[%c0, %c0_1] : memref<2x512xf32, #tpu.memory_space<vmem>>, vector<2x512xf32>
    %c0_2 = arith.constant 0 : index
    %c0_3 = arith.constant 0 : index
    %c0_4 = arith.constant 0 : index
    %4 = vector.load %arg1[%c0_2, %c0_3, %c0_4] : memref<1x2x800xbf16, #tpu.memory_space<vmem>>, vector<1x2x800xbf16>
    %5 = vector.shape_cast %4 : vector<1x2x800xbf16> to vector<2x800xbf16>
    %c0_5 = arith.constant 0 : index
    %c0_6 = arith.constant 0 : index
    %6 = vector.load %arg2[%c0_5, %c0_6] : memref<800x512xbf16, #tpu.memory_space<vmem>>, vector<800x512xbf16>
    %cst = arith.constant dense<0.000000e+00> : vector<2x512xf32>
    %7 = tpu.matmul %5, %6, %cst {dimension_numbers = #tpu.dot_dimension_numbers<[1], [0], [0], [1], [0, 0, 1, 1], [], []>} : vector<2x800xbf16>, vector<800x512xbf16>, vector<2x512xf32> -> vector<2x512xf32>
    %8 = arith.addf %3, %7 : vector<2x512xf32>
    %c0_7 = arith.constant 0 : index
    %c0_8 = arith.constant 0 : index
    %9 = vector.load %arg9[%c0_7, %c0_8] : memref<2x512xf32, #tpu.memory_space<vmem>>, vector<2x512xf32>
    tpu.vector_store %arg9[%c0_7, %c0_8], %8 {strides = array<i32>} : memref<2x512xf32, #tpu.memory_space<vmem>>, vector<2x512xf32>,
    %c1_i32 = arith.constant 1 : i32
    %10 = arith.cmpi eq, %arg0, %c1_i32 : i32
    %11 = arith.extui %10 : i1 to i32
    %c0_i32_9 = arith.constant 0 : i32
    %12 = arith.cmpi ne, %11, %c0_i32_9 : i32
    scf.if %12 {
      %c0_10 = arith.constant 0 : index
      %c0_11 = arith.constant 0 : index
      %13 = vector.load %arg9[%c0_10, %c0_11] : memref<2x512xf32, #tpu.memory_space<vmem>>, vector<2x512xf32>
      %c0_12 = arith.constant 0 : index
      %c0_13 = arith.constant 0 : index
      %14 = vector.load %arg3[%c0_12, %c0_13] : memref<1x512xf32, #tpu.memory_space<vmem>>, vector<1x512xf32>
      %15 = vector.broadcast %14 : vector<1x512xf32> to vector<2x512xf32>
      %16 = arith.addf %13, %15 : vector<2x512xf32>
      %cst_14 = arith.constant dense<0.000000e+00> : vector<512xf32>
      %17 = vector.multi_reduction <add>, %16, %cst_14 [0] : vector<2x512xf32> to vector<512xf32>
      %18 = vector.shape_cast %17 : vector<512xf32> to vector<1x512xf32>
      %cst_15 = arith.constant 5.000000e-01 : f32
      %19 = vector.broadcast %cst_15 : f32 to vector<1x512xf32>
      %20 = arith.mulf %18, %19 : vector<1x512xf32>
      %21 = arith.mulf %16, %16 : vector<2x512xf32>
      %cst_16 = arith.constant dense<0.000000e+00> : vector<512xf32>
      %22 = vector.multi_reduction <add>, %21, %cst_16 [0] : vector<2x512xf32> to vector<512xf32>
      %23 = vector.shape_cast %22 : vector<512xf32> to vector<1x512xf32>
      %cst_17 = arith.constant 5.000000e-01 : f32
      %24 = vector.broadcast %cst_17 : f32 to vector<1x512xf32>
      %25 = arith.mulf %23, %24 : vector<1x512xf32>
      %26 = arith.mulf %20, %20 : vector<1x512xf32>
      %27 = arith.subf %25, %26 : vector<1x512xf32>
      %28 = vector.broadcast %20 : vector<1x512xf32> to vector<2x512xf32>
      %29 = arith.subf %16, %28 : vector<2x512xf32>
      %cst_18 = arith.constant 9.99999974E-6 : f32
      %30 = vector.broadcast %cst_18 : f32 to vector<1x512xf32>
      %31 = arith.addf %27, %30 : vector<1x512xf32>
      %32 = math.rsqrt %31 : vector<1x512xf32>
      %c0_19 = arith.constant 0 : index
      %c0_20 = arith.constant 0 : index
      %33 = vector.load %arg4[%c0_19, %c0_20] : memref<1x512xf32, #tpu.memory_space<vmem>>, vector<1x512xf32>
      %34 = arith.mulf %32, %33 : vector<1x512xf32>
      %35 = vector.broadcast %34 : vector<1x512xf32> to vector<2x512xf32>
      %36 = arith.mulf %29, %35 : vector<2x512xf32>
      %c0_21 = arith.constant 0 : index
      %c0_22 = arith.constant 0 : index
      %37 = vector.load %arg5[%c0_21, %c0_22] : memref<1x512xf32, #tpu.memory_space<vmem>>, vector<1x512xf32>
      %38 = vector.broadcast %37 : vector<1x512xf32> to vector<2x512xf32>
      %39 = arith.addf %36, %38 : vector<2x512xf32>
      %cst_23 = arith.constant 0.000000e+00 : f32
      %40 = vector.broadcast %cst_23 : f32 to vector<2x512xf32>
      %41 = arith.maximumf %39, %40 : vector<2x512xf32>
      %42 = arith.truncf %41 : vector<2x512xf32> to vector<2x512xbf16>
      %c0_24 = arith.constant 0 : index
      %c0_25 = arith.constant 0 : index
      %43 = vector.load %arg6[%c0_24, %c0_25] : memref<512x128xbf16, #tpu.memory_space<vmem>>, vector<512x128xbf16>
      %cst_26 = arith.constant dense<0.000000e+00> : vector<2x128xf32>
      %44 = tpu.matmul %42, %43, %cst_26 {dimension_numbers = #tpu.dot_dimension_numbers<[1], [0], [0], [1], [0, 0, 1, 1], [], []>} : vector<2x512xbf16>, vector<512x128xbf16>, vector<2x128xf32> -> vector<2x128xf32>
      %c0_27 = arith.constant 0 : index
      %c0_28 = arith.constant 0 : index
      %45 = vector.load %arg7[%c0_27, %c0_28] : memref<1x128xf32, #tpu.memory_space<vmem>>, vector<1x128xf32>
      %46 = vector.broadcast %45 : vector<1x128xf32> to vector<2x128xf32>
      %47 = arith.addf %44, %46 : vector<2x128xf32>
      %c0_29 = arith.constant 0 : index
      %c0_30 = arith.constant 0 : index
      %48 = vector.load %arg8[%c0_29, %c0_30] : memref<2x128xf32, #tpu.memory_space<vmem>>, vector<2x128xf32>
      tpu.vector_store %arg8[%c0_29, %c0_30], %47 {strides = array<i32>} : memref<2x128xf32, #tpu.memory_space<vmem>>, vector<2x128xf32>,
    } else {
    }
    return
  }
  func.func @transform_0(%arg0: i32) -> (i32, i32, i32) {
    %c0_i32 = arith.constant 0 : i32
    %c0_i32_0 = arith.constant 0 : i32
    %c0_i32_1 = arith.constant 0 : i32
    return %arg0, %c0_i32, %c0_i32_0 : i32, i32, i32
  }
  func.func @transform_1(%arg0: i32) -> (i32, i32) {
    %c0_i32 = arith.constant 0 : i32
    %c0_i32_0 = arith.constant 0 : i32
    return %arg0, %c0_i32 : i32, i32
  }
  func.func @transform_2(%arg0: i32) -> (i32, i32) {
    %c0_i32 = arith.constant 0 : i32
    %c0_i32_0 = arith.constant 0 : i32
    %c0_i32_1 = arith.constant 0 : i32
    return %c0_i32, %c0_i32_0 : i32, i32
  }
  func.func @transform_3(%arg0: i32) -> (i32, i32) {
    %c0_i32 = arith.constant 0 : i32
    %c0_i32_0 = arith.constant 0 : i32
    %c0_i32_1 = arith.constant 0 : i32
    return %c0_i32, %c0_i32_0 : i32, i32
  }
  func.func @transform_4(%arg0: i32) -> (i32, i32) {
    %c0_i32 = arith.constant 0 : i32
    %c0_i32_0 = arith.constant 0 : i32
    %c0_i32_1 = arith.constant 0 : i32
    return %c0_i32, %c0_i32_0 : i32, i32
  }
  func.func @transform_5(%arg0: i32) -> (i32, i32) {
    %c0_i32 = arith.constant 0 : i32
    %c0_i32_0 = arith.constant 0 : i32
    %c0_i32_1 = arith.constant 0 : i32
    return %c0_i32, %c0_i32_0 : i32, i32
  }
  func.func @transform_6(%arg0: i32) -> (i32, i32) {
    %c0_i32 = arith.constant 0 : i32
    %c0_i32_0 = arith.constant 0 : i32
    %c0_i32_1 = arith.constant 0 : i32
    return %c0_i32, %c0_i32_0 : i32, i32
  }
  func.func @transform_7(%arg0: i32) -> (i32, i32) {
    %c0_i32 = arith.constant 0 : i32
    %c0_i32_0 = arith.constant 0 : i32
    %c0_i32_1 = arith.constant 0 : i32
    return %c0_i32, %c0_i32_0 : i32, i32
  }
}

</mosaic_0001>

<bundles_post_ra>
// kernel: network_forward.3
= control target key start
LH: loop header
LB: loop body
LE: loop exit
PB: predicated region body
PF: predicated region fallthrough
CT: control target
= control target key end

     0   :  { %s2084_s18 = smov 0   ;;  %s2086_s19 = smov 0   ;;  %s3033_s0 = inlined_call_operand.vmem [shape: bf16[3,512,32], index: 0, kind: input, shape index: {}]   ;;  %s3034_s1 = inlined_call_operand.vmem [shape: bf16[32,128], index: 1, kind: input, shape index: {}]   ;;  %s3035_s2 = inlined_call_operand.vmem [shape: f32[1,128], index: 2, kind: input, shape index: {}]   ;;  %s3036_s3 = inlined_call_operand.vmem [shape: f32[1,128], index: 3, kind: input, shape index: {}]   ;;  %s3037_s4 = inlined_call_operand.vmem [shape: f32[1,128], index: 4, kind: input, shape index: {}]   ;;  %s3038_s5 = inlined_call_operand.vmem [shape: bf16[384,128], index: 5, kind: output, shape index: {}]  }
   0x1   :  { %s2088_s20 = smov 0   ;;  %s2090_s21 = smov 0  }
   0x2   :  { %s2092_s22 = smov 0  }
   0x3 LB: > { %s24_s23 = sadd.s32 1, %s2041_s20  ;;  %s27_s24 = sadd.s32 1, %s2045_s21  ;;  %s2049_s22 = sphi %s2092_s22, %s15_s22   ;;  %s2045_s21 = sphi %s2090_s21, %s3307_s21   ;;  %s2041_s20 = sphi %s2088_s20, %s3306_s20   ;;  %s2037_s19 = sphi %s2086_s19, %s3305_s19   ;;  %s2033_s18 = sphi %s2084_s18, %s3304_s18  }
   0x4   : > { %p25_p0 = scmp.ge.s32.totalorder %s24_s23, 3  ;;  %p1651_p1 = scmp.ge.s32.totalorder %s2049_s22, 1 }
   0x5   : > { %p199_p2 = scmp.lt.s32.totalorder %s2049_s22, 7 }
   0x6   : > { %s3309_s23 = smov (%p25_p0, %s24_s23), 0  ;;  %s3311_s24 = smov (!%p25_p0, %s27_s24), %s2045_s21 }
   0x7   : > { %p200_p3 = pnand %p1651_p1, %p199_p2  ;;  %p29_p4 = scmp.ge.s32.totalorder %s3311_s24, 2 }
   0x9   : > { %s3313_s24 = smov (%p29_p4, %s3311_s24), 0  ;;  %203 = sbr.rel (%p200_p3) target bundleno = 501 (0x1f5), region = 40 }
  0x10   : > { %s1654_s25 = sshll.u32 %s2033_s18, 4  ;;  %v1975_v0 = vld [vmem:[%s3034_s1] sm:$0xff]   ;;  %v1976_v1 = vld [vmem:[%s3034_s1 + $0x8] sm:$0xff]   ;;  %p227_p6 = scmp.lt.s32.totalorder %s2033_s18, 2  ;;  %vm486_vm0 = vcmask 261120  }
  0x11   : > { %p233_p5 = scmp.lt.s32.totalorder %s1654_s25, 47  ;;  %1860 = vmatprep.subr.bf16.mxu0 %v1975_v0  ;;  %1928 = vmatprep.subr.bf16.mxu1 %v1975_v0  ;;  %p936_p7 = scmp.eq.s32.totalorder %s2037_s19, 0  ;;  %v2212_v34 = vld [vmem:[%s3035_s2] ss:$0 sm:$0xff] }
  0x12   : > { %1861 = vmatpush3.bf16.msra.mxu0 %v1975_v0  ;;  %1930 = vmatpush3.bf16.msra.mxu1 %v1975_v0  ;;  %s228_s30 = scalar_select %p227_p6, %s2033_s18, 2 }
  0x13   : > { %s3315_s25 = smov (!%p233_p5, %s1654_s25), 47  ;;  %1862 = vmatprep.subr.bf16.mxu0 %v1976_v1  ;;  %1929 = vmatprep.subr.bf16.mxu1 %v1976_v1  ;;  %p937_p8 = scmp.eq.s32.totalorder %s2033_s18, 0 }
  0x14   : > { %s1655_s6 = sshll.u32 %s3315_s25, 2  ;;  %s1762_s10 = sshll.u32 %s228_s30, 8 }
  0x15   : > { %s2130_s9 = scalar_lea.vmem %s3038_s5, %s1655_s6  ;;  %s2135_s13 = scalar_lea.vmem %s3033_s0, %s1762_s10 }
  0x16   : > { %1863 = vmatpush3.bf16.msra.mxu0 %v1976_v1  ;;  %1931 = vmatpush3.bf16.msra.mxu1 %v1976_v1  ;;  %v1977_v2 = vld [vmem:[%s2135_s13] sm:$0xff]   ;;  %v1979_v4 = vld [vmem:[%s2135_s13 + $0x8] sm:$0xff]   ;;  %v1981_v6 = vld [vmem:[%s2135_s13 + $0x10] sm:$0xff]   ;;  %p2205_p9 = pnand %p937_p8, %p936_p7 }
  0x17   : > { %v1978_v3 = vld [vmem:[%s2135_s13 + $0x80] sm:$0xff]   ;;  %1864 = vmatprep.mubr.msk.bf16.mxu0 %vm486_vm0, %v1977_v2  ;;  %v1980_v5 = vld [vmem:[%s2135_s13 + $0x88] sm:$0xff]   ;;  %v1982_v7 = vld [vmem:[%s2135_s13 + $0x90] sm:$0xff]  }
  0x18   : > { %1896 = vmatprep.mubr.msk.bf16.mxu1 %vm486_vm0, %v1978_v3  ;;  %v1983_v8 = vld [vmem:[%s2135_s13 + $0x18] sm:$0xff]   ;;  %v1985_v10 = vld [vmem:[%s2135_s13 + $0x20] sm:$0xff]   ;;  %v1987_v12 = vld [vmem:[%s2135_s13 + $0x28] sm:$0xff]  }
  0x19   : > { %1865 = vmatmul.mubr.msk.bf16.vlgmr.msra.gmra.mrb[0].mxu0 %vm486_vm0, %v1979_v4  ;;  %1897 = vmatmul.mubr.msk.bf16.vlgmr.msra.gmra.mrb[0].mxu1 %vm486_vm0, %v1980_v5  ;;  %v1984_v9 = vld [vmem:[%s2135_s13 + $0x98] sm:$0xff]   ;;  %v1986_v11 = vld [vmem:[%s2135_s13 + $0xa0] sm:$0xff]   ;;  %v1988_v13 = vld [vmem:[%s2135_s13 + $0xa8] sm:$0xff]  }
  0x1a   : > { %1868 = vmatprep.mubr.msk.bf16.mxu0 %vm486_vm0, %v1981_v6  ;;  %1900 = vmatprep.mubr.msk.bf16.mxu1 %vm486_vm0, %v1982_v7  ;;  %v1989_v14 = vld [vmem:[%s2135_s13 + $0x30] sm:$0xff]   ;;  %v1991_v16 = vld [vmem:[%s2135_s13 + $0x38] sm:$0xff]   ;;  %v1993_v18 = vld [vmem:[%s2135_s13 + $0x40] sm:$0xff]  }
  0x1b   : > { %v1990_v15 = vld [vmem:[%s2135_s13 + $0xb0] sm:$0xff]   ;;  %v1992_v17 = vld [vmem:[%s2135_s13 + $0xb8] sm:$0xff]   ;;  %v1994_v19 = vld [vmem:[%s2135_s13 + $0xc0] sm:$0xff]  }
  0x1c   : > { %v1995_v20 = vld [vmem:[%s2135_s13 + $0x48] sm:$0xff]   ;;  %v1997_v22 = vld [vmem:[%s2135_s13 + $0x50] sm:$0xff]   ;;  %v1999_v24 = vld [vmem:[%s2135_s13 + $0x58] sm:$0xff]  }
  0x1d   : > { %v1996_v21 = vld [vmem:[%s2135_s13 + $0xc8] sm:$0xff]   ;;  %v1998_v23 = vld [vmem:[%s2135_s13 + $0xd0] sm:$0xff]   ;;  %v2000_v25 = vld [vmem:[%s2135_s13 + $0xd8] sm:$0xff]  }
  0x1e   : > { %v2001_v26 = vld [vmem:[%s2135_s13 + $0x60] sm:$0xff]   ;;  %v2003_v28 = vld [vmem:[%s2135_s13 + $0x68] sm:$0xff]   ;;  %v2005_v30 = vld [vmem:[%s2135_s13 + $0x70] sm:$0xff]  }
  0x1f   : > { %v2002_v27 = vld [vmem:[%s2135_s13 + $0xe0] sm:$0xff]   ;;  %v2004_v29 = vld [vmem:[%s2135_s13 + $0xe8] sm:$0xff]   ;;  %v2006_v31 = vld [vmem:[%s2135_s13 + $0xf0] sm:$0xff]  }
  0x20   : > { %v2007_v32 = vld [vmem:[%s2135_s13 + $0x78] sm:$0xff]  }
  0x21   : > { %1869 = vmatmul.mubr.msk.bf16.gmra.mrb[4].mxu0 %vm486_vm0, %v1983_v8  ;;  %1901 = vmatmul.mubr.msk.bf16.gmra.mrb[4].mxu1 %vm486_vm0, %v1984_v9  ;;  %v2008_v33 = vld [vmem:[%s2135_s13 + $0xf8] sm:$0xff]  }
  0x22   : > { %1872 = vmatprep.mubr.msk.bf16.mxu0 %vm486_vm0, %v1985_v10  ;;  %1904 = vmatprep.mubr.msk.bf16.mxu1 %vm486_vm0, %v1986_v11 }
  0x29   : > { %1873 = vmatmul.mubr.msk.bf16.gmra.mrb[8].mxu0 %vm486_vm0, %v1987_v12  ;;  %1905 = vmatmul.mubr.msk.bf16.gmra.mrb[8].mxu1 %vm486_vm0, %v1988_v13 }
  0x2a   : > { %1876 = vmatprep.mubr.msk.bf16.mxu0 %vm486_vm0, %v1989_v14  ;;  %1908 = vmatprep.mubr.msk.bf16.mxu1 %vm486_vm0, %v1990_v15 }
  0x31   : > { %1877 = vmatmul.mubr.msk.bf16.gmra.mrb[12].mxu0 %vm486_vm0, %v1991_v16  ;;  %1909 = vmatmul.mubr.msk.bf16.gmra.mrb[12].mxu1 %vm486_vm0, %v1992_v17 }
  0x32   : > { %1880 = vmatprep.mubr.msk.bf16.mxu0 %vm486_vm0, %v1993_v18  ;;  %1912 = vmatprep.mubr.msk.bf16.mxu1 %vm486_vm0, %v1994_v19 }
  0x39   : > { %1881 = vmatmul.mubr.msk.bf16.gmra.mrb[16].mxu0 %vm486_vm0, %v1995_v20  ;;  %1913 = vmatmul.mubr.msk.bf16.gmra.mrb[16].mxu1 %vm486_vm0, %v1996_v21 }
  0x3a   : > { %1884 = vmatprep.mubr.msk.bf16.mxu0 %vm486_vm0, %v1997_v22  ;;  %1916 = vmatprep.mubr.msk.bf16.mxu1 %vm486_vm0, %v1998_v23 }
  0x41   : > { %1885 = vmatmul.mubr.msk.bf16.gmra.mrb[20].mxu0 %vm486_vm0, %v1999_v24  ;;  %1917 = vmatmul.mubr.msk.bf16.gmra.mrb[20].mxu1 %vm486_vm0, %v2000_v25 }
  0x42   : > { %1888 = vmatprep.mubr.msk.bf16.mxu0 %vm486_vm0, %v2001_v26  ;;  %1920 = vmatprep.mubr.msk.bf16.mxu1 %vm486_vm0, %v2002_v27 }
  0x49   : > { %1889 = vmatmul.mubr.msk.bf16.gmra.mrb[24].mxu0 %vm486_vm0, %v2003_v28  ;;  %1921 = vmatmul.mubr.msk.bf16.gmra.mrb[24].mxu1 %vm486_vm0, %v2004_v29 }
  0x4a   : > { %1892 = vmatprep.mubr.msk.bf16.mxu0 %vm486_vm0, %v2005_v30  ;;  %1924 = vmatprep.mubr.msk.bf16.mxu1 %vm486_vm0, %v2006_v31 }
  0x51   : > { %1893 = vmatmul.mubr.msk.bf16.gmra.mrb[28].mxu0 %vm486_vm0, %v2007_v32  ;;  %1925 = vmatmul.mubr.msk.bf16.gmra.mrb[28].mxu1 %vm486_vm0, %v2008_v33 }
  0xec   : > { %v1866_v35 = vpop.f32.mrb[0].mxu0  ;;  %v1898_v37 = vpop.f32.mrb[0].mxu1 }
  0xed   : > { %v626_v36 = vadd.f32 %v1866_v35, %v2212_v34  ;;  %v617_v38 = vpop.f32.mrb[1].mxu0  ;;  %v754_v39 = vadd.f32 %v1898_v37, %v2212_v34  ;;  %v745_v41 = vpop.f32.mrb[1].mxu1 }
  0xee   : > { %v618_v40 = vadd.f32 %v2212_v34, %v617_v38  ;;  %v1867_v42 = vpop.f32.mrb[2].mxu0  ;;  %v746_v44 = vadd.f32 %v2212_v34, %v745_v41  ;;  %v1899_v46 = vpop.f32.mrb[2].mxu1 }
  0xef   : > { %v2217_v43 = vmax.f32 %v626_v36, 0.0  ;;  %v629_v45 = vadd.f32 %v1867_v42, %v2212_v34  ;;  %v620_v47 = vpop.f32.mrb[3].mxu0  ;;  %v2221_v48 = vmax.f32 %v754_v39, 0.0  ;;  %v757_v50 = vadd.f32 %v1899_v46, %v2212_v34  ;;  %v748_v52 = vpop.f32.mrb[3].mxu1 }
  0xf0   : > { %v2223_v49 = vmax.f32 %v618_v40, 0.0  ;;  %v621_v51 = vadd.f32 %v2212_v34, %v620_v47  ;;  %v2227_v53 = vmax.f32 %v746_v44, 0.0  ;;  %v749_v55 = vadd.f32 %v2212_v34, %v748_v52 }
  0xf1   : > { %3108 = vst [vmem:[#allocation6_spill] sm:$0xff] %v2217_v43  ;;  %3109 = vst [vmem:[#allocation7_spill] sm:$0xff] %v2221_v48  ;;  %v2229_v54 = vmax.f32 %v629_v45, 0.0  ;;  %v2232_v56 = vmax.f32 %v757_v50, 0.0 }
  0xf2   : > { %3110 = vst [vmem:[#allocation8_spill] sm:$0xff] %v2223_v49  ;;  %3111 = vst [vmem:[#allocation9_spill] sm:$0xff] %v2227_v53  ;;  %v2234_v57 = vmax.f32 %v621_v51, 0.0  ;;  %v2236_v58 = vmax.f32 %v749_v55, 0.0 }
  0xf3   : > { %3112 = vst [vmem:[#allocation10_spill] sm:$0xff] %v2229_v54 }
  0xf4   : > { %3113 = vst [vmem:[#allocation11_spill] sm:$0xff] %v2234_v57  ;;  %3114 = vst [vmem:[#allocation12_spill] sm:$0xff] %v2236_v58  ;;  %v1870_v59 = vpop.f32.mrb[4].mxu0  ;;  %v1902_v61 = vpop.f32.mrb[4].mxu1 }
  0xf5   : > { %v642_v60 = vadd.f32 %v1870_v59, %v2212_v34  ;;  %v633_v62 = vpop.f32.mrb[5].mxu0  ;;  %v770_v63 = vadd.f32 %v1902_v61, %v2212_v34  ;;  %v761_v1 = vpop.f32.mrb[5].mxu1 }
  0xf6   : > { %v634_v0 = vadd.f32 %v2212_v34, %v633_v62  ;;  %v1871_v2 = vpop.f32.mrb[6].mxu0  ;;  %v762_v4 = vadd.f32 %v2212_v34, %v761_v1  ;;  %v1903_v6 = vpop.f32.mrb[6].mxu1 }
  0xf7   : > { %v2241_v3 = vmax.f32 %v642_v60, 0.0  ;;  %v645_v5 = vadd.f32 %v1871_v2, %v2212_v34  ;;  %v636_v7 = vpop.f32.mrb[7].mxu0  ;;  %v2245_v8 = vmax.f32 %v770_v63, 0.0  ;;  %v773_v10 = vadd.f32 %v1903_v6, %v2212_v34  ;;  %v764_v12 = vpop.f32.mrb[7].mxu1 }
  0xf8   : > { %v2247_v9 = vmax.f32 %v634_v0, 0.0  ;;  %v637_v11 = vadd.f32 %v2212_v34, %v636_v7  ;;  %v2251_v13 = vmax.f32 %v762_v4, 0.0  ;;  %v765_v15 = vadd.f32 %v2212_v34, %v764_v12 }
  0xf9   : > { %3115 = vst [vmem:[#allocation13_spill] sm:$0xff] %v2241_v3  ;;  %v2253_v14 = vmax.f32 %v645_v5, 0.0  ;;  %v2256_v16 = vmax.f32 %v773_v10, 0.0 }
  0xfa   : > { %3116 = vst [vmem:[#allocation14_spill] sm:$0xff] %v2247_v9  ;;  %v2258_v17 = vmax.f32 %v637_v11, 0.0  ;;  %v2260_v18 = vmax.f32 %v765_v15, 0.0 }
  0xfb   : > { %3117 = vst [vmem:[#allocation15_spill] sm:$0xff] %v2253_v14 }
  0xfc   : > { %3118 = vst [vmem:[#allocation16_spill] sm:$0xff] %v2258_v17  ;;  %v1874_v19 = vpop.f32.mrb[8].mxu0  ;;  %v1906_v21 = vpop.f32.mrb[8].mxu1 }
  0xfd   : > { %v658_v20 = vadd.f32 %v1874_v19, %v2212_v34  ;;  %v649_v22 = vpop.f32.mrb[9].mxu0  ;;  %v786_v23 = vadd.f32 %v1906_v21, %v2212_v34  ;;  %v777_v25 = vpop.f32.mrb[9].mxu1 }
  0xfe   : > { %v650_v24 = vadd.f32 %v2212_v34, %v649_v22  ;;  %v1875_v26 = vpop.f32.mrb[10].mxu0  ;;  %v778_v28 = vadd.f32 %v2212_v34, %v777_v25  ;;  %v1907_v30 = vpop.f32.mrb[10].mxu1 }
  0xff   : > { %v2265_v27 = vmax.f32 %v658_v20, 0.0  ;;  %v661_v29 = vadd.f32 %v1875_v26, %v2212_v34  ;;  %v652_v31 = vpop.f32.mrb[11].mxu0  ;;  %v2269_v32 = vmax.f32 %v786_v23, 0.0  ;;  %v789_v35 = vadd.f32 %v1907_v30, %v2212_v34  ;;  %v780_v37 = vpop.f32.mrb[11].mxu1 }
 0x100   : > { %v2271_v33 = vmax.f32 %v650_v24, 0.0  ;;  %v653_v36 = vadd.f32 %v2212_v34, %v652_v31  ;;  %v2275_v38 = vmax.f32 %v778_v28, 0.0  ;;  %v781_v40 = vadd.f32 %v2212_v34, %v780_v37 }
 0x101   : > { %3119 = vst [vmem:[#allocation17_spill] sm:$0xff] %v2265_v27  ;;  %3120 = vst [vmem:[#allocation18_spill] sm:$0xff] %v2269_v32  ;;  %v2277_v39 = vmax.f32 %v661_v29, 0.0  ;;  %v2280_v41 = vmax.f32 %v789_v35, 0.0 }
 0x102   : > { %3121 = vst [vmem:[#allocation19_spill] sm:$0xff] %v2271_v33  ;;  %3122 = vst [vmem:[#allocation20_spill] sm:$0xff] %v2275_v38  ;;  %v2282_v42 = vmax.f32 %v653_v36, 0.0  ;;  %v2284_v44 = vmax.f32 %v781_v40, 0.0 }
 0x103   : > { %3123 = vst [vmem:[#allocation21_spill] sm:$0xff] %v2277_v39  ;;  %3124 = vst [vmem:[#allocation22_spill] sm:$0xff] %v2280_v41 }
 0x104   : > { %3125 = vst [vmem:[#allocation23_spill] sm:$0xff] %v2282_v42  ;;  %3126 = vst [vmem:[#allocation24_spill] sm:$0xff] %v2284_v44  ;;  %v1878_v45 = vpop.f32.mrb[12].mxu0  ;;  %v1910_v47 = vpop.f32.mrb[12].mxu1 }
 0x105   : > { %v674_v46 = vadd.f32 %v1878_v45, %v2212_v34  ;;  %v665_v50 = vpop.f32.mrb[13].mxu0  ;;  %v802_v51 = vadd.f32 %v1910_v47, %v2212_v34  ;;  %v793_v55 = vpop.f32.mrb[13].mxu1 }
 0x106   : > { %v666_v52 = vadd.f32 %v2212_v34, %v665_v50  ;;  %v1879_v59 = vpop.f32.mrb[14].mxu0  ;;  %v794_v61 = vadd.f32 %v2212_v34, %v793_v55  ;;  %v1911_v63 = vpop.f32.mrb[14].mxu1 }
 0x107   : > { %v2289_v60 = vmax.f32 %v674_v46, 0.0  ;;  %v677_v62 = vadd.f32 %v1879_v59, %v2212_v34  ;;  %v668_v0 = vpop.f32.mrb[15].mxu0  ;;  %v2293_v1 = vmax.f32 %v802_v51, 0.0  ;;  %v805_v4 = vadd.f32 %v1911_v63, %v2212_v34  ;;  %v796_v6 = vpop.f32.mrb[15].mxu1 }
 0x108   : > { %v2295_v2 = vmax.f32 %v666_v52, 0.0  ;;  %v669_v5 = vadd.f32 %v2212_v34, %v668_v0  ;;  %v2299_v7 = vmax.f32 %v794_v61, 0.0  ;;  %v797_v11 = vadd.f32 %v2212_v34, %v796_v6 }
 0x109   : > { %3127 = vst [vmem:[#allocation25_spill] sm:$0xff] %v2289_v60  ;;  %3128 = vst [vmem:[#allocation26_spill] sm:$0xff] %v2293_v1  ;;  %v2301_v10 = vmax.f32 %v677_v62, 0.0  ;;  %v2304_v12 = vmax.f32 %v805_v4, 0.0 }
 0x10a   : > { %3129 = vst [vmem:[#allocation27_spill] sm:$0xff] %v2295_v2  ;;  %3130 = vst [vmem:[#allocation28_spill] sm:$0xff] %v2299_v7  ;;  %v2306_v15 = vmax.f32 %v669_v5, 0.0  ;;  %v2308_v19 = vmax.f32 %v797_v11, 0.0 }
 0x10b   : > { %3131 = vst [vmem:[#allocation29_spill] sm:$0xff] %v2301_v10  ;;  %3132 = vst [vmem:[#allocation30_spill] sm:$0xff] %v2304_v12 }
 0x10c   : > { %3133 = vst [vmem:[#allocation31_spill] sm:$0xff] %v2306_v15  ;;  %3134 = vst [vmem:[#allocation32_spill] sm:$0xff] %v2308_v19  ;;  %v1882_v20 = vpop.f32.mrb[16].mxu0  ;;  %v1914_v22 = vpop.f32.mrb[16].mxu1 }
 0x10d   : > { %v690_v21 = vadd.f32 %v1882_v20, %v2212_v34  ;;  %v681_v23 = vpop.f32.mrb[17].mxu0  ;;  %v818_v24 = vadd.f32 %v1914_v22, %v2212_v34  ;;  %v809_v26 = vpop.f32.mrb[17].mxu1 }
 0x10e   : > { %v682_v25 = vadd.f32 %v2212_v34, %v681_v23  ;;  %v1883_v28 = vpop.f32.mrb[18].mxu0  ;;  %v810_v30 = vadd.f32 %v2212_v34, %v809_v26  ;;  %v1915_v35 = vpop.f32.mrb[18].mxu1 }
 0x10f   : > { %v2313_v29 = vmax.f32 %v690_v21, 0.0  ;;  %v693_v31 = vadd.f32 %v1883_v28, %v2212_v34  ;;  %v684_v36 = vpop.f32.mrb[19].mxu0  ;;  %v2317_v37 = vmax.f32 %v818_v24, 0.0  ;;  %v821_v45 = vadd.f32 %v1915_v35, %v2212_v34  ;;  %v812_v47 = vpop.f32.mrb[19].mxu1 }
 0x110   : > { %v2319_v40 = vmax.f32 %v682_v25, 0.0  ;;  %v685_v46 = vadd.f32 %v2212_v34, %v684_v36  ;;  %v2323_v50 = vmax.f32 %v810_v30, 0.0  ;;  %v813_v52 = vadd.f32 %v2212_v34, %v812_v47 }
 0x111   : > { %3135 = vst [vmem:[#allocation33_spill] sm:$0xff] %v2313_v29  ;;  %v2325_v51 = vmax.f32 %v693_v31, 0.0  ;;  %v2328_v55 = vmax.f32 %v821_v45, 0.0 }
 0x112   : > { %3136 = vst [vmem:[#allocation34_spill] sm:$0xff] %v2319_v40  ;;  %3137 = vst [vmem:[#allocation35_spill] sm:$0xff] %v2323_v50  ;;  %v2330_v59 = vmax.f32 %v685_v46, 0.0  ;;  %v2332_v61 = vmax.f32 %v813_v52, 0.0 }
 0x113   : > { %3138 = vst [vmem:[#allocation36_spill] sm:$0xff] %v2325_v51 }
 0x114   : > { %3139 = vst [vmem:[#allocation37_spill] sm:$0xff] %v2330_v59  ;;  %3140 = vst [vmem:[#allocation38_spill] sm:$0xff] %v2332_v61  ;;  %v1886_v62 = vpop.f32.mrb[20].mxu0  ;;  %v1918_v0 = vpop.f32.mrb[20].mxu1 }
 0x115   : > { %v706_v63 = vadd.f32 %v1886_v62, %v2212_v34  ;;  %v697_v4 = vpop.f32.mrb[21].mxu0  ;;  %v834_v5 = vadd.f32 %v1918_v0, %v2212_v34  ;;  %v825_v11 = vpop.f32.mrb[21].mxu1 }
 0x116   : > { %v698_v6 = vadd.f32 %v2212_v34, %v697_v4  ;;  %v1887_v20 = vpop.f32.mrb[22].mxu0  ;;  %v826_v22 = vadd.f32 %v2212_v34, %v825_v11  ;;  %v1919_v24 = vpop.f32.mrb[22].mxu1 }
 0x117   : > { %v2337_v21 = vmax.f32 %v706_v63, 0.0  ;;  %v709_v23 = vadd.f32 %v1887_v20, %v2212_v34  ;;  %v700_v25 = vpop.f32.mrb[23].mxu0  ;;  %v2341_v26 = vmax.f32 %v834_v5, 0.0  ;;  %v837_v30 = vadd.f32 %v1919_v24, %v2212_v34  ;;  %v828_v35 = vpop.f32.mrb[23].mxu1 }
 0x118   : > { %v2343_v28 = vmax.f32 %v698_v6, 0.0  ;;  %v701_v31 = vadd.f32 %v2212_v34, %v700_v25  ;;  %v2347_v36 = vmax.f32 %v826_v22, 0.0  ;;  %v829_v46 = vadd.f32 %v2212_v34, %v828_v35 }
 0x119   : > { %3141 = vst [vmem:[#allocation39_spill] sm:$0xff] %v2337_v21  ;;  %v2349_v45 = vmax.f32 %v709_v23, 0.0  ;;  %v2352_v47 = vmax.f32 %v837_v30, 0.0 }
 0x11a   : > { %3142 = vst [vmem:[#allocation40_spill] sm:$0xff] %v2343_v28  ;;  %3143 = vst [vmem:[#allocation41_spill] sm:$0xff] %v2347_v36  ;;  %v2354_v52 = vmax.f32 %v701_v31, 0.0  ;;  %v2356_v62 = vmax.f32 %v829_v46, 0.0 }
 0x11b   : > { %3144 = vst [vmem:[#allocation42_spill] sm:$0xff] %v2349_v45 }
 0x11c   : > { %3145 = vst [vmem:[#allocation43_spill] sm:$0xff] %v2354_v52  ;;  %v1890_v63 = vpop.f32.mrb[24].mxu0  ;;  %v1922_v4 = vpop.f32.mrb[24].mxu1 }
 0x11d   : > { %v722_v0 = vadd.f32 %v1890_v63, %v2212_v34  ;;  %v713_v5 = vpop.f32.mrb[25].mxu0  ;;  %v850_v6 = vadd.f32 %v1922_v4, %v2212_v34  ;;  %v841_v20 = vpop.f32.mrb[25].mxu1 }
 0x11e   : > { %v714_v11 = vadd.f32 %v2212_v34, %v713_v5  ;;  %v1891_v22 = vpop.f32.mrb[26].mxu0  ;;  %v842_v24 = vadd.f32 %v2212_v34, %v841_v20  ;;  %v1923_v30 = vpop.f32.mrb[26].mxu1 }
 0x11f   : > { %v2361_v23 = vmax.f32 %v722_v0, 0.0  ;;  %v725_v25 = vadd.f32 %v1891_v22, %v2212_v34  ;;  %v716_v31 = vpop.f32.mrb[27].mxu0  ;;  %v2365_v35 = vmax.f32 %v850_v6, 0.0  ;;  %v853_v63 = vadd.f32 %v1923_v30, %v2212_v34  ;;  %v844_v12 = vpop.f32.mrb[27].mxu1 }
 0x120   : > { %v2367_v46 = vmax.f32 %v714_v11, 0.0  ;;  %v717_v4 = vadd.f32 %v2212_v34, %v716_v31  ;;  %v2371_v5 = vmax.f32 %v842_v24, 0.0  ;;  %v845_v0 = vadd.f32 %v2212_v34, %v844_v12 }
 0x121   : > { %3146 = vst [vmem:[#allocation44_spill] sm:$0xff] %v2361_v23  ;;  %3147 = vst [vmem:[#allocation45_spill] sm:$0xff] %v2365_v35  ;;  %v2373_v1 = vmax.f32 %v725_v25, 0.0  ;;  %v2376_v20 = vmax.f32 %v853_v63, 0.0 }
 0x122   : > { %3148 = vst [vmem:[#allocation46_spill] sm:$0xff] %v2367_v46  ;;  %3149 = vst [vmem:[#allocation47_spill] sm:$0xff] %v2371_v5  ;;  %v2378_v22 = vmax.f32 %v717_v4, 0.0  ;;  %v2380_v19 = vmax.f32 %v845_v0, 0.0 }
 0x123   : > { %3150 = vst [vmem:[#allocation48_spill] sm:$0xff] %v2373_v1  ;;  %3151 = vst [vmem:[#allocation49_spill] sm:$0xff] %v2376_v20 }
 0x124   : > { %3152 = vst [vmem:[#allocation50_spill] sm:$0xff] %v2378_v22  ;;  %3153 = vst [vmem:[#allocation51_spill] sm:$0xff] %v2380_v19  ;;  %v1894_v6 = vpop.f32.mrb[28].mxu0  ;;  %v1926_v7 = vpop.f32.mrb[28].mxu1 }
 0x125   : > { %v738_v11 = vadd.f32 %v1894_v6, %v2212_v34  ;;  %v729_v30 = vpop.f32.mrb[29].mxu0  ;;  %v866_v31 = vadd.f32 %v1926_v7, %v2212_v34  ;;  %v857_v41 = vpop.f32.mrb[29].mxu1 }
 0x126   : > { %v730_v24 = vadd.f32 %v2212_v34, %v729_v30  ;;  %v1895_v25 = vpop.f32.mrb[30].mxu0  ;;  %v858_v12 = vadd.f32 %v2212_v34, %v857_v41  ;;  %v1927_v4 = vpop.f32.mrb[30].mxu1  ;;  %941 = sbr.rel (%p2205_p9) target bundleno = 302 (0x12e), region = 44 }
 0x127   : > { %v2385_v35 = vmax.f32 %v738_v11, 0.0  ;;  %v741_v63 = vadd.f32 %v1895_v25, %v2212_v34  ;;  %v732_v0 = vpop.f32.mrb[31].mxu0  ;;  %v2389_v20 = vmax.f32 %v866_v31, 0.0  ;;  %v869_v6 = vadd.f32 %v1927_v4, %v2212_v34  ;;  %v860_v10 = vpop.f32.mrb[31].mxu1 }
 0x128   : > { %v2391_v32 = vmax.f32 %v730_v24, 0.0  ;;  %v733_v7 = vadd.f32 %v2212_v34, %v732_v0  ;;  %v2395_v30 = vmax.f32 %v858_v12, 0.0  ;;  %v861_v11 = vadd.f32 %v2212_v34, %v860_v10 }
 0x129   : > { %3154 = vst [vmem:[#allocation52_spill] sm:$0xff] %v2385_v35  ;;  %3155 = vst [vmem:[#allocation53_spill] sm:$0xff] %v2389_v20  ;;  %v2397_v60 = vmax.f32 %v741_v63, 0.0  ;;  %v2400_v41 = vmax.f32 %v869_v6, 0.0  ;;  %v2051_v31 = vmov (!%p2205_p9), 0.0  }
 0x12a   : > { %3156 = vst [vmem:[#allocation54_spill] sm:$0xff] %v2391_v32  ;;  %3157 = vst [vmem:[#allocation55_spill] sm:$0xff] %v2395_v30  ;;  %v2402_v25 = vmax.f32 %v733_v7, 0.0  ;;  %v2404_v35 = vmax.f32 %v861_v11, 0.0 }
 0x12b   : > { %3158 = vst [vmem:[#allocation56_spill] sm:$0xff] %v2397_v60  ;;  %3159 = vst [vmem:[#allocation57_spill] sm:$0xff] %v2400_v41 }
 0x12c   : > { %3160 = vst [vmem:[#allocation58_spill] sm:$0xff] %v2402_v25  ;;  %3161 = vst [vmem:[#allocation59_spill] sm:$0xff] %v2404_v35 }
 0x12d   : > { %942 = vst [vmem:[#allocation2] sm:$0x1] %v2051_v31  ;;  %943 = vst [vmem:[#allocation3] sm:$0x1] %v2051_v31 }
 0x12e PF: > { %p1723_p10 = scmp.ne.s32.totalorder %s2037_s19, 0 }
 0x130   : > { %946 = sbr.rel (%p1723_p10) target bundleno = 414 (0x19e), region = 48 }
 0x137   : > { %v948_v24 = vlaneseq  ;;  %s1724_s17 = sshll.u32 %s2033_s18, 7  ;;  %v1030_v10 = vadd.f32 %v2319_v40, %v2223_v49  ;;  %v1031_v63 = vadd.f32 %v2330_v59, %v2234_v57  ;;  %v1032_v4 = vadd.f32 %v2313_v29, %v2217_v43 }
 0x138   : > { %v965_v12 = vstv %s1724_s17  ;;  %v1033_v0 = vadd.f32 %v2325_v51, %v2229_v54  ;;  %v2420_v6 = vadd.f32 %v2343_v28, %v2247_v9  ;;  %v2424_v7 = vadd.f32 %v2354_v52, %v2258_v17 }
 0x139   : > { %v949_v34 = vshrl.u32 %v948_v24, 7  ;;  %v2428_v11 = vadd.f32 %v2337_v21, %v2241_v3  ;;  %v2432_v31 = vadd.f32 %v2349_v45, %v2253_v14  ;;  %v2436_v51 = vadd.f32 %v2367_v46, %v2271_v33 }
 0x13a   : > { %v2440_v28 = vadd.f32 %v2378_v22, %v2282_v42  ;;  %v2444_v52 = vadd.f32 %v2361_v23, %v2265_v27  ;;  %v2448_v45 = vadd.f32 %v2373_v1, %v2277_v39  ;;  %v1048_v35 = vadd.f32 %v2317_v37, %v2221_v48 }
 0x13b   : > { %v950_v24 = vadd.s32 8, %v949_v34  ;;  %v951_v29 = vadd.s32 16, %v949_v34  ;;  %v952_v21 = vadd.s32 24, %v949_v34  ;;  %v953_v59 = vadd.s32 32, %v949_v34 }
 0x13c   : > { %3162 = vst [vmem:[#allocation60_spill] sm:$0xff] %v2440_v28  ;;  %3163 = vst [vmem:[#allocation61_spill] sm:$0xff] %v2444_v52  ;;  %v954_v40 = vadd.s32 40, %v949_v34  ;;  %v955_v14 = vadd.s32 48, %v949_v34  ;;  %v956_v3 = vadd.s32 56, %v949_v34  ;;  %v957_v46 = vadd.s32 64, %v949_v34 }
 0x13d   : > { %3164 = vst [vmem:[#allocation62_spill] sm:$0xff] %v2448_v45  ;;  %v958_v33 = vadd.s32 72, %v949_v34  ;;  %v959_v17 = vadd.s32 80, %v949_v34  ;;  %v960_v9 = vadd.s32 88, %v949_v34  ;;  %v966_v22 = vadd.s32 %v965_v12, %v949_v34 }
 0x13e   : > { %v961_v42 = vadd.s32 96, %v949_v34  ;;  %v962_v54 = vadd.s32 104, %v949_v34  ;;  %v963_v43 = vadd.s32 112, %v949_v34  ;;  %v967_v23 = vadd.s32 %v965_v12, %v950_v24 }
 0x13f   : > { %v964_v27 = vadd.s32 120, %v949_v34  ;;  %v968_v57 = vadd.s32 %v965_v12, %v951_v29  ;;  %v969_v49 = vadd.s32 %v965_v12, %v952_v21  ;;  %v1046_v52 = vadd.f32 %v2323_v50, %v2227_v53 }
 0x140   : > { %v970_v1 = vadd.s32 %v965_v12, %v953_v59  ;;  %v971_v39 = vadd.s32 %v965_v12, %v954_v40  ;;  %v972_v45 = vadd.s32 %v965_v12, %v955_v14  ;;  %v1047_v28 = vadd.f32 %v2332_v61, %v2236_v58 }
 0x141   : > { %v973_v41 = vadd.s32 %v965_v12, %v956_v3  ;;  %v974_v20 = vadd.s32 %v965_v12, %v957_v46  ;;  %vm982_vm1 = vcmp.lt.s32.totalorder %v966_v22, 288  ;;  %v2456_v30 = vadd.s32 %v965_v12, %v958_v33 }
 0x142   : > { %v2458_v34 = vadd.s32 %v965_v12, %v959_v17  ;;  %v2460_v29 = vadd.s32 %v965_v12, %v960_v9  ;;  %vm983_vm2 = vcmp.lt.s32.totalorder %v967_v23, 288  ;;  %v2462_v21 = vadd.s32 %v965_v12, %v961_v42 }
 0x143   : > { %vm984_vm3 = vcmp.lt.s32.totalorder %v968_v57, 288  ;;  %v1049_v14 = vadd.f32 %v2328_v55, %v2232_v56  ;;  %v1062_v40 = vadd.f32 %v1046_v52, %v1030_v10  ;;  %v2466_v3 = vadd.s32 %v965_v12, %v962_v54 }
 0x144   : > { %v2468_v59 = vadd.s32 %v965_v12, %v963_v43  ;;  %v3078_v46 = vmov 0.0   ;;  %v1063_v17 = vadd.f32 %v1047_v28, %v1031_v63  ;;  %vm985_vm4 = vcmp.lt.s32.totalorder %v969_v49, 288 }
 0x145   : > { %v2471_v33 = vsel %vm982_vm1, 1.0, %v3078_v46  ;;  %v2474_v9 = vsel %vm983_vm2, 1.0, %v3078_v46  ;;  %v1050_v57 = vadd.f32 %v2347_v36, %v2251_v13  ;;  %v1064_v42 = vadd.f32 %v1048_v35, %v1032_v4 }
 0x146   : > { %3165 = vst [vmem:[#allocation63_spill] sm:$0xff] %v2474_v9  ;;  %v2478_v23 = vadd.s32 %v965_v12, %v964_v27  ;;  %vm986_vm5 = vcmp.lt.s32.totalorder %v970_v1, 288  ;;  %vm987_vm6 = vcmp.lt.s32.totalorder %v971_v39, 288  ;;  %v2481_v43 = vsel %vm984_vm3, 1.0, %v3078_v46 }
 0x147   : > { %3166 = vst [vmem:[#allocation64_spill] sm:$0xff] %v2481_v43  ;;  %vm988_vm7 = vcmp.lt.s32.totalorder %v972_v45, 288  ;;  %v1051_v54 = vadd.f32 %v2356_v62, %v2260_v18  ;;  %v1065_v28 = vadd.f32 %v1049_v14, %v1033_v0  ;;  %v1078_v49 = vmul.f32 %v2471_v33, %v1062_v40 }
 0x148   : > { %vm989_vm8 = vcmp.lt.s32.totalorder %v973_v41, 288  ;;  %vm990_vm9 = vcmp.lt.s32.totalorder %v974_v20, 288  ;;  %v2487_v52 = vsel %vm985_vm4, 1.0, %v3078_v46  ;;  %v1079_v27 = vmul.f32 %v2474_v9, %v1063_v17  ;;  %v3173_v20 = vld [vmem:[#allocation29_spill] sm:$0xff] }
 0x149   : > { %3167 = vst [vmem:[#allocation65_spill] sm:$0xff] %v2487_v52  ;;  %vm991_vm10 = vcmp.lt.s32.totalorder %v2456_v30, 288  ;;  %v1052_v35 = vadd.f32 %v2341_v26, %v2245_v8  ;;  %v1066_v22 = vadd.f32 %v1050_v57, %v2420_v6  ;;  %v1080_v10 = vmul.f32 %v2481_v43, %v1064_v42  ;;  %v3182_v43 = vld [vmem:[#allocation26_spill] sm:$0xff]  ;;  %v3185_v9 = vld [vmem:[#allocation57_spill] sm:$0xff] }
 0x14a   : > { %vm992_vm11 = vcmp.lt.s32.totalorder %v2458_v34, 288  ;;  %vm993_vm12 = vcmp.lt.s32.totalorder %v2460_v29, 288  ;;  %vm994_vm13 = vcmp.lt.s32.totalorder %v2462_v21, 288  ;;  %v2500_v12 = vsel %vm986_vm5, 1.0, %v3078_v46  ;;  %v3193_v34 = vld [vmem:[#allocation62_spill] sm:$0xff] }
 0x14b   : > { %3168 = vst [vmem:[#allocation66_spill] sm:$0xff] %v2500_v12  ;;  %v1053_v63 = vadd.f32 %v2352_v47, %v2256_v16  ;;  %v1067_v4 = vadd.f32 %v1051_v54, %v2424_v7  ;;  %v1081_v0 = vmul.f32 %v2487_v52, %v1065_v28  ;;  %v1223_v6 = vadd.f32 %v1079_v27, %v1078_v49  ;;  %v3171_v49 = vld [vmem:[#allocation25_spill] sm:$0xff]  ;;  %v3172_v27 = vld [vmem:[#allocation52_spill] sm:$0xff] }
 0x14c   : > { %vm995_vm14 = vcmp.lt.s32.totalorder %v2466_v3, 288  ;;  %vm996_vm15 = vcmp.lt.s32.totalorder %v2468_v59, 288  ;;  %vm997_vm0 = vcmp.lt.s32.totalorder %v2478_v23, 288  ;;  %v2511_v24 = vsel %vm987_vm6, 1.0, %v3078_v46  ;;  %v3177_v52 = vld [vmem:[#allocation49_spill] sm:$0xff]  ;;  %v3196_v23 = vld [vmem:[#allocation8_spill] sm:$0xff] }
 0x14d   : > { %3169 = vst [vmem:[#allocation67_spill] sm:$0xff] %v2511_v24  ;;  %v1054_v1 = vadd.f32 %v2371_v5, %v2275_v38  ;;  %v1068_v14 = vadd.f32 %v1052_v35, %v2428_v11  ;;  %v1082_v7 = vmul.f32 %v2500_v12, %v1066_v22  ;;  %v1224_v40 = vadd.f32 %v1223_v6, %v1080_v10  ;;  %v3174_v10 = vld [vmem:[#allocation18_spill] sm:$0xff]  ;;  %v3175_v6 = vld [vmem:[#allocation45_spill] sm:$0xff] }
 0x14e   : > { %v2519_v17 = vsel %vm988_vm7, 1.0, %v3078_v46  ;;  %v2523_v57 = vsel %vm989_vm8, 1.0, %v3078_v46  ;;  %v2527_v39 = vsel %vm990_vm9, 1.0, %v3078_v46  ;;  %v1042_v42 = vadd.f32 %v2391_v32, %v2295_v2  ;;  %v3176_v12 = vld [vmem:[#allocation22_spill] sm:$0xff]  ;;  %v3183_v5 = vld [vmem:[#allocation53_spill] sm:$0xff] }
 0x14f   : > { %3170 = vst [vmem:[#allocation68_spill] sm:$0xff] %v2523_v57  ;;  %v1055_v11 = vadd.f32 %v2380_v19, %v2284_v44  ;;  %v1069_v54 = vadd.f32 %v1053_v63, %v2432_v31  ;;  %v1083_v45 = vmul.f32 %v2511_v24, %v1067_v4  ;;  %v1225_v28 = vadd.f32 %v1224_v40, %v1081_v0  ;;  %v3178_v0 = vld [vmem:[#allocation28_spill] sm:$0xff]  ;;  %v3179_v40 = vld [vmem:[#allocation55_spill] sm:$0xff]  ;;  %v3184_v38 = vld [vmem:[#allocation30_spill] sm:$0xff] }
 0x150   : > { %v1043_v41 = vadd.f32 %v2402_v25, %v2306_v15  ;;  %v1044_v35 = vadd.f32 %v3172_v27, %v3171_v49  ;;  %v1045_v22 = vadd.f32 %v2397_v60, %v3173_v20  ;;  %v1056_v46 = vadd.f32 %v3175_v6, %v3174_v10  ;;  %v3180_v24 = vld [vmem:[#allocation32_spill] sm:$0xff]  ;;  %v3181_v44 = vld [vmem:[#allocation59_spill] sm:$0xff] }
 0x151   : > { %v1057_v19 = vadd.f32 %v3177_v52, %v3176_v12  ;;  %v1070_v31 = vadd.f32 %v1054_v1, %v2436_v51  ;;  %v1084_v63 = vmul.f32 %v2519_v17, %v1068_v14  ;;  %v1226_v4 = vadd.f32 %v1225_v28, %v1082_v7  ;;  %v3187_v51 = vld [vmem:[#allocation60_spill] sm:$0xff] }
 0x152   : > { %v1058_v25 = vadd.f32 %v3179_v40, %v3178_v0  ;;  %v1059_v27 = vadd.f32 %v3181_v44, %v3180_v24  ;;  %v1060_v60 = vadd.f32 %v3183_v5, %v3182_v43  ;;  %v1061_v6 = vadd.f32 %v3185_v9, %v3184_v38 }
 0x153   : > { %v3186_v10 = vmov 0.0   ;;  %v1071_v1 = vadd.f32 %v1055_v11, %v3187_v51  ;;  %v1085_v14 = vmul.f32 %v2523_v57, %v1069_v54  ;;  %v1227_v7 = vadd.f32 %v1226_v4, %v1083_v45  ;;  %v3192_v54 = vld [vmem:[#allocation61_spill] sm:$0xff] }
 0x154   : > { %v2558_v52 = vsel %vm991_vm10, 1.0, %v3186_v10  ;;  %v2565_v28 = vsel %vm992_vm11, 1.0, %v3186_v10  ;;  %v2570_v5 = vsel %vm993_vm12, 1.0, %v3186_v10  ;;  %v2575_v30 = vsel %vm994_vm13, 1.0, %v3186_v10 }
 0x155   : > { %3188 = vst [vmem:[#allocation60_spill] sm:$0xff] %v2565_v28  ;;  %3189 = vst [vmem:[#allocation69_spill] sm:$0xff] %v2570_v5  ;;  %v2580_v11 = vsel %vm995_vm14, 1.0, %v3186_v10  ;;  %v1072_v45 = vadd.f32 %v1056_v46, %v3192_v54  ;;  %v1073_v4 = vadd.f32 %v1057_v19, %v3193_v34  ;;  %v1086_v51 = vmul.f32 %v2527_v39, %v1070_v31  ;;  %v3201_v54 = vld [vmem:[#allocation16_spill] sm:$0xff] }
 0x156   : > { %3190 = vst [vmem:[#allocation70_spill] sm:$0xff] %v2575_v30  ;;  %3191 = vst [vmem:[#allocation71_spill] sm:$0xff] %v2580_v11  ;;  %v1228_v9 = vadd.f32 %v1227_v7, %v1084_v63  ;;  %v1074_v29 = vadd.f32 %v1058_v25, %v1042_v42  ;;  %v1075_v38 = vadd.f32 %v1059_v27, %v1043_v41  ;;  %v2588_v21 = vsel %vm996_vm15, 1.0, %v3186_v10  ;;  %v3200_v7 = vld [vmem:[#allocation14_spill] sm:$0xff] }
 0x157   : > { %v1076_v43 = vadd.f32 %v1060_v60, %v1044_v35  ;;  %v1077_v57 = vadd.f32 %v1061_v6, %v1045_v22  ;;  %3194 = vst [vmem:[#allocation61_spill] sm:$0xff] %v2588_v21  ;;  %v2593_v3 = vsel %vm997_vm0, 1.0, %v3186_v10  ;;  %v1087_v46 = vmul.f32 %v2558_v52, %v1071_v1  ;;  %v3197_v10 = vld [vmem:[#allocation11_spill] sm:$0xff]  ;;  %v3198_v6 = vld [vmem:[#allocation6_spill] sm:$0xff] }
 0x158   : > { %3195 = vst [vmem:[#allocation62_spill] sm:$0xff] %v2593_v3  ;;  %v1229_v19 = vadd.f32 %v1228_v9, %v1085_v14  ;;  %v1088_v31 = vmul.f32 %v2565_v28, %v1072_v45  ;;  %v1089_v25 = vmul.f32 %v2570_v5, %v1073_v4  ;;  %v1090_v60 = vmul.f32 %v2575_v30, %v1074_v29  ;;  %v3199_v1 = vld [vmem:[#allocation10_spill] sm:$0xff]  ;;  %v3203_v4 = vld [vmem:[#allocation15_spill] sm:$0xff] }
 0x159   : > { %v1091_v41 = vmul.f32 %v2580_v11, %v1075_v38  ;;  %v1092_v59 = vmul.f32 %v2588_v21, %v1076_v43  ;;  %v1093_v27 = vmul.f32 %v2593_v3, %v1077_v57  ;;  %v1094_v22 = vmul.f32 %v3196_v23, %v3196_v23  ;;  %v3202_v57 = vld [vmem:[#allocation13_spill] sm:$0xff]  ;;  %v3204_v29 = vld [vmem:[#allocation19_spill] sm:$0xff]  ;;  %v3214_v3 = vld [vmem:[#allocation40_spill] sm:$0xff] }
 0x15a   : > { %v1230_v42 = vadd.f32 %v1229_v19, %v1086_v51  ;;  %v1095_v9 = vmul.f32 %v3197_v10, %v3197_v10  ;;  %v1096_v63 = vmul.f32 %v3198_v6, %v3198_v6  ;;  %v1097_v14 = vmul.f32 %v3199_v1, %v3199_v1  ;;  %v3205_v19 = vld [vmem:[#allocation23_spill] sm:$0xff]  ;;  %v3206_v23 = vld [vmem:[#allocation17_spill] sm:$0xff]  ;;  %v3217_v28 = vld [vmem:[#allocation42_spill] sm:$0xff] }
 0x15b   : > { %v1098_v38 = vmul.f32 %v3200_v7, %v3200_v7  ;;  %v1099_v43 = vmul.f32 %v3201_v54, %v3201_v54  ;;  %v2616_v45 = vmul.f32 %v3202_v57, %v3202_v57  ;;  %v2620_v51 = vmul.f32 %v3203_v4, %v3203_v4  ;;  %v3207_v6 = vld [vmem:[#allocation21_spill] sm:$0xff]  ;;  %v3209_v57 = vld [vmem:[#allocation34_spill] sm:$0xff]  ;;  %v3215_v21 = vld [vmem:[#allocation43_spill] sm:$0xff] }
 0x15c   : > { %v1231_v35 = vadd.f32 %v1230_v42, %v1087_v46  ;;  %v2624_v46 = vmul.f32 %v3204_v29, %v3204_v29  ;;  %v2628_v42 = vmul.f32 %v3205_v19, %v3205_v19  ;;  %v2632_v10 = vmul.f32 %v3206_v23, %v3206_v23  ;;  %v3210_v29 = vld [vmem:[#allocation37_spill] sm:$0xff] }
 0x15d   : > { %v2636_v1 = vmul.f32 %v3207_v6, %v3207_v6  ;;  %v2648_v54 = vmul.f32 %v3171_v49, %v3171_v49  ;;  %v1110_v4 = vmul.f32 %v3209_v57, %v3209_v57  ;;  %v1111_v19 = vmul.f32 %v3210_v29, %v3210_v29  ;;  %v3212_v57 = vld [vmem:[#allocation33_spill] sm:$0xff] }
 0x15e   : > { %v1232_v34 = vadd.f32 %v1231_v35, %v1088_v31  ;;  %v2640_v31 = vmul.f32 %v2295_v2, %v2295_v2  ;;  %v2644_v35 = vmul.f32 %v2306_v15, %v2306_v15  ;;  %v1142_v23 = vmul.f32 %v2227_v53, %v2227_v53  ;;  %v3213_v2 = vld [vmem:[#allocation36_spill] sm:$0xff] }
 0x15f   : > { %3208 = vst [vmem:[#allocation72_spill] sm:$0xff] %v2648_v54  ;;  %v1143_v6 = vmul.f32 %v2236_v58, %v2236_v58  ;;  %v1158_v15 = vmul.f32 %v2323_v50, %v2323_v50  ;;  %v1112_v29 = vmul.f32 %v3212_v57, %v3212_v57  ;;  %v1113_v53 = vmul.f32 %v3213_v2, %v3213_v2  ;;  %v3218_v54 = vld [vmem:[#allocation46_spill] sm:$0xff] }
 0x160   : > { %v1233_v7 = vadd.f32 %v1232_v34, %v1089_v25  ;;  %v1159_v25 = vmul.f32 %v2332_v61, %v2332_v61  ;;  %v2664_v34 = vmul.f32 %v3173_v20, %v3173_v20  ;;  %v1114_v58 = vmul.f32 %v3214_v3, %v3214_v3 }
 0x161   : > { %v1115_v50 = vmul.f32 %v3215_v21, %v3215_v21  ;;  %v1144_v61 = vmul.f32 %v2221_v48, %v2221_v48  ;;  %v1126_v57 = vadd.f32 %v1110_v4, %v1094_v22  ;;  %v1127_v30 = vadd.f32 %v1111_v19, %v1095_v9 }
 0x162   : > { %v1234_v49 = vadd.f32 %v1233_v7, %v1090_v60  ;;  %3211 = vst [vmem:[#allocation73_spill] sm:$0xff] %v2664_v34  ;;  %v1160_v60 = vmul.f32 %v2317_v37, %v2317_v37  ;;  %v3216_v7 = vld [vmem:[#allocation39_spill] sm:$0xff]  ;;  %v1145_v2 = vmul.f32 %v2232_v56, %v2232_v56  ;;  %v1161_v3 = vmul.f32 %v2328_v55, %v2328_v55 }
 0x163   : > { %v1116_v11 = vmul.f32 %v3216_v7, %v3216_v7  ;;  %v1174_v5 = vadd.f32 %v1158_v15, %v1142_v23  ;;  %v1175_v21 = vadd.f32 %v1159_v25, %v1143_v6  ;;  %v1117_v48 = vmul.f32 %v3217_v28, %v3217_v28 }
 0x164   : > { %v1235_v20 = vadd.f32 %v1234_v49, %v1091_v41  ;;  %v1118_v41 = vmul.f32 %v3218_v54, %v3218_v54  ;;  %v3219_v49 = vld [vmem:[#allocation50_spill] sm:$0xff]  ;;  %v1128_v22 = vadd.f32 %v1112_v29, %v1096_v63  ;;  %v1146_v9 = vmul.f32 %v2251_v13, %v2251_v13 }
 0x165   : > { %v2690_v7 = vmul.f32 %v3219_v49, %v3219_v49  ;;  %v1162_v4 = vmul.f32 %v2347_v36, %v2347_v36  ;;  %v1176_v15 = vadd.f32 %v1160_v60, %v1144_v61  ;;  %v1129_v28 = vadd.f32 %v1113_v53, %v1097_v14  ;;  %v3221_v49 = vld [vmem:[#allocation48_spill] sm:$0xff] }
 0x166   : > { %v1236_v34 = vadd.f32 %v1235_v20, %v1092_v59  ;;  %v3220_v59 = vld [vmem:[#allocation44_spill] sm:$0xff]  ;;  %v1147_v54 = vmul.f32 %v2260_v18, %v2260_v18  ;;  %v1163_v6 = vmul.f32 %v2356_v62, %v2356_v62  ;;  %v1177_v63 = vadd.f32 %v1161_v3, %v1145_v2 }
 0x167   : > { %v2698_v23 = vmul.f32 %v3220_v59, %v3220_v59  ;;  %v1190_v25 = vadd.f32 %v1174_v5, %v1126_v57  ;;  %v1191_v29 = vadd.f32 %v1175_v21, %v1127_v30  ;;  %v2706_v36 = vmul.f32 %v3221_v49, %v3221_v49 }
 0x168   : > { %v1237_v19 = vadd.f32 %v1236_v34, %v1093_v27  ;;  %v2710_v61 = vmul.f32 %v2391_v32, %v2391_v32  ;;  %v1130_v27 = vadd.f32 %v1114_v58, %v1098_v38  ;;  %v1148_v53 = vmul.f32 %v2245_v8, %v2245_v8  ;;  %v3222_v38 = vld [vmem:[#allocation63_spill] sm:$0xff] }
 0x169   : > { %v1164_v14 = vmul.f32 %v2341_v26, %v2341_v26  ;;  %v1178_v34 = vadd.f32 %v1162_v4, %v1146_v9  ;;  %v1192_v60 = vadd.f32 %v1176_v15, %v1128_v22  ;;  %v1131_v30 = vadd.f32 %v1115_v50, %v1099_v43  ;;  %v3223_v22 = vld [vmem:[#allocation20_spill] sm:$0xff]  ;;  %v3224_v43 = vld [vmem:[#allocation47_spill] sm:$0xff] }
 0x16a   : > { %v1238_v20 = vrot.slane %v1237_v19, 4  ;;  %v1149_v57 = vmul.f32 %v2256_v16, %v2256_v16  ;;  %v1165_v2 = vmul.f32 %v2352_v47, %v2352_v47  ;;  %v1179_v3 = vadd.f32 %v1163_v6, %v1147_v54  ;;  %v3226_v6 = vld [vmem:[#allocation24_spill] sm:$0xff] }
 0x16b   : > { %v1193_v21 = vadd.f32 %v1177_v63, %v1129_v28  ;;  %v1206_v58 = vmul.f32 %v2471_v33, %v1190_v25  ;;  %v1207_v59 = vmul.f32 %v3222_v38, %v1191_v29  ;;  %v1132_v32 = vadd.f32 %v1116_v11, %v2616_v45  ;;  %v3225_v28 = vld [vmem:[#allocation64_spill] sm:$0xff]  ;;  %v3228_v25 = vld [vmem:[#allocation65_spill] sm:$0xff] }
 0x16c   : > { %v1239_v5 = vadd.f32 %v1238_v20, %v1237_v19  ;;  %v1133_v9 = vadd.f32 %v1117_v48, %v2620_v51  ;;  %v1150_v50 = vmul.f32 %v3223_v22, %v3223_v22  ;;  %v1166_v4 = vmul.f32 %v3224_v43, %v3224_v43  ;;  %v3227_v48 = vld [vmem:[#allocation51_spill] sm:$0xff] }
 0x16d   : > { %v1180_v15 = vadd.f32 %v1164_v14, %v1148_v53  ;;  %v1194_v19 = vadd.f32 %v1178_v34, %v1130_v27  ;;  %v1208_v33 = vmul.f32 %v3225_v28, %v1192_v60  ;;  %v1151_v11 = vmul.f32 %v3226_v6, %v3226_v6  ;;  %v3229_v14 = vld [vmem:[#allocation18_spill] sm:$0xff]  ;;  %v3230_v60 = vld [vmem:[#allocation45_spill] sm:$0xff]  ;;  %v3233_v6 = vld [vmem:[#allocation67_spill] sm:$0xff] }
 0x16e   : > { %v1240_v49 = vrot.slane %v1239_v5, 2  ;;  %v1167_v45 = vmul.f32 %v3227_v48, %v3227_v48  ;;  %v1181_v51 = vadd.f32 %v1165_v2, %v1149_v57  ;;  %v1195_v63 = vadd.f32 %v1179_v3, %v1131_v30  ;;  %v3231_v2 = vld [vmem:[#allocation66_spill] sm:$0xff] }
 0x16f   : > { %v1209_v29 = vmul.f32 %v3228_v25, %v1193_v21  ;;  %v1247_v20 = vadd.f32 %v1207_v59, %v1206_v58  ;;  %v1134_v53 = vadd.f32 %v1118_v41, %v2624_v46  ;;  %v1152_v34 = vmul.f32 %v3229_v14, %v3229_v14  ;;  %v1222_v46 = vld [vmem:[#allocation2] sm:$0x1] }
 0x170   : > { %v1241_v54 = vadd.f32 %v1240_v49, %v1239_v5  ;;  %v1168_v5 = vmul.f32 %v3230_v60, %v3230_v60  ;;  %v2053_v30 = vmov 0   ;;  %v1182_v41 = vadd.f32 %v1166_v4, %v1150_v50  ;;  %v3232_v49 = vld [vmem:[#allocation49_spill] sm:$0xff] }
 0x171   : > { %1270 = vst [vmem:[%s2130_s9] sm:$0xf] %v2053_v30  ;;  %1271 = vst [vmem:[%s2130_s9 + $0x4] sm:$0xf] %v2053_v30  ;;  %v1196_v57 = vadd.f32 %v1180_v15, %v1132_v32  ;;  %v1210_v3 = vmul.f32 %v3231_v2, %v1194_v19  ;;  %v1248_v21 = vadd.f32 %v1247_v20, %v1208_v33  ;;  %v3237_v20 = vld [vmem:[#allocation26_spill] sm:$0xff] }
 0x172   : > { %v1242_v27 = vrot.slane %v1241_v54, 1  ;;  %1272 = vst [vmem:[%s2130_s9 + $0x8] sm:$0xf] %v2053_v30  ;;  %1273 = vst [vmem:[%s2130_s9 + $0xc] sm:$0xf] %v2053_v30  ;;  %v1135_v38 = vadd.f32 %v2690_v7, %v2628_v42  ;;  %v1153_v59 = vmul.f32 %v3176_v12, %v3176_v12  ;;  %v1169_v22 = vmul.f32 %v3232_v49, %v3232_v49 }
 0x173   : > { %1274 = vst [vmem:[%s2130_s9 + $0x10] sm:$0xf] %v2053_v30  ;;  %1275 = vst [vmem:[%s2130_s9 + $0x14] sm:$0xf] %v2053_v30  ;;  %v1183_v43 = vadd.f32 %v1167_v45, %v1151_v11  ;;  %v1197_v28 = vadd.f32 %v1181_v51, %v1133_v9  ;;  %v1211_v48 = vmul.f32 %v3233_v6, %v1195_v63  ;;  %v3234_v9 = vld [vmem:[#allocation58_spill] sm:$0xff]  ;;  %v3235_v11 = vld [vmem:[#allocation68_spill] sm:$0xff] }
 0x174   : > { %1276 = vst [vmem:[%s2130_s9 + $0x18] sm:$0xf] %v2053_v30  ;;  %1277 = vst [vmem:[%s2130_s9 + $0x1c] sm:$0xf] %v2053_v30  ;;  %v1243_v58 = vadd.f32 %v1242_v27, %v1241_v54  ;;  %v1249_v25 = vadd.f32 %v1248_v21, %v1209_v29  ;;  %v1136_v32 = vadd.f32 %v2698_v23, %v2632_v10  ;;  %v3242_v21 = vld [vmem:[#allocation72_spill] sm:$0xff] }
 0x175   : > { %1278 = vst [vmem:[%s2130_s9 + $0x20] sm:$0xf] %v2053_v30  ;;  %1279 = vst [vmem:[%s2130_s9 + $0x24] sm:$0xf] %v2053_v30  ;;  %v1154_v4 = vmul.f32 %v3178_v0, %v3178_v0  ;;  %v1170_v42 = vmul.f32 %v3179_v40, %v3179_v40  ;;  %v1184_v7 = vadd.f32 %v1168_v5, %v1152_v34  ;;  %v3239_v34 = vld [vmem:[#allocation56_spill] sm:$0xff] }
 0x176   : > { %1280 = vst [vmem:[%s2130_s9 + $0x28] sm:$0xf] %v2053_v30  ;;  %1281 = vst [vmem:[%s2130_s9 + $0x2c] sm:$0xf] %v2053_v30  ;;  %v1244_v50 = vadd.f32 %v1243_v58, %v1222_v46  ;;  %v1198_v12 = vadd.f32 %v1182_v41, %v1134_v53  ;;  %v1212_v15 = vmul.f32 %v2519_v17, %v1196_v57  ;;  %v3236_v17 = vld [vmem:[#allocation52_spill] sm:$0xff] }
 0x177   : > { %1282 = vst [vmem:[%s2130_s9 + $0x30] sm:$0xf] %v2053_v30  ;;  %1283 = vst [vmem:[%s2130_s9 + $0x34] sm:$0xf] %v2053_v30  ;;  %v1250_v19 = vadd.f32 %v1249_v25, %v1210_v3  ;;  %v1123_v33 = vmul.f32 %v3234_v9, %v3234_v9  ;;  %v1137_v54 = vadd.f32 %v2706_v36, %v2636_v1  ;;  %v3238_v1 = vld [vmem:[#allocation53_spill] sm:$0xff] }
 0x178   : > { %1284 = vst [vmem:[%s2130_s9 + $0x38] sm:$0xf] %v2053_v30  ;;  %1285 = vst [vmem:[%s2130_s9 + $0x3c] sm:$0xf] %v2053_v30  ;;  %v1155_v10 = vmul.f32 %v3180_v24, %v3180_v24  ;;  %v1171_v0 = vmul.f32 %v3181_v44, %v3181_v44  ;;  %v1185_v23 = vadd.f32 %v1169_v22, %v1153_v59  ;;  %v3240_v30 = vld [vmem:[#allocation30_spill] sm:$0xff]  ;;  %v3243_v59 = vld [vmem:[#allocation60_spill] sm:$0xff] }
 0x179   : > { %1245 = vst [vmem:[#allocation2] sm:$0x1] %v1244_v50  ;;  %v1199_v40 = vadd.f32 %v1183_v43, %v1135_v38  ;;  %v1213_v45 = vmul.f32 %v3235_v11, %v1197_v28  ;;  %v1251_v51 = vadd.f32 %v1250_v19, %v1211_v48  ;;  %v1124_v63 = vmul.f32 %v3236_v17, %v3236_v17  ;;  %v3244_v43 = vld [vmem:[#allocation73_spill] sm:$0xff] }
 0x17a   : > { %v1138_v29 = vadd.f32 %v2710_v61, %v2640_v31  ;;  %v1156_v36 = vmul.f32 %v3237_v20, %v3237_v20  ;;  %v1172_v24 = vmul.f32 %v3238_v1, %v3238_v1  ;;  %v1186_v27 = vadd.f32 %v1170_v42, %v1154_v4  ;;  %v3241_v31 = vld [vmem:[#allocation57_spill] sm:$0xff]  ;;  %v3246_v4 = vld [vmem:[#allocation70_spill] sm:$0xff] }
 0x17b   : > { %v1200_v53 = vadd.f32 %v1184_v7, %v1136_v32  ;;  %v1214_v44 = vmul.f32 %v2527_v39, %v1198_v12  ;;  %v1252_v14 = vadd.f32 %v1251_v51, %v1212_v15  ;;  %v1125_v60 = vmul.f32 %v3239_v34, %v3239_v34  ;;  %v3245_v48 = vld [vmem:[#allocation69_spill] sm:$0xff]  ;;  %v3247_v12 = vld [vmem:[#allocation71_spill] sm:$0xff] }
 0x17c   : > { %v1139_v5 = vadd.f32 %v1123_v33, %v2644_v35  ;;  %v1157_v46 = vmul.f32 %v3240_v30, %v3240_v30  ;;  %v1173_v61 = vmul.f32 %v3241_v31, %v3241_v31  ;;  %v1187_v41 = vadd.f32 %v1171_v0, %v1155_v10  ;;  %v3248_v9 = vld [vmem:[#allocation61_spill] sm:$0xff]  ;;  %v3249_v10 = vld [vmem:[#allocation62_spill] sm:$0xff] }
 0x17d   : > { %v1201_v57 = vadd.f32 %v1185_v23, %v1137_v54  ;;  %v1215_v2 = vmul.f32 %v2558_v52, %v1199_v40  ;;  %v1253_v3 = vadd.f32 %v1252_v14, %v1213_v45  ;;  %v1140_v58 = vadd.f32 %v1124_v63, %v3242_v21  ;;  %v1246_v20 = vld [vmem:[#allocation3] sm:$0x1] }
 0x17e   : > { %v1188_v39 = vadd.f32 %v1172_v24, %v1156_v36  ;;  %v1202_v38 = vadd.f32 %v1186_v27, %v1138_v29  ;;  %v1216_v49 = vmul.f32 %v3243_v59, %v1200_v53  ;;  %v1141_v35 = vadd.f32 %v1125_v60, %v3244_v43 }
 0x17f   : > { %v1254_v22 = vadd.f32 %v1253_v3, %v1214_v44  ;;  %v1189_v28 = vadd.f32 %v1173_v61, %v1157_v46  ;;  %v1203_v6 = vadd.f32 %v1187_v41, %v1139_v5  ;;  %v1217_v25 = vmul.f32 %v3245_v48, %v1201_v57 }
 0x180   : > { %v1204_v32 = vadd.f32 %v1188_v39, %v1140_v58  ;;  %v1218_v42 = vmul.f32 %v3246_v4, %v1202_v38 }
 0x181   : > { %v1255_v50 = vadd.f32 %v1254_v22, %v1215_v2  ;;  %v1205_v52 = vadd.f32 %v1189_v28, %v1141_v35  ;;  %v1219_v15 = vmul.f32 %v3247_v12, %v1203_v6 }
 0x182   : > { %v1220_v33 = vmul.f32 %v3248_v9, %v1204_v32 }
 0x183   : > { %v1256_v7 = vadd.f32 %v1255_v50, %v1216_v49  ;;  %v1221_v0 = vmul.f32 %v3249_v10, %v1205_v52 }
 0x185   : > { %v1257_v19 = vadd.f32 %v1256_v7, %v1217_v25 }
 0x187   : > { %v1258_v54 = vadd.f32 %v1257_v19, %v1218_v42 }
 0x189   : > { %v1259_v23 = vadd.f32 %v1258_v54, %v1219_v15 }
 0x18b   : > { %v1260_v40 = vadd.f32 %v1259_v23, %v1220_v33 }
 0x18d   : > { %v1261_v11 = vadd.f32 %v1260_v40, %v1221_v0 }
 0x18f   : > { %v1262_v45 = vrot.slane %v1261_v11, 4 }
 0x191   : > { %v1263_v51 = vadd.f32 %v1262_v45, %v1261_v11 }
 0x193   : > { %v1264_v17 = vrot.slane %v1263_v51, 2 }
 0x195   : > { %v1265_v63 = vadd.f32 %v1264_v17, %v1263_v51 }
 0x197   : > { %v1266_v29 = vrot.slane %v1265_v63, 1 }
 0x199   : > { %v1267_v36 = vadd.f32 %v1266_v29, %v1265_v63 }
 0x19b   : > { %v1268_v1 = vadd.f32 %v1267_v36, %v1246_v20 }
 0x19d   : > { %1269 = vst [vmem:[#allocation3] sm:$0x1] %v1268_v1 }
 0x19e PF: > { %p1286_p11 = scmp.eq.s32.totalorder %s2037_s19, 1 }
 0x1a0   : > { %p1287_p12 = pnand %p1286_p11, %p937_p8 }
 0x1a1   : > { %v1291_v24 = vld [vmem:[#allocation2] sm:$0x1] (!%p1287_p12) }
 0x1a2   : > { %1290 = sbr.rel (%p1287_p12) target bundleno = 445 (0x1bd), region = 52  ;;  %v1292_v53 = vmul.f32 (!%p1287_p12), 0.00086805556, %v1291_v24  ;;  %v1299_v5 = vld [vmem:[%s3036_s3] sm:$0x1] (!%p1287_p12) }
 0x1a3   : > { %v1302_v31 = vld [vmem:[%s3037_s4] sm:$0x1] (!%p1287_p12) }
 0x1a4   : > { %v1293_v27 = vld [vmem:[#allocation3] sm:$0x1] (!%p1287_p12)  ;;  %v1295_v14 = vmul.f32 (!%p1287_p12), %v1292_v53, %v1292_v53 }
 0x1a5   : > { %v1294_v44 = vmul.f32 (!%p1287_p12), 0.00086805556, %v1293_v27 }
 0x1a7   : > { %v1296_v34 = vsub.f32 (!%p1287_p12), %v1294_v44, %v1295_v14 }
 0x1a9   : > { %v1297_v60 = vadd.f32 1e-05, %v1296_v34 }
 0x1ab   : > { %2009 = vrsqrt.f32 %v1297_v60 }
 0x1b5   : > { %v2010_v30 = vpop.eup %2009 }
 0x1b6   : > { %v1300_v46 = vmul.f32 %v2010_v30, %v1299_v5 }
 0x1b8   : > { %1301 = vst [vmem:[#allocation4] sm:$0x1] %v1300_v46  ;;  %v1303_v61 = vmul.f32 %v1300_v46, %v1292_v53 }
 0x1ba   : > { %v1304_v41 = vsub.f32 %v1302_v31, %v1303_v61 }
 0x1bc   : > { %1305 = vst [vmem:[#allocation5] sm:$0x1] %v1304_v41 }
 0x1bd PF: > { %p1741_p13 = scmp.ne.s32.totalorder %s2037_s19, 1 }
 0x1be   : > { %v3250_v3 = vld [vmem:[#allocation8_spill] sm:$0xff] (!%p1741_p13)  ;;  %v3251_v58 = vld [vmem:[#allocation11_spill] sm:$0xff] (!%p1741_p13)  ;;  %v3252_v38 = vld [vmem:[#allocation34_spill] sm:$0xff] (!%p1741_p13) }
 0x1bf   : > { %1308 = sbr.rel (%p1741_p13) target bundleno = 501 (0x1f5), region = 56  ;;  %v2814_v57 = vld [vmem:[#allocation4] ss:$0 sm:$0xff] (!%p1741_p13)  ;;  %v3255_v28 = vld [vmem:[#allocation12_spill] sm:$0xff] (!%p1741_p13)  ;;  %v3256_v48 = vld [vmem:[#allocation35_spill] sm:$0xff] (!%p1741_p13) }
 0x1c0   : > { %v1317_v21 = vmul.f32 (!%p1741_p13), %v2814_v57, %v3250_v3  ;;  %v1318_v39 = vmul.f32 (!%p1741_p13), %v2814_v57, %v3251_v58  ;;  %v1355_v59 = vmul.f32 (!%p1741_p13), %v2814_v57, %v3252_v38  ;;  %v3253_v49 = vld [vmem:[#allocation37_spill] sm:$0xff] (!%p1741_p13)  ;;  %v1404_v6 = vmul.f32 (!%p1741_p13), %v2814_v57, %v3255_v28  ;;  %v3257_v50 = vld [vmem:[#allocation38_spill] sm:$0xff] (!%p1741_p13)  ;;  %v3261_v63 = vld [vmem:[#allocation36_spill] sm:$0xff] (!%p1741_p13) }
 0x1c1   : > { %v1356_v22 = vmul.f32 (!%p1741_p13), %v2814_v57, %v3253_v49  ;;  %v3254_v43 = vld [vmem:[#allocation9_spill] sm:$0xff] (!%p1741_p13)  ;;  %v1435_v25 = vmul.f32 (!%p1741_p13), %v2814_v57, %v3256_v48  ;;  %v1436_v32 = vmul.f32 (!%p1741_p13), %v2814_v57, %v3257_v50  ;;  %v3258_v10 = vld [vmem:[#allocation6_spill] sm:$0xff] (!%p1741_p13)  ;;  %v1358_v29 = vmul.f32 (!%p1741_p13), %v2814_v57, %v3261_v63  ;;  %v3262_v1 = vld [vmem:[#allocation7_spill] sm:$0xff] (!%p1741_p13) }
 0x1c2   : > { %v1403_v35 = vmul.f32 (!%p1741_p13), %v2814_v57, %v3254_v43  ;;  %v1319_v0 = vmul.f32 (!%p1741_p13), %v2814_v57, %v3258_v10  ;;  %v3259_v23 = vld [vmem:[#allocation10_spill] sm:$0xff] (!%p1741_p13)  ;;  %v3260_v51 = vld [vmem:[#allocation33_spill] sm:$0xff] (!%p1741_p13)  ;;  %v1405_v24 = vmul.f32 (!%p1741_p13), %v2814_v57, %v3262_v1  ;;  %v1406_v27 = vmul.f32 (!%p1741_p13), %v2814_v57, %v2232_v56 }
 0x1c3   : > { %v2816_v2 = vld [vmem:[#allocation5] ss:$0 sm:$0xff] (!%p1741_p13)  ;;  %v1320_v40 = vmul.f32 (!%p1741_p13), %v2814_v57, %v3259_v23  ;;  %v1357_v17 = vmul.f32 (!%p1741_p13), %v2814_v57, %v3260_v51  ;;  %v1437_v30 = vmul.f32 (!%p1741_p13), %v2814_v57, %v2317_v37  ;;  %v1438_v46 = vmul.f32 (!%p1741_p13), %v2814_v57, %v2328_v55  ;;  %v3263_v41 = vld [vmem:[#allocation14_spill] sm:$0xff] (!%p1741_p13)  ;;  %v3266_v55 = vld [vmem:[#allocation43_spill] sm:$0xff] (!%p1741_p13) }
 0x1c4   : > { %v1339_v4 = vadd.f32 (!%p1741_p13), %v2816_v2, %v1317_v21  ;;  %v1340_v42 = vadd.f32 (!%p1741_p13), %v2816_v2, %v1318_v39  ;;  %v1371_v7 = vadd.f32 (!%p1741_p13), %v2816_v2, %v1355_v59  ;;  %v1372_v52 = vadd.f32 (!%p1741_p13), %v2816_v2, %v1356_v22  ;;  %v3264_v39 = vld [vmem:[#allocation16_spill] sm:$0xff] (!%p1741_p13) }
 0x1c5   : > { %v1419_v12 = vadd.f32 (!%p1741_p13), %v2816_v2, %v1403_v35  ;;  %v1420_v15 = vadd.f32 (!%p1741_p13), %v2816_v2, %v1404_v6  ;;  %v1451_v19 = vadd.f32 (!%p1741_p13), %v2816_v2, %v1435_v25  ;;  %v1452_v9 = vadd.f32 (!%p1741_p13), %v2816_v2, %v1436_v32  ;;  %v3265_v59 = vld [vmem:[#allocation40_spill] sm:$0xff] (!%p1741_p13) }
 0x1c6   : > { %v1387_v33 = vmax.f32 %v1339_v4, %v1371_v7  ;;  %v1388_v54 = vmax.f32 %v1340_v42, %v1372_v52  ;;  %v1341_v20 = vadd.f32 %v2816_v2, %v1319_v0  ;;  %v1342_v36 = vadd.f32 %v2816_v2, %v1320_v40  ;;  %v3267_v42 = vld [vmem:[#allocation41_spill] sm:$0xff]  ;;  %v3270_v40 = vld [vmem:[#allocation39_spill] sm:$0xff] }
 0x1c7   : > { %v1467_v11 = vmax.f32 %v1419_v12, %v1451_v19  ;;  %v1468_v45 = vmax.f32 %v1420_v15, %v1452_v9  ;;  %v1373_v14 = vadd.f32 %v2816_v2, %v1357_v17  ;;  %v1374_v34 = vadd.f32 %v2816_v2, %v1358_v29  ;;  %v3268_v9 = vld [vmem:[#allocation13_spill] sm:$0xff] }
 0x1c8   : > { %v1421_v60 = vadd.f32 %v2816_v2, %v1405_v24  ;;  %v1422_v5 = vadd.f32 %v2816_v2, %v1406_v27  ;;  %v1321_v3 = vmul.f32 %v2814_v57, %v3263_v41  ;;  %v1453_v21 = vadd.f32 %v2816_v2, %v1437_v30  ;;  %v3274_v41 = vld [vmem:[#allocation46_spill] sm:$0xff] }
 0x1c9   : > { %v1483_v53 = vmax.f32 %v1387_v33, %v1467_v11  ;;  %v1484_v44 = vmax.f32 %v1388_v54, %v1468_v45  ;;  %v1389_v61 = vmax.f32 %v1341_v20, %v1373_v14  ;;  %v1390_v56 = vmax.f32 %v1342_v36, %v1374_v34  ;;  %v3269_v54 = vld [vmem:[#allocation15_spill] sm:$0xff]  ;;  %v3271_v45 = vld [vmem:[#allocation42_spill] sm:$0xff] }
 0x1ca   : > { %v1454_v58 = vadd.f32 %v2816_v2, %v1438_v46  ;;  %v1322_v38 = vmul.f32 %v2814_v57, %v3264_v39  ;;  %v1359_v49 = vmul.f32 %v2814_v57, %v3265_v59  ;;  %v1343_v37 = vadd.f32 %v2816_v2, %v1321_v3  ;;  %v3275_v3 = vld [vmem:[#allocation50_spill] sm:$0xff] }
 0x1cb   : > { %v1782_v31 = vpack.c.bf16 %v1484_v44, %v1483_v53  ;;  %v1360_v22 = vmul.f32 %v2814_v57, %v3266_v55  ;;  %v1407_v43 = vmul.f32 %v2814_v57, %v2251_v13  ;;  %v1408_v35 = vmul.f32 %v2814_v57, %v2260_v18 }
 0x1cc   : > { %v1469_v28 = vmax.f32 %v1421_v60, %v1453_v21  ;;  %v1470_v6 = vmax.f32 %v1422_v5, %v1454_v58  ;;  %v1344_v48 = vadd.f32 %v2816_v2, %v1322_v38  ;;  %v1375_v25 = vadd.f32 %v2816_v2, %v1359_v49  ;;  %v3276_v58 = vld [vmem:[#allocation20_spill] sm:$0xff] }
 0x1cd   : > { %1783 = vst [vmem:[%s2130_s9] sm:$0xff] %v1782_v31   ;;  %v1376_v50 = vadd.f32 %v2816_v2, %v1360_v22  ;;  %v1423_v32 = vadd.f32 %v2816_v2, %v1407_v43  ;;  %v1424_v4 = vadd.f32 %v2816_v2, %v1408_v35  ;;  %v1439_v7 = vmul.f32 %v2814_v57, %v3267_v42  ;;  %v3277_v43 = vld [vmem:[#allocation24_spill] sm:$0xff] }
 0x1ce   : > { %v1485_v52 = vmax.f32 %v1389_v61, %v1469_v28  ;;  %v1486_v13 = vmax.f32 %v1390_v56, %v1470_v6  ;;  %v1391_v12 = vmax.f32 %v1343_v37, %v1375_v25  ;;  %v1440_v18 = vmul.f32 %v2814_v57, %v2356_v62  ;;  %v3273_v61 = vld [vmem:[#allocation23_spill] sm:$0xff] }
 0x1cf   : > { %v1392_v15 = vmax.f32 %v1344_v48, %v1376_v50  ;;  %v1455_v19 = vadd.f32 %v2816_v2, %v1439_v7  ;;  %v1323_v33 = vmul.f32 %v2814_v57, %v3268_v9  ;;  %v1324_v10 = vmul.f32 %v2814_v57, %v3269_v54  ;;  %v3278_v25 = vld [vmem:[#allocation47_spill] sm:$0xff]  ;;  %v3281_v9 = vld [vmem:[#allocation21_spill] sm:$0xff] }
 0x1d0   : > { %v1787_v0 = vpack.c.bf16 %v1486_v13, %v1485_v52  ;;  %v1456_v23 = vadd.f32 %v2816_v2, %v1440_v18  ;;  %v1361_v11 = vmul.f32 %v2814_v57, %v3270_v40  ;;  %v1362_v51 = vmul.f32 %v2814_v57, %v3271_v45  ;;  %v3280_v13 = vld [vmem:[#allocation17_spill] sm:$0xff] }
 0x1d1   : > { %v1471_v17 = vmax.f32 %v1423_v32, %v1455_v19  ;;  %v1345_v62 = vadd.f32 %v2816_v2, %v1323_v33  ;;  %v1346_v63 = vadd.f32 %v2816_v2, %v1324_v10  ;;  %v1409_v29 = vmul.f32 %v2814_v57, %v2245_v8  ;;  %v3279_v32 = vld [vmem:[#allocation51_spill] sm:$0xff]  ;;  %v3282_v10 = vld [vmem:[#allocation44_spill] sm:$0xff] }
 0x1d2   : > { %1819 = vst [vmem:[%s2130_s9 + $0x8] sm:$0xff] %v1787_v0   ;;  %v1472_v20 = vmax.f32 %v1424_v4, %v1456_v23  ;;  %v1377_v36 = vadd.f32 %v2816_v2, %v1361_v11  ;;  %v1378_v1 = vadd.f32 %v2816_v2, %v1362_v51  ;;  %v1410_v24 = vmul.f32 %v2814_v57, %v2256_v16  ;;  %v3272_v16 = vld [vmem:[#allocation19_spill] sm:$0xff]  ;;  %v3283_v23 = vld [vmem:[#allocation48_spill] sm:$0xff]  ;;  %v3284_v11 = vld [vmem:[#allocation18_spill] sm:$0xff] }
 0x1d3   : > { %v1487_v27 = vmax.f32 %v1391_v12, %v1471_v17  ;;  %v1425_v53 = vadd.f32 %v2816_v2, %v1409_v29  ;;  %v1441_v44 = vmul.f32 %v2814_v57, %v2341_v26  ;;  %v1442_v14 = vmul.f32 %v2814_v57, %v2352_v47 }
 0x1d4   : > { %v1488_v34 = vmax.f32 %v1392_v15, %v1472_v20  ;;  %v1393_v8 = vmax.f32 %v1345_v62, %v1377_v36  ;;  %v1394_v60 = vmax.f32 %v1346_v63, %v1378_v1  ;;  %v1426_v5 = vadd.f32 %v2816_v2, %v1410_v24  ;;  %v3285_v63 = vld [vmem:[#allocation22_spill] sm:$0xff]  ;;  %v3286_v24 = vld [vmem:[#allocation45_spill] sm:$0xff] }
 0x1d5   : > { %v1457_v30 = vadd.f32 %v2816_v2, %v1441_v44  ;;  %v1458_v46 = vadd.f32 %v2816_v2, %v1442_v14  ;;  %v1325_v31 = vmul.f32 %v2814_v57, %v3272_v16  ;;  %v1326_v56 = vmul.f32 %v2814_v57, %v3273_v61 }
 0x1d6   : > { %v1792_v26 = vpack.c.bf16 %v1488_v34, %v1487_v27  ;;  %v1363_v47 = vmul.f32 %v2814_v57, %v3274_v41  ;;  %v1364_v21 = vmul.f32 %v2814_v57, %v3275_v3  ;;  %v1411_v39 = vmul.f32 %v2814_v57, %v3276_v58  ;;  %v3287_v34 = vld [vmem:[#allocation49_spill] sm:$0xff]  ;;  %v3290_v41 = vld [vmem:[#allocation54_spill] sm:$0xff] }
 0x1d7   : > { %v1473_v38 = vmax.f32 %v1425_v53, %v1457_v30  ;;  %v1474_v59 = vmax.f32 %v1426_v5, %v1458_v46  ;;  %v1347_v49 = vadd.f32 %v2816_v2, %v1325_v31  ;;  %v1348_v37 = vadd.f32 %v2816_v2, %v1326_v56  ;;  %v3288_v46 = vld [vmem:[#allocation27_spill] sm:$0xff]  ;;  %v3291_v58 = vld [vmem:[#allocation58_spill] sm:$0xff] }
 0x1d8   : > { %1820 = vst [vmem:[%s2130_s9 + $0x10] sm:$0xff] %v1792_v26   ;;  %v1379_v55 = vadd.f32 %v2816_v2, %v1363_v47  ;;  %v1380_v22 = vadd.f32 %v2816_v2, %v1364_v21  ;;  %v1412_v35 = vmul.f32 %v2814_v57, %v3277_v43  ;;  %v1427_v28 = vadd.f32 %v2816_v2, %v1411_v39  ;;  %v3289_v56 = vld [vmem:[#allocation31_spill] sm:$0xff] }
 0x1d9   : > { %v1489_v6 = vmax.f32 %v1393_v8, %v1473_v38  ;;  %v1490_v48 = vmax.f32 %v1394_v60, %v1474_v59  ;;  %v1443_v50 = vmul.f32 %v2814_v57, %v3278_v25  ;;  %v1444_v4 = vmul.f32 %v2814_v57, %v3279_v32  ;;  %v3292_v38 = vld [vmem:[#allocation28_spill] sm:$0xff] }
 0x1da   : > { %v1395_v42 = vmax.f32 %v1347_v49, %v1379_v55  ;;  %v1396_v7 = vmax.f32 %v1348_v37, %v1380_v22  ;;  %v1428_v52 = vadd.f32 %v2816_v2, %v1412_v35  ;;  %v1327_v12 = vmul.f32 %v2814_v57, %v3280_v13  ;;  %v3293_v22 = vld [vmem:[#allocation32_spill] sm:$0xff] }
 0x1db   : > { %v1797_v18 = vpack.c.bf16 %v1490_v48, %v1489_v6  ;;  %v1459_v15 = vadd.f32 %v2816_v2, %v1443_v50  ;;  %v1460_v19 = vadd.f32 %v2816_v2, %v1444_v4  ;;  %v1328_v33 = vmul.f32 %v2814_v57, %v3281_v9  ;;  %v3294_v48 = vld [vmem:[#allocation55_spill] sm:$0xff] }
 0x1dc   : > { %v1349_v54 = vadd.f32 %v2816_v2, %v1327_v12  ;;  %v1365_v0 = vmul.f32 %v2814_v57, %v3282_v10  ;;  %v1366_v40 = vmul.f32 %v2814_v57, %v3283_v23  ;;  %v1413_v45 = vmul.f32 %v2814_v57, %v3284_v11  ;;  %v3296_v12 = vld [vmem:[#allocation25_spill] sm:$0xff] }
 0x1dd   : > { %1821 = vst [vmem:[%s2130_s9 + $0x18] sm:$0xff] %v1797_v18   ;;  %v1475_v51 = vmax.f32 %v1427_v28, %v1459_v15  ;;  %v1476_v17 = vmax.f32 %v1428_v52, %v1460_v19  ;;  %v1350_v62 = vadd.f32 %v2816_v2, %v1328_v33  ;;  %v1414_v29 = vmul.f32 %v2814_v57, %v3285_v63  ;;  %v3297_v15 = vld [vmem:[#allocation29_spill] sm:$0xff] }
 0x1de   : > { %v1381_v20 = vadd.f32 %v2816_v2, %v1365_v0  ;;  %v1382_v36 = vadd.f32 %v2816_v2, %v1366_v40  ;;  %v1429_v1 = vadd.f32 %v2816_v2, %v1413_v45  ;;  %v1445_v27 = vmul.f32 %v2814_v57, %v3286_v24  ;;  %v3299_v0 = vld [vmem:[#allocation56_spill] sm:$0xff] }
 0x1df   : > { %v1491_v53 = vmax.f32 %v1395_v42, %v1475_v51  ;;  %v1492_v44 = vmax.f32 %v1396_v7, %v1476_v17  ;;  %v1430_v14 = vadd.f32 %v2816_v2, %v1414_v29  ;;  %v1446_v8 = vmul.f32 %v2814_v57, %v3287_v34  ;;  %v3295_v42 = vld [vmem:[#allocation59_spill] sm:$0xff]  ;;  %v3300_v51 = vld [vmem:[#allocation26_spill] sm:$0xff] }
 0x1e0   : > { %v1397_v60 = vmax.f32 %v1349_v54, %v1381_v20  ;;  %v1398_v5 = vmax.f32 %v1350_v62, %v1382_v36  ;;  %v1461_v30 = vadd.f32 %v2816_v2, %v1445_v27  ;;  %v1329_v16 = vmul.f32 %v2814_v57, %v3288_v46  ;;  %v3298_v54 = vld [vmem:[#allocation52_spill] sm:$0xff]  ;;  %v3301_v20 = vld [vmem:[#allocation30_spill] sm:$0xff]  ;;  %v3302_v27 = vld [vmem:[#allocation53_spill] sm:$0xff] }
 0x1e1   : > { %v1802_v31 = vpack.c.bf16 %v1492_v44, %v1491_v53  ;;  %v1462_v61 = vadd.f32 %v2816_v2, %v1446_v8  ;;  %v1330_v26 = vmul.f32 %v2814_v57, %v3289_v56  ;;  %v1367_v47 = vmul.f32 %v2814_v57, %v3290_v41  ;;  %v3303_v44 = vld [vmem:[#allocation57_spill] sm:$0xff] }
 0x1e2   : > { %v1477_v3 = vmax.f32 %v1429_v1, %v1461_v30  ;;  %v1351_v21 = vadd.f32 %v2816_v2, %v1329_v16  ;;  %v1368_v39 = vmul.f32 %v2814_v57, %v3291_v58  ;;  %v1415_v59 = vmul.f32 %v2814_v57, %v3292_v38 }
 0x1e3   : > { %1822 = vst [vmem:[%s2130_s9 + $0x20] sm:$0xff] %v1802_v31   ;;  %v1478_v49 = vmax.f32 %v1430_v14, %v1462_v61  ;;  %v1352_v37 = vadd.f32 %v2816_v2, %v1330_v26  ;;  %v1383_v55 = vadd.f32 %v2816_v2, %v1367_v47  ;;  %v1416_v43 = vmul.f32 %v2814_v57, %v3293_v22 }
 0x1e4   : > { %v1493_v35 = vmax.f32 %v1397_v60, %v1477_v3  ;;  %v1384_v28 = vadd.f32 %v2816_v2, %v1368_v39  ;;  %v1431_v6 = vadd.f32 %v2816_v2, %v1415_v59  ;;  %v1447_v25 = vmul.f32 %v2814_v57, %v3294_v48 }
 0x1e5   : > { %v1494_v50 = vmax.f32 %v1398_v5, %v1478_v49  ;;  %v1399_v32 = vmax.f32 %v1351_v21, %v1383_v55  ;;  %v1432_v4 = vadd.f32 %v2816_v2, %v1416_v43  ;;  %v1448_v7 = vmul.f32 %v2814_v57, %v3295_v42 }
 0x1e6   : > { %v1400_v52 = vmax.f32 %v1352_v37, %v1384_v28  ;;  %v1463_v13 = vadd.f32 %v2816_v2, %v1447_v25  ;;  %v1331_v18 = vmul.f32 %v2814_v57, %v3296_v12  ;;  %v1332_v19 = vmul.f32 %v2814_v57, %v3297_v15 }
 0x1e7   : > { %v1807_v9 = vpack.c.bf16 %v1494_v50, %v1493_v35  ;;  %v1464_v33 = vadd.f32 %v2816_v2, %v1448_v7  ;;  %v1369_v10 = vmul.f32 %v2814_v57, %v3298_v54  ;;  %v1370_v23 = vmul.f32 %v2814_v57, %v3299_v0 }
 0x1e8   : > { %v1479_v40 = vmax.f32 %v1431_v6, %v1463_v13  ;;  %v1353_v11 = vadd.f32 %v2816_v2, %v1331_v18  ;;  %v1354_v45 = vadd.f32 %v2816_v2, %v1332_v19  ;;  %v1417_v17 = vmul.f32 %v2814_v57, %v3300_v51 }
 0x1e9   : > { %1823 = vst [vmem:[%s2130_s9 + $0x28] sm:$0xff] %v1807_v9   ;;  %v1480_v62 = vmax.f32 %v1432_v4, %v1464_v33  ;;  %v1385_v63 = vadd.f32 %v2816_v2, %v1369_v10  ;;  %v1386_v29 = vadd.f32 %v2816_v2, %v1370_v23  ;;  %v1418_v36 = vmul.f32 %v2814_v57, %v3301_v20 }
 0x1ea   : > { %v1495_v1 = vmax.f32 %v1399_v32, %v1479_v40  ;;  %v1433_v24 = vadd.f32 %v2816_v2, %v1417_v17  ;;  %v1449_v53 = vmul.f32 %v2814_v57, %v3302_v27  ;;  %v1450_v14 = vmul.f32 %v2814_v57, %v3303_v44 }
 0x1eb   : > { %v1496_v34 = vmax.f32 %v1400_v52, %v1480_v62  ;;  %v1434_v8 = vadd.f32 %v2816_v2, %v1418_v36  ;;  %v1401_v60 = vmax.f32 %v1353_v11, %v1385_v63  ;;  %v1402_v5 = vmax.f32 %v1354_v45, %v1386_v29 }
 0x1ec   : > { %v1465_v30 = vadd.f32 %v2816_v2, %v1449_v53  ;;  %v1466_v46 = vadd.f32 %v2816_v2, %v1450_v14 }
 0x1ed   : > { %v1812_v16 = vpack.c.bf16 %v1496_v34, %v1495_v1 }
 0x1ee   : > { %v1481_v31 = vmax.f32 %v1433_v24, %v1465_v30  ;;  %v1482_v61 = vmax.f32 %v1434_v8, %v1466_v46 }
 0x1ef   : > { %1824 = vst [vmem:[%s2130_s9 + $0x30] sm:$0xff] %v1812_v16  }
 0x1f0   : > { %v1497_v56 = vmax.f32 %v1401_v60, %v1481_v31  ;;  %v1498_v26 = vmax.f32 %v1402_v5, %v1482_v61 }
 0x1f2   : > { %v1817_v41 = vpack.c.bf16 %v1498_v26, %v1497_v56 }
 0x1f4   : > { %1825 = vst [vmem:[%s2130_s9 + $0x38] sm:$0xff] %v1817_v41  }
 0x1f5 PF: > { %s15_s22 = sadd.s32 1, %s2049_s22   ;;  %s3304_s18 = smov %s2041_s20 }
 0x1f6   : > { %p12_p0 = scmp.ge.s32.totalorder %s15_s22, 8   ;;  %s3305_s19 = smov %s2045_s21 }
 0x1f7   : > { %s3306_s20 = smov %s3309_s23  ;;  %s3307_s21 = smov %s3313_s24 }
 0x1f8   :  { %14 = sbr.rel (!%p12_p0) target bundleno = 3 (0x3), region = 86 }

// kernel: network_forward.4
= control target key start
LH: loop header
LB: loop body
LE: loop exit
PB: predicated region body
PF: predicated region fallthrough
CT: control target
= control target key end

     0   :  { %s1849_s18 = smov 0   ;;  %s1851_s19 = smov 0   ;;  %s2400_s0 = inlined_call_operand.vmem [shape: bf16[1,224,288], index: 0, kind: input, shape index: {}]   ;;  %s2401_s1 = inlined_call_operand.vmem [shape: bf16[288,128], index: 1, kind: input, shape index: {}]   ;;  %s2402_s2 = inlined_call_operand.vmem [shape: f32[1,128], index: 2, kind: input, shape index: {}]   ;;  %s2403_s3 = inlined_call_operand.vmem [shape: f32[1,128], index: 3, kind: input, shape index: {}]   ;;  %s2404_s4 = inlined_call_operand.vmem [shape: f32[1,128], index: 4, kind: input, shape index: {}]   ;;  %s2405_s5 = inlined_call_operand.vmem [shape: bf16[56,128], index: 5, kind: output, shape index: {}]  }
   0x1   :  { %s1853_s20 = smov 0  }
   0x2 LB: > { %s27_s21 = sadd.s32 1, %s1810_s19  ;;  %p1405_p0 = scmp.ge.s32.totalorder %s1814_s20, 1  ;;  %s1814_s20 = sphi %s1853_s20, %s15_s20   ;;  %s1810_s19 = sphi %s1851_s19, %s2428_s19   ;;  %s1806_s18 = sphi %s1849_s18, %s2427_s18  }
   0x3   : > { %p29_p1 = scmp.ge.s32.totalorder %s27_s21, 2  ;;  %p199_p2 = scmp.lt.s32.totalorder %s1814_s20, 3 }
   0x5   : > { %s2430_s21 = smov (%p29_p1, %s27_s21), 0  ;;  %p200_p3 = pnand %p1405_p0, %p199_p2 }
   0x7   : > { %203 = sbr.rel (%p200_p3) target bundleno = 459 (0x1cb), region = 40 }
   0xe   : > { %v1716_v0 = vld [vmem:[%s2401_s1 + $0x40] sm:$0xff]   ;;  %v1718_v2 = vld [vmem:[%s2401_s1 + $0x48] sm:$0xff]   ;;  %v1720_v4 = vld [vmem:[%s2401_s1 + $0x50] sm:$0xff]   ;;  %vm656_vm0 = vcmask 261120   ;;  %p1017_p4 = scmp.eq.s32.totalorder %s1806_s18, 0 }
   0xf   : > { %v1717_v1 = vld [vmem:[%s2401_s1] sm:$0xff]   ;;  %1525 = vmatprep.subr.bf16.mxu0 %v1716_v0  ;;  %1673 = vmatprep.subr.bf16.mxu1 %v1716_v0  ;;  %v1719_v3 = vld [vmem:[%s2401_s1 + $0x8] sm:$0xff]   ;;  %v1721_v5 = vld [vmem:[%s2401_s1 + $0x10] sm:$0xff]  }
  0x10   : > { %1526 = vmatpush3.bf16.msra.mxu0 %v1717_v1  ;;  %1681 = vmatpush3.bf16.msra.mxu1 %v1717_v1  ;;  %v1722_v6 = vld [vmem:[%s2401_s1 + $0x58] sm:$0xff]   ;;  %v1724_v8 = vld [vmem:[%s2401_s1 + $0x60] sm:$0xff]   ;;  %v1726_v10 = vld [vmem:[%s2401_s1 + $0x68] sm:$0xff]  }
  0x11   : > { %1527 = vmatprep.subr.bf16.mxu0 %v1718_v2  ;;  %1674 = vmatprep.subr.bf16.mxu1 %v1718_v2  ;;  %v1723_v7 = vld [vmem:[%s2401_s1 + $0x18] sm:$0xff]   ;;  %v1725_v9 = vld [vmem:[%s2401_s1 + $0x20] sm:$0xff]   ;;  %v1727_v13 = vld [vmem:[%s2401_s1 + $0x28] sm:$0xff]  }
  0x12   : > { %v1734_v11 = vld [vmem:[%s2400_s0 + $0x4] ss:$12 sps:$4 sm:$0xff]   ;;  %v1737_v12 = vld [vmem:[%s2400_s0 + $0x10c] ss:$12 sps:$4 sm:$0xff]   ;;  %v1735_v20 = vld [vmem:[%s2400_s0 + $0x108] ss:$12 sps:$4 sm:$0xff]  }
  0x13   : > { %v1728_v14 = vld [vmem:[%s2401_s1 + $0x70] sm:$0xff]   ;;  %731 = vmatprep.mubr.bf16.mxu0 %v1734_v11  ;;  %819 = vmatprep.mubr.bf16.mxu1 %v1737_v12  ;;  %v1730_v16 = vld [vmem:[%s2401_s1 + $0x78] sm:$0xff]   ;;  %v1744_v18 = vld [vmem:[%s2401_s1 + $0x80] sm:$0xff]  }
  0x14   : > { %1528 = vmatpush3.bf16.msra.mxu0 %v1719_v3  ;;  %1682 = vmatpush3.bf16.msra.mxu1 %v1719_v3  ;;  %v1729_v15 = vld [vmem:[%s2401_s1 + $0x30] sm:$0xff]   ;;  %v1731_v17 = vld [vmem:[%s2401_s1 + $0x38] sm:$0xff]   ;;  %v1732_v19 = vld [vmem:[%s2400_s0] ss:$12 sps:$4 sm:$0xff]  }
  0x15   : > { %1529 = vmatprep.subr.bf16.mxu0 %v1720_v4  ;;  %1675 = vmatprep.subr.bf16.mxu1 %v1720_v4  ;;  %v1738_v21 = vld [vmem:[%s2400_s0 + $0x1c] ss:$12 sps:$4 sm:$0xff]   ;;  %v1740_v22 = vld [vmem:[%s2400_s0 + $0x124] ss:$12 sps:$4 sm:$0xff]   ;;  %v1743_v25 = vld [vmem:[%s2400_s0 + $0x120] ss:$12 sps:$4 sm:$0xff]  }
  0x16   : > { %v1751_v23 = vld [vmem:[%s2401_s1 + $0x88] sm:$0xff]   ;;  %v1742_v24 = vld [vmem:[%s2400_s0 + $0x18] ss:$12 sps:$4 sm:$0xff]   ;;  %v1745_v26 = vld [vmem:[%s2400_s0 + $0x34] ss:$12 sps:$4 sm:$0xff]  }
  0x17   : > { %v1747_v27 = vld [vmem:[%s2400_s0 + $0x13c] ss:$12 sps:$4 sm:$0xff]   ;;  %v1750_v29 = vld [vmem:[%s2400_s0 + $0x138] ss:$12 sps:$4 sm:$0xff]   ;;  %v1756_v33 = vld [vmem:[%s2400_s0 + $0x20] ss:$12 sps:$4 sm:$0xff]  }
  0x18   : > { %1530 = vmatpush3.bf16.msra.mxu0 %v1721_v5  ;;  %1683 = vmatpush3.bf16.msra.mxu1 %v1721_v5  ;;  %v1749_v28 = vld [vmem:[%s2400_s0 + $0x30] ss:$12 sps:$4 sm:$0xff]   ;;  %v1752_v30 = vld [vmem:[%s2400_s0 + $0x4c] ss:$12 sps:$4 sm:$0xff]   ;;  %v1754_v31 = vld [vmem:[%s2400_s0 + $0x8] ss:$12 sps:$4 sm:$0xff]  }
  0x19   : > { %1531 = vmatprep.subr.bf16.mxu0 %v1722_v6  ;;  %1676 = vmatprep.subr.bf16.mxu1 %v1722_v6  ;;  %v1755_v32 = vld [vmem:[%s2400_s0 + $0x48] ss:$12 sps:$4 sm:$0xff]   ;;  %v1757_v34 = vld [vmem:[%s2400_s0 + $0x64] ss:$12 sps:$4 sm:$0xff]   ;;  %v1760_v36 = vld [vmem:[%s2400_s0 + $0x60] ss:$12 sps:$4 sm:$0xff]  }
  0x1a   : > { %v1759_v35 = vld [vmem:[%s2400_s0 + $0x38] ss:$12 sps:$4 sm:$0xff]   ;;  %v1761_v37 = vld [vmem:[%s2400_s0 + $0x50] ss:$12 sps:$4 sm:$0xff]   ;;  %v1764_v39 = vld [vmem:[%s2400_s0 + $0x68] ss:$12 sps:$4 sm:$0xff]  }
  0x1b   : > { %v1762_v38 = vld [vmem:[%s2400_s0 + $0x7c] ss:$12 sps:$4 sm:$0xff]   ;;  %v1765_v40 = vld [vmem:[%s2400_s0 + $0x78] ss:$12 sps:$4 sm:$0xff]   ;;  %v1766_v41 = vld [vmem:[%s2400_s0 + $0x80] ss:$12 sps:$4 sm:$0xff]  }
  0x1c   : > { %1532 = vmatpush3.bf16.msra.mxu0 %v1723_v7  ;;  %1684 = vmatpush3.bf16.msra.mxu1 %v1723_v7  ;;  %v1767_v42 = vld [vmem:[%s2400_s0 + $0x94] ss:$12 sps:$4 sm:$0xff]   ;;  %v1769_v43 = vld [vmem:[%s2400_s0 + $0x98] ss:$12 sps:$4 sm:$0xff]   ;;  %v1770_v44 = vld [vmem:[%s2400_s0 + $0x90] ss:$12 sps:$4 sm:$0xff]  }
  0x1d   : > { %1533 = vmatprep.subr.bf16.mxu0 %v1724_v8  ;;  %1677 = vmatprep.subr.bf16.mxu1 %v1724_v8  ;;  %v1771_v45 = vld [vmem:[%s2400_s0 + $0xb0] ss:$12 sps:$4 sm:$0xff]   ;;  %v1772_v46 = vld [vmem:[%s2400_s0 + $0xac] ss:$12 sps:$4 sm:$0xff]   ;;  %v1774_v47 = vld [vmem:[%s2400_s0 + $0xc8] ss:$12 sps:$4 sm:$0xff]  }
  0x1e   : > { %v1775_v48 = vld [vmem:[%s2400_s0 + $0xa8] ss:$12 sps:$4 sm:$0xff]   ;;  %v1776_v49 = vld [vmem:[%s2400_s0 + $0xe0] ss:$12 sps:$4 sm:$0xff]   ;;  %v1777_v50 = vld [vmem:[%s2400_s0 + $0xc4] ss:$12 sps:$4 sm:$0xff]  }
  0x1f   : > { %v1779_v51 = vld [vmem:[%s2400_s0 + $0xf8] ss:$12 sps:$4 sm:$0xff]   ;;  %v1780_v52 = vld [vmem:[%s2400_s0 + $0xc0] ss:$12 sps:$4 sm:$0xff]   ;;  %v1781_v53 = vld [vmem:[%s2400_s0 + $0x110] ss:$12 sps:$4 sm:$0xff]  }
  0x20   : > { %1534 = vmatpush3.bf16.msra.mxu0 %v1725_v9  ;;  %1685 = vmatpush3.bf16.msra.mxu1 %v1725_v9  ;;  %v1782_v54 = vld [vmem:[%s2400_s0 + $0xdc] ss:$12 sps:$4 sm:$0xff]   ;;  %v1785_v56 = vld [vmem:[%s2400_s0 + $0xd8] ss:$12 sps:$4 sm:$0xff]   ;;  %v1786_v57 = vld [vmem:[%s2400_s0 + $0x140] ss:$12 sps:$4 sm:$0xff]  }
  0x21   : > { %1535 = vmatprep.subr.bf16.mxu0 %v1726_v10  ;;  %1678 = vmatprep.subr.bf16.mxu1 %v1726_v10  ;;  %v1784_v55 = vld [vmem:[%s2400_s0 + $0x128] ss:$12 sps:$4 sm:$0xff]   ;;  %v1789_v59 = vld [vmem:[%s2400_s0 + $0xf0] ss:$12 sps:$4 sm:$0xff]  }
  0x22   : > { %v1787_v58 = vld [vmem:[%s2400_s0 + $0xf4] ss:$12 sps:$4 sm:$0xff]  }
  0x24   : > { %1536 = vmatpush3.bf16.msra.mxu0 %v1727_v13  ;;  %1686 = vmatpush3.bf16.msra.mxu1 %v1727_v13 }
  0x25   : > { %1537 = vmatprep.subr.bf16.mxu0 %v1728_v14  ;;  %1679 = vmatprep.subr.bf16.mxu1 %v1728_v14 }
  0x28   : > { %1538 = vmatpush3.bf16.msra.mxu0 %v1729_v15  ;;  %1687 = vmatpush3.bf16.msra.mxu1 %v1729_v15 }
  0x29   : > { %1539 = vmatprep.subr.bf16.mxu0 %v1730_v16  ;;  %1680 = vmatprep.subr.bf16.mxu1 %v1730_v16 }
  0x2c   : > { %1540 = vmatpush3.bf16.msra.mxu0 %v1731_v17  ;;  %1688 = vmatpush3.bf16.msra.mxu1 %v1731_v17 }
  0x2d   : > { %1641 = vmatprep.subr.bf16.mxu1 %v1744_v18 }
  0x2f   : > { %732 = vmatmul.mubr.bf16.vlgmr.msra.gmra.mrb[0].mxu0 %v1732_v19  ;;  %820 = vmatmul.mubr.bf16.vlgmr.msra.gmra.mrb[0].mxu1 %v1735_v20 }
  0x30   : > { %739 = vmatprep.mubr.bf16.mxu0 %v1738_v21  ;;  %827 = vmatprep.mubr.bf16.mxu1 %v1740_v22 }
  0x31   : > { %1642 = vmatpush3.bf16.msra.mxu1 %v1744_v18 }
  0x32   : > { %1643 = vmatprep.subr.bf16.mxu1 %v1751_v23 }
  0x35   : > { %1644 = vmatpush3.bf16.msra.mxu1 %v1751_v23 }
  0x37   : > { %740 = vmatmul.mubr.bf16.gmra.mrb[4].mxu0 %v1742_v24  ;;  %828 = vmatmul.mubr.bf16.gmra.mrb[4].mxu1 %v1743_v25 }
  0x38   : > { %747 = vmatprep.mubr.bf16.mxu0 %v1745_v26  ;;  %835 = vmatprep.mubr.bf16.mxu1 %v1747_v27 }
  0x3f   : > { %748 = vmatmul.mubr.bf16.gmra.mrb[8].mxu0 %v1749_v28  ;;  %836 = vmatmul.mubr.bf16.gmra.mrb[8].mxu1 %v1750_v29 }
  0x40   : > { %755 = vmatprep.mubr.bf16.mxu0 %v1752_v30  ;;  %1645 = vmatprep.mubr.msk.bf16.mxu1 %vm656_vm0, %v1754_v31 }
  0x47   : > { %756 = vmatmul.mubr.bf16.gmra.mrb[12].mxu0 %v1755_v32  ;;  %1646 = vmatmul.mubr.msk.bf16.vlgmr.msra.gmra.mrb[12].mxu1 %vm656_vm0, %v1756_v33  ;;  %v2079_v32 = vld [vmem:[%s2402_s2] ss:$0 sm:$0xff] }
  0x48   : > { %763 = vmatprep.mubr.bf16.mxu0 %v1757_v34  ;;  %1649 = vmatprep.mubr.msk.bf16.mxu1 %vm656_vm0, %v1759_v35 }
  0x4f   : > { %764 = vmatmul.mubr.bf16.gmra.mrb[16].mxu0 %v1760_v36  ;;  %1650 = vmatmul.mubr.msk.bf16.gmra.mrb[16].mxu1 %vm656_vm0, %v1761_v37 }
  0x50   : > { %771 = vmatprep.mubr.bf16.mxu0 %v1762_v38  ;;  %1653 = vmatprep.mubr.msk.bf16.mxu1 %vm656_vm0, %v1764_v39 }
  0x57   : > { %772 = vmatmul.mubr.bf16.gmra.mrb[20].mxu0 %v1765_v40  ;;  %1654 = vmatmul.mubr.msk.bf16.gmra.mrb[20].mxu1 %vm656_vm0, %v1766_v41 }
  0x58   : > { %779 = vmatprep.mubr.bf16.mxu0 %v1767_v42  ;;  %1657 = vmatprep.mubr.msk.bf16.mxu1 %vm656_vm0, %v1769_v43 }
  0x5f   : > { %780 = vmatmul.mubr.bf16.gmra.mrb[24].mxu0 %v1770_v44  ;;  %1658 = vmatmul.mubr.msk.bf16.gmra.mrb[24].mxu1 %vm656_vm0, %v1771_v45 }
  0x60   : > { %787 = vmatprep.mubr.bf16.mxu0 %v1772_v46  ;;  %1661 = vmatprep.mubr.msk.bf16.mxu1 %vm656_vm0, %v1774_v47 }
  0x67   : > { %788 = vmatmul.mubr.bf16.gmra.mrb[28].mxu0 %v1775_v48  ;;  %1662 = vmatmul.mubr.msk.bf16.gmra.mrb[28].mxu1 %vm656_vm0, %v1776_v49 }
  0x68   : > { %795 = vmatprep.mubr.bf16.mxu0 %v1777_v50  ;;  %1665 = vmatprep.mubr.msk.bf16.mxu1 %vm656_vm0, %v1779_v51 }
  0x6f   : > { %796 = vmatmul.mubr.bf16.gmra.mrb[32].mxu0 %v1780_v52  ;;  %1666 = vmatmul.mubr.msk.bf16.gmra.mrb[32].mxu1 %vm656_vm0, %v1781_v53 }
  0x70   : > { %803 = vmatprep.mubr.bf16.mxu0 %v1782_v54  ;;  %1669 = vmatprep.mubr.msk.bf16.mxu1 %vm656_vm0, %v1784_v55 }
  0x77   : > { %804 = vmatmul.mubr.bf16.gmra.mrb[36].mxu0 %v1785_v56  ;;  %1670 = vmatmul.mubr.msk.bf16.gmra.mrb[36].mxu1 %vm656_vm0, %v1786_v57 }
  0x78   : > { %811 = vmatprep.mubr.bf16.mxu0 %v1787_v58 }
  0x7f   : > { %812 = vmatmul.mubr.bf16.gmra.mrb[40].mxu0 %v1789_v59 }
 0x102   : > { %v1541_v60 = vpop.f32.mrb[0].mxu0  ;;  %v1607_v61 = vpop.f32.mrb[0].mxu1 }
 0x103   : > { %v1542_v62 = vpop.f32.mrb[1].mxu0  ;;  %v1608_v63 = vpop.f32.mrb[1].mxu1 }
 0x104   : > { %v1543_v0 = vadd.f32 %v1542_v62, %v1541_v60  ;;  %v1544_v1 = vpop.f32.mrb[2].mxu0  ;;  %v2064_v2 = vadd.f32 %v1608_v63, %v1607_v61  ;;  %v1610_v3 = vpop.f32.mrb[2].mxu1 }
 0x105   : > { %v1545_v4 = vpop.f32.mrb[3].mxu0  ;;  %v1611_v5 = vpop.f32.mrb[3].mxu1 }
 0x106   : > { %v1546_v6 = vadd.f32 %v1545_v4, %v1544_v1  ;;  %v2066_v7 = vadd.f32 %v1611_v5, %v1610_v3  ;;  %v734_v36 = vadd.f32 %v1543_v0, %v2079_v32 }
 0x108   : > { %v737_v45 = vadd.f32 %v1546_v6, %v2079_v32 }
 0x10a   : > { %v1547_v8 = vpop.f32.mrb[4].mxu0  ;;  %v1613_v9 = vpop.f32.mrb[4].mxu1 }
 0x10b   : > { %v1548_v10 = vpop.f32.mrb[5].mxu0  ;;  %v1614_v11 = vpop.f32.mrb[5].mxu1 }
 0x10c   : > { %v1549_v12 = vadd.f32 %v1548_v10, %v1547_v8  ;;  %v1550_v13 = vpop.f32.mrb[6].mxu0  ;;  %v2068_v14 = vadd.f32 %v1614_v11, %v1613_v9  ;;  %v1616_v15 = vpop.f32.mrb[6].mxu1 }
 0x10d   : > { %v1551_v16 = vpop.f32.mrb[7].mxu0  ;;  %v1617_v17 = vpop.f32.mrb[7].mxu1 }
 0x10e   : > { %v1552_v18 = vadd.f32 %v1551_v16, %v1550_v13  ;;  %v2070_v19 = vadd.f32 %v1617_v17, %v1616_v15  ;;  %v742_v33 = vadd.f32 %v1549_v12, %v2079_v32 }
 0x110   : > { %v745_v40 = vadd.f32 %v1552_v18, %v2079_v32 }
 0x112   : > { %v1553_v20 = vpop.f32.mrb[8].mxu0  ;;  %v1619_v21 = vpop.f32.mrb[8].mxu1 }
 0x113   : > { %v1554_v22 = vpop.f32.mrb[9].mxu0  ;;  %v1620_v23 = vpop.f32.mrb[9].mxu1 }
 0x114   : > { %v1555_v24 = vadd.f32 %v1554_v22, %v1553_v20  ;;  %v1556_v25 = vpop.f32.mrb[10].mxu0  ;;  %v2072_v26 = vadd.f32 %v1620_v23, %v1619_v21  ;;  %v1622_v27 = vpop.f32.mrb[10].mxu1 }
 0x115   : > { %v1557_v28 = vpop.f32.mrb[11].mxu0  ;;  %v1623_v29 = vpop.f32.mrb[11].mxu1 }
 0x116   : > { %v1558_v30 = vadd.f32 %v1557_v28, %v1556_v25  ;;  %v2074_v31 = vadd.f32 %v1623_v29, %v1622_v27  ;;  %v750_v58 = vadd.f32 %v1555_v24, %v2079_v32 }
 0x118   : > { %v753_v4 = vadd.f32 %v1558_v30, %v2079_v32 }
 0x11a   : > { %v1559_v34 = vpop.f32.mrb[12].mxu0  ;;  %v1647_v35 = vpop.f32.mrb[12].mxu1 }
 0x11b   : > { %v887_v37 = vadd.f32 %v1647_v35, %v742_v33  ;;  %v1560_v38 = vpop.f32.mrb[13].mxu0  ;;  %v878_v39 = vpop.f32.mrb[13].mxu1 }
 0x11c   : > { %v1561_v41 = vadd.f32 %v1560_v38, %v1559_v34  ;;  %v879_v42 = vadd.f32 %v878_v39, %v734_v36  ;;  %v1562_v43 = vpop.f32.mrb[14].mxu0  ;;  %v1648_v44 = vpop.f32.mrb[14].mxu1 }
 0x11d   : > { %v2085_v46 = vmax.f32 %v887_v37, 0.0  ;;  %v890_v47 = vadd.f32 %v1648_v44, %v745_v40  ;;  %v1563_v48 = vpop.f32.mrb[15].mxu0  ;;  %v881_v49 = vpop.f32.mrb[15].mxu1 }
 0x11e   : > { %v2087_v50 = vmax.f32 %v879_v42, 0.0  ;;  %v1564_v51 = vadd.f32 %v1563_v48, %v1562_v43  ;;  %v882_v52 = vadd.f32 %v881_v49, %v737_v45  ;;  %v758_v55 = vadd.f32 %v1561_v41, %v2079_v32 }
 0x11f   : > { %v2089_v53 = vmax.f32 %v890_v47, 0.0 }
 0x120   : > { %v2091_v54 = vmax.f32 %v882_v52, 0.0  ;;  %v761_v62 = vadd.f32 %v1564_v51, %v2079_v32 }
 0x122   : > { %v1565_v56 = vpop.f32.mrb[16].mxu0  ;;  %v1651_v57 = vpop.f32.mrb[16].mxu1 }
 0x123   : > { %v903_v59 = vadd.f32 %v1651_v57, %v758_v55  ;;  %v1566_v60 = vpop.f32.mrb[17].mxu0  ;;  %v894_v61 = vpop.f32.mrb[17].mxu1 }
 0x124   : > { %v1567_v63 = vadd.f32 %v1566_v60, %v1565_v56  ;;  %v895_v0 = vadd.f32 %v894_v61, %v750_v58  ;;  %v1568_v1 = vpop.f32.mrb[18].mxu0  ;;  %v1652_v3 = vpop.f32.mrb[18].mxu1 }
 0x125   : > { %v2097_v5 = vmax.f32 %v903_v59, 0.0  ;;  %v906_v6 = vadd.f32 %v1652_v3, %v761_v62  ;;  %v1569_v8 = vpop.f32.mrb[19].mxu0  ;;  %v897_v9 = vpop.f32.mrb[19].mxu1 }
 0x126   : > { %v2099_v10 = vmax.f32 %v895_v0, 0.0  ;;  %v1570_v11 = vadd.f32 %v1569_v8, %v1568_v1  ;;  %v898_v12 = vadd.f32 %v897_v9, %v753_v4  ;;  %v766_v18 = vadd.f32 %v1567_v63, %v2079_v32 }
 0x127   : > { %2413 = vst [vmem:[#allocation6_spill] sm:$0xff] %v2097_v5  ;;  %v2101_v13 = vmax.f32 %v906_v6, 0.0 }
 0x128   : > { %v2103_v15 = vmax.f32 %v898_v12, 0.0  ;;  %v769_v27 = vadd.f32 %v1570_v11, %v2079_v32 }
 0x12a   : > { %v1571_v16 = vpop.f32.mrb[20].mxu0  ;;  %v1655_v17 = vpop.f32.mrb[20].mxu1 }
 0x12b   : > { %v1572_v20 = vpop.f32.mrb[21].mxu0  ;;  %v910_v21 = vpop.f32.mrb[21].mxu1 }
 0x12c   : > { %v1573_v22 = vadd.f32 %v1572_v20, %v1571_v16  ;;  %v911_v23 = vadd.f32 %v910_v21, %v766_v18  ;;  %v1574_v24 = vpop.f32.mrb[22].mxu0  ;;  %v1656_v25 = vpop.f32.mrb[22].mxu1  ;;  %v822_v18 = vadd.f32 %v2064_v2, %v2079_v32 }
 0x12d   : > { %v1575_v28 = vpop.f32.mrb[23].mxu0  ;;  %v913_v29 = vpop.f32.mrb[23].mxu1 }
 0x12e   : > { %v774_v30 = vadd.f32 %v1573_v22, %v2079_v32  ;;  %v2108_v33 = vmax.f32 %v911_v23, 0.0  ;;  %v1576_v34 = vadd.f32 %v1575_v28, %v1574_v24  ;;  %v914_v35 = vadd.f32 %v913_v29, %v769_v27 }
 0x12f   : > { %v825_v28 = vadd.f32 %v2066_v7, %v2079_v32  ;;  %v838_v7 = vadd.f32 %v2072_v26, %v2079_v32 }
 0x130   : > { %v919_v36 = vadd.f32 %v1655_v17, %v774_v30  ;;  %v777_v37 = vadd.f32 %v1576_v34, %v2079_v32  ;;  %v2111_v38 = vmax.f32 %v914_v35, 0.0 }
 0x132   : > { %v2113_v39 = vmax.f32 %v919_v36, 0.0  ;;  %v922_v40 = vadd.f32 %v1656_v25, %v777_v37  ;;  %v1577_v41 = vpop.f32.mrb[24].mxu0  ;;  %v1659_v42 = vpop.f32.mrb[24].mxu1 }
 0x133   : > { %v1578_v43 = vpop.f32.mrb[25].mxu0  ;;  %v926_v44 = vpop.f32.mrb[25].mxu1 }
 0x134   : > { %v2115_v45 = vmax.f32 %v922_v40, 0.0  ;;  %v1579_v47 = vadd.f32 %v1578_v43, %v1577_v41  ;;  %v1580_v48 = vpop.f32.mrb[26].mxu0  ;;  %v1660_v49 = vpop.f32.mrb[26].mxu1 }
 0x135   : > { %v1581_v51 = vpop.f32.mrb[27].mxu0  ;;  %v929_v52 = vpop.f32.mrb[27].mxu1 }
 0x136   : > { %v1582_v55 = vadd.f32 %v1581_v51, %v1580_v48  ;;  %v782_v56 = vadd.f32 %v1579_v47, %v2079_v32 }
 0x138   : > { %v927_v57 = vadd.f32 %v926_v44, %v782_v56  ;;  %v785_v58 = vadd.f32 %v1582_v55, %v2079_v32  ;;  %v830_v55 = vadd.f32 %v2068_v14, %v2079_v32 }
 0x13a   : > { %v2119_v59 = vmax.f32 %v927_v57, 0.0  ;;  %v930_v60 = vadd.f32 %v929_v52, %v785_v58  ;;  %v1583_v61 = vpop.f32.mrb[28].mxu0  ;;  %v1663_v62 = vpop.f32.mrb[28].mxu1 }
 0x13b   : > { %v1584_v63 = vpop.f32.mrb[29].mxu0  ;;  %v942_v0 = vpop.f32.mrb[29].mxu1 }
 0x13c   : > { %v2121_v1 = vmax.f32 %v930_v60, 0.0  ;;  %v1585_v3 = vadd.f32 %v1584_v63, %v1583_v61  ;;  %v1586_v4 = vpop.f32.mrb[30].mxu0  ;;  %v1664_v6 = vpop.f32.mrb[30].mxu1  ;;  %v841_v60 = vadd.f32 %v2074_v31, %v2079_v32 }
 0x13d   : > { %v1587_v8 = vpop.f32.mrb[31].mxu0  ;;  %v945_v9 = vpop.f32.mrb[31].mxu1 }
 0x13e   : > { %2414 = vst [vmem:[#allocation7_spill] sm:$0xff] %v2121_v1  ;;  %v790_v11 = vadd.f32 %v1585_v3, %v2079_v32  ;;  %v1588_v12 = vadd.f32 %v1587_v8, %v1586_v4  ;;  %v833_v4 = vadd.f32 %v2070_v19, %v2079_v32 }
 0x140   : > { %v935_v16 = vadd.f32 %v1659_v42, %v790_v11  ;;  %v793_v17 = vadd.f32 %v1588_v12, %v2079_v32 }
 0x142   : > { %v2127_v20 = vmax.f32 %v935_v16, 0.0  ;;  %v938_v21 = vadd.f32 %v1660_v49, %v793_v17  ;;  %v1589_v22 = vpop.f32.mrb[32].mxu0  ;;  %v1667_v23 = vpop.f32.mrb[32].mxu1 }
 0x143   : > { %v967_v24 = vadd.f32 %v1667_v23, %v822_v18  ;;  %v1590_v25 = vpop.f32.mrb[33].mxu0  ;;  %v958_v27 = vpop.f32.mrb[33].mxu1 }
 0x144   : > { %v2131_v29 = vmax.f32 %v938_v21, 0.0  ;;  %v1591_v30 = vadd.f32 %v1590_v25, %v1589_v22  ;;  %v1592_v34 = vpop.f32.mrb[34].mxu0  ;;  %v1668_v35 = vpop.f32.mrb[34].mxu1 }
 0x145   : > { %v2133_v36 = vmax.f32 %v967_v24, 0.0  ;;  %v970_v37 = vadd.f32 %v1668_v35, %v825_v28  ;;  %v1593_v2 = vpop.f32.mrb[35].mxu0  ;;  %v961_v40 = vpop.f32.mrb[35].mxu1 }
 0x146   : > { %v798_v41 = vadd.f32 %v1591_v30, %v2079_v32  ;;  %v1594_v42 = vadd.f32 %v1593_v2, %v1592_v34 }
 0x147   : > { %v2136_v43 = vmax.f32 %v970_v37, 0.0 }
 0x148   : > { %v943_v44 = vadd.f32 %v942_v0, %v798_v41  ;;  %v801_v47 = vadd.f32 %v1594_v42, %v2079_v32 }
 0x14a   : > { %v2141_v48 = vmax.f32 %v943_v44, 0.0  ;;  %v946_v49 = vadd.f32 %v945_v9, %v801_v47  ;;  %v1595_v51 = vpop.f32.mrb[36].mxu0  ;;  %v1671_v52 = vpop.f32.mrb[36].mxu1 }
 0x14b   : > { %v983_v56 = vadd.f32 %v1671_v52, %v838_v7  ;;  %v1596_v57 = vpop.f32.mrb[37].mxu0  ;;  %v974_v58 = vpop.f32.mrb[37].mxu1 }
 0x14c   : > { %v2147_v61 = vmax.f32 %v946_v49, 0.0  ;;  %v1597_v63 = vadd.f32 %v1596_v57, %v1595_v51  ;;  %v975_v0 = vadd.f32 %v974_v58, %v830_v55  ;;  %v1598_v3 = vpop.f32.mrb[38].mxu0  ;;  %v1672_v26 = vpop.f32.mrb[38].mxu1 }
 0x14d   : > { %v2151_v8 = vmax.f32 %v983_v56, 0.0  ;;  %v986_v9 = vadd.f32 %v1672_v26, %v841_v60  ;;  %v1599_v11 = vpop.f32.mrb[39].mxu0  ;;  %v977_v14 = vpop.f32.mrb[39].mxu1 }
 0x14e   : > { %v806_v12 = vadd.f32 %v1597_v63, %v2079_v32  ;;  %v2154_v16 = vmax.f32 %v975_v0, 0.0  ;;  %v1600_v17 = vadd.f32 %v1599_v11, %v1598_v3  ;;  %v978_v31 = vadd.f32 %v977_v14, %v833_v4 }
 0x14f   : > { %2415 = vst [vmem:[#allocation8_spill] sm:$0xff] %v2151_v8  ;;  %v2156_v18 = vmax.f32 %v986_v9, 0.0 }
 0x150   : > { %v951_v21 = vadd.f32 %v1663_v62, %v806_v12  ;;  %v809_v22 = vadd.f32 %v1600_v17, %v2079_v32  ;;  %v2159_v23 = vmax.f32 %v978_v31, 0.0 }
 0x152   : > { %2416 = vst [vmem:[#allocation9_spill] sm:$0xff] %v2159_v23  ;;  %v2161_v24 = vmax.f32 %v951_v21, 0.0  ;;  %v954_v19 = vadd.f32 %v1664_v6, %v809_v22  ;;  %v1601_v25 = vpop.f32.mrb[40].mxu0  ;;  %v1816_v6 = vmov (%p1017_p4), 0.0  }
 0x153   : > { %v1602_v28 = vpop.f32.mrb[41].mxu0  ;;  %1023 = vst [vmem:[#allocation2] sm:$0x1] (%p1017_p4), %v1816_v6  ;;  %1024 = vst [vmem:[#allocation3] sm:$0x1] (%p1017_p4), %v1816_v6 }
 0x154   : > { %2417 = vst [vmem:[#allocation10_spill] sm:$0xff] %v2161_v24  ;;  %v2163_v30 = vmax.f32 %v954_v19, 0.0  ;;  %v1603_v34 = vadd.f32 %v1602_v28, %v1601_v25  ;;  %v1604_v35 = vpop.f32.mrb[42].mxu0 }
 0x155   : > { %v1605_v37 = vpop.f32.mrb[43].mxu0 }
 0x156   : > { %2418 = vst [vmem:[#allocation11_spill] sm:$0xff] %v2163_v30  ;;  %v814_v2 = vadd.f32 %v1603_v34, %v2079_v32  ;;  %v1606_v41 = vadd.f32 %v1605_v37, %v1604_v35  ;;  %1022 = sbr.rel (!%p1017_p4) target bundleno = 349 (0x15d), region = 44 }
 0x158   : > { %v959_v42 = vadd.f32 %v958_v27, %v814_v2  ;;  %v817_v62 = vadd.f32 %v1606_v41, %v2079_v32 }
 0x15a   : > { %v2167_v44 = vmax.f32 %v959_v42, 0.0  ;;  %v962_v47 = vadd.f32 %v961_v40, %v817_v62 }
 0x15c   : > { %2419 = vst [vmem:[#allocation12_spill] sm:$0xff] %v2167_v44  ;;  %v2169_v7 = vmax.f32 %v962_v47, 0.0 }
 0x15d PF: > { %p1482_p5 = scmp.ne.s32.totalorder %s1806_s18, 0 }
 0x15e   : > { %v1029_v49 = vlaneseq (!%p1482_p5)  ;;  %v1066_v27 = vadd.f32 (!%p1482_p5), %v2101_v13, %v2087_v50  ;;  %v1067_v32 = vadd.f32 (!%p1482_p5), %v2108_v33, %v2091_v54  ;;  %v1068_v40 = vadd.f32 (!%p1482_p5), %v2111_v38, %v2085_v46 }
 0x15f   : > { %1027 = sbr.rel (%p1482_p5) target bundleno = 398 (0x18e), region = 48  ;;  %v1069_v51 = vadd.f32 (!%p1482_p5), %v2113_v39, %v2089_v53  ;;  %v1070_v52 = vadd.f32 (!%p1482_p5), %v2115_v45, %v2099_v10  ;;  %v1071_v55 = vadd.f32 (!%p1482_p5), %v2119_v59, %v2103_v15  ;;  %v1072_v57 = vadd.f32 (!%p1482_p5), %v2121_v1, %v2097_v5 }
 0x160   : > { %v1030_v56 = vshrl.u32 (!%p1482_p5), %v1029_v49, 7  ;;  %v1073_v58 = vadd.f32 (!%p1482_p5), %v2169_v7, %v2127_v20  ;;  %v1074_v60 = vadd.f32 (!%p1482_p5), %v2133_v36, %v2131_v29  ;;  %v1075_v63 = vadd.f32 (!%p1482_p5), %v2136_v43, %v2141_v48 }
 0x161   : > { %v1076_v0 = vadd.f32 (!%p1482_p5), %v2154_v16, %v2147_v61  ;;  %v1077_v3 = vadd.f32 (!%p1482_p5), %v2159_v23, %v2161_v24  ;;  %v1078_v26 = vadd.f32 (!%p1482_p5), %v2151_v8, %v2163_v30  ;;  %v1079_v9 = vadd.f32 (!%p1482_p5), %v2156_v18, %v2167_v44 }
 0x162   : > { %v1036_v4 = vadd.s32 (!%p1482_p5), 48, %v1030_v56  ;;  %v1080_v11 = vadd.f32 (!%p1482_p5), %v1073_v58, %v1066_v27  ;;  %v1081_v14 = vadd.f32 (!%p1482_p5), %v1074_v60, %v1067_v32  ;;  %v1082_v12 = vadd.f32 (!%p1482_p5), %v1075_v63, %v1068_v40 }
 0x163   : > { %v1083_v17 = vadd.f32 (!%p1482_p5), %v1076_v0, %v1069_v51  ;;  %v1084_v31 = vadd.f32 (!%p1482_p5), %v1077_v3, %v1070_v52  ;;  %v1086_v21 = vadd.f32 (!%p1482_p5), %v1079_v9, %v1072_v57  ;;  %v1817_v19 = vmov (!%p1482_p5), 0.0  }
 0x164   : > { %vm1051_vm1 = vcmp.lt.s32.totalorder (!%p1482_p5), %v1036_v4, 50  ;;  %v1151_v22 = vadd.f32 (!%p1482_p5), %v1081_v14, %v1080_v11  ;;  %v1085_v28 = vadd.f32 (!%p1482_p5), %v1078_v26, %v1071_v55  ;;  %v1094_v34 = vmul.f32 (!%p1482_p5), %v2087_v50, %v2087_v50 }
 0x165   : > { %v2202_v25 = vsel (!%p1482_p5), %vm1051_vm1, 1.0, %v1817_v19  ;;  %v1095_v35 = vmul.f32 (!%p1482_p5), %v2091_v54, %v2091_v54  ;;  %v1096_v41 = vmul.f32 (!%p1482_p5), %v2085_v46, %v2085_v46  ;;  %v1097_v42 = vmul.f32 (!%p1482_p5), %v2089_v53, %v2089_v53 }
 0x166   : > { %v1093_v37 = vmul.f32 %v2202_v25, %v1086_v21  ;;  %v1152_v2 = vadd.f32 %v1151_v22, %v1082_v12  ;;  %v1098_v62 = vmul.f32 %v2099_v10, %v2099_v10  ;;  %v1101_v47 = vmul.f32 %v2101_v13, %v2101_v13 }
 0x167   : > { %v1102_v6 = vmul.f32 %v2108_v33, %v2108_v33  ;;  %v1103_v49 = vmul.f32 %v2111_v38, %v2111_v38  ;;  %v1099_v32 = vmul.f32 %v2103_v15, %v2103_v15  ;;  %v1104_v40 = vmul.f32 %v2113_v39, %v2113_v39 }
 0x168   : > { %v1153_v27 = vadd.f32 %v1152_v2, %v1083_v17  ;;  %v1105_v51 = vmul.f32 %v2115_v45, %v2115_v45  ;;  %v1100_v52 = vmul.f32 %v2097_v5, %v2097_v5  ;;  %v1106_v55 = vmul.f32 %v2119_v59, %v2119_v59 }
 0x169   : > { %v1107_v56 = vmul.f32 %v2121_v1, %v2121_v1  ;;  %v1108_v57 = vadd.f32 %v1101_v47, %v1094_v34  ;;  %v1109_v60 = vadd.f32 %v1102_v6, %v1095_v35  ;;  %v1110_v63 = vadd.f32 %v1103_v49, %v1096_v41 }
 0x16a   : > { %v1154_v58 = vadd.f32 %v1153_v27, %v1084_v31  ;;  %v1111_v0 = vadd.f32 %v1104_v40, %v1097_v42  ;;  %v1112_v3 = vadd.f32 %v1105_v51, %v1098_v62  ;;  %v1115_v26 = vmul.f32 %v2127_v20, %v2127_v20 }
 0x16b   : > { %v1116_v4 = vmul.f32 %v2131_v29, %v2131_v29  ;;  %v1117_v9 = vmul.f32 %v2141_v48, %v2141_v48  ;;  %v1118_v14 = vmul.f32 %v2147_v61, %v2147_v61  ;;  %v1119_v12 = vmul.f32 %v2161_v24, %v2161_v24 }
 0x16c   : > { %v1155_v11 = vadd.f32 %v1154_v58, %v1085_v28  ;;  %v1120_v17 = vmul.f32 %v2163_v30, %v2163_v30  ;;  %v1121_v31 = vmul.f32 %v2167_v44, %v2167_v44  ;;  %v1122_v21 = vmul.f32 %v2169_v7, %v2169_v7 }
 0x16d   : > { %v1123_v22 = vmul.f32 %v2133_v36, %v2133_v36  ;;  %v1124_v19 = vmul.f32 %v2136_v43, %v2136_v43  ;;  %v1125_v34 = vmul.f32 %v2154_v16, %v2154_v16  ;;  %v1126_v35 = vmul.f32 %v2159_v23, %v2159_v23 }
 0x16e   : > { %v1156_v28 = vadd.f32 %v1155_v11, %v1093_v37  ;;  %v1127_v2 = vmul.f32 %v2151_v8, %v2151_v8  ;;  %v1128_v41 = vmul.f32 %v2156_v18, %v2156_v18  ;;  %v1129_v42 = vadd.f32 %v1122_v21, %v1115_v26 }
 0x16f   : > { %v1130_v62 = vadd.f32 %v1123_v22, %v1116_v4  ;;  %v1131_v47 = vadd.f32 %v1124_v19, %v1117_v9  ;;  %v1114_v49 = vadd.f32 %v1107_v56, %v1100_v52  ;;  %v1132_v27 = vadd.f32 %v1125_v34, %v1118_v14  ;;  %v1165_v19 = vld [vmem:[#allocation3] sm:$0x1] }
 0x170   : > { %v1157_v6 = vrot.slane %v1156_v28, 4  ;;  %v1133_v40 = vadd.f32 %v1126_v35, %v1119_v12  ;;  %v1135_v37 = vadd.f32 %v1128_v41, %v1121_v31  ;;  %v1136_v51 = vadd.f32 %v1129_v42, %v1108_v57 }
 0x171   : > { %v1137_v58 = vadd.f32 %v1130_v62, %v1109_v60  ;;  %v1138_v11 = vadd.f32 %v1131_v47, %v1110_v63  ;;  %v1113_v1 = vadd.f32 %v1106_v55, %v1099_v32  ;;  %v1134_v5 = vadd.f32 %v1127_v2, %v1120_v17 }
 0x172   : > { %v1158_v44 = vadd.f32 %v1157_v6, %v1156_v28  ;;  %v1139_v23 = vadd.f32 %v1132_v27, %v1111_v0  ;;  %v1818_v24 = vmov 0   ;;  %v1140_v32 = vadd.f32 %v1133_v40, %v1112_v3  ;;  %v1150_v0 = vld [vmem:[#allocation2] sm:$0x1] }
 0x173   : > { %v1166_v30 = vadd.f32 %v1137_v58, %v1136_v51  ;;  %1180 = vst [vmem:[%s2405_s5] sm:$0xf] %v1818_v24  ;;  %1181 = vst [vmem:[%s2405_s5 + $0x4] sm:$0xf] %v1818_v24  ;;  %v1142_v52 = vadd.f32 %v1135_v37, %v1114_v49  ;;  %v1141_v57 = vadd.f32 %v1134_v5, %v1113_v1 }
 0x174   : > { %v1159_v8 = vrot.slane %v1158_v44, 2  ;;  %1182 = vst [vmem:[%s2405_s5 + $0x8] sm:$0xf] %v1818_v24  ;;  %1183 = vst [vmem:[%s2405_s5 + $0xc] sm:$0xf] %v1818_v24 }
 0x175   : > { %1184 = vst [vmem:[%s2405_s5 + $0x10] sm:$0xf] %v1818_v24  ;;  %1185 = vst [vmem:[%s2405_s5 + $0x14] sm:$0xf] %v1818_v24  ;;  %v1167_v55 = vadd.f32 %v1166_v30, %v1138_v11  ;;  %v1149_v26 = vmul.f32 %v2202_v25, %v1142_v52 }
 0x176   : > { %1186 = vst [vmem:[%s2405_s5 + $0x18] sm:$0xf] %v1818_v24  ;;  %v1160_v56 = vadd.f32 %v1159_v8, %v1158_v44 }
 0x177   : > { %v1168_v60 = vadd.f32 %v1167_v55, %v1139_v23 }
 0x178   : > { %v1161_v63 = vrot.slane %v1160_v56, 1 }
 0x179   : > { %v1169_v4 = vadd.f32 %v1168_v60, %v1140_v32 }
 0x17a   : > { %v1162_v9 = vadd.f32 %v1161_v63, %v1160_v56 }
 0x17b   : > { %v1170_v14 = vadd.f32 %v1169_v4, %v1141_v57 }
 0x17c   : > { %v1163_v12 = vadd.f32 %v1162_v9, %v1150_v0 }
 0x17d   : > { %v1171_v17 = vadd.f32 %v1170_v14, %v1149_v26 }
 0x17e   : > { %1164 = vst [vmem:[#allocation2] sm:$0x1] %v1163_v12 }
 0x17f   : > { %v1172_v31 = vrot.slane %v1171_v17, 4 }
 0x181   : > { %v1173_v21 = vadd.f32 %v1172_v31, %v1171_v17 }
 0x183   : > { %v1174_v22 = vrot.slane %v1173_v21, 2 }
 0x185   : > { %v1175_v24 = vadd.f32 %v1174_v22, %v1173_v21 }
 0x187   : > { %v1176_v3 = vrot.slane %v1175_v24, 1 }
 0x189   : > { %v1177_v30 = vadd.f32 %v1176_v3, %v1175_v24 }
 0x18b   : > { %v1178_v8 = vadd.f32 %v1177_v30, %v1165_v19 }
 0x18d   : > { %1179 = vst [vmem:[#allocation3] sm:$0x1] %v1178_v8 }
 0x18e PF: > { %p1187_p6 = scmp.eq.s32.totalorder %s1806_s18, 1 }
 0x18f   : > { %v1192_v5 = vld [vmem:[#allocation2] sm:$0x1] (%p1187_p6) }
 0x190   : > { %1191 = sbr.rel (!%p1187_p6) target bundleno = 429 (0x1ad), region = 52  ;;  %v1193_v23 = vmul.f32 (%p1187_p6), 0.005, %v1192_v5  ;;  %v1200_v35 = vld [vmem:[%s2403_s3] sm:$0x1] (%p1187_p6) }
 0x191   : > { %v1203_v42 = vld [vmem:[%s2404_s4] sm:$0x1] (%p1187_p6) }
 0x192   : > { %v1196_v25 = vmul.f32 (%p1187_p6), %v1193_v23, %v1193_v23 }
 0x194   : > { %v1194_v1 = vld [vmem:[#allocation3] sm:$0x1] (%p1187_p6) }
 0x195   : > { %v1195_v44 = vmul.f32 (%p1187_p6), 0.005, %v1194_v1 }
 0x197   : > { %v1197_v28 = vsub.f32 %v1195_v44, %v1196_v25 }
 0x199   : > { %v1198_v34 = vadd.f32 1e-05, %v1197_v28 }
 0x19b   : > { %1790 = vrsqrt.f32 %v1198_v34 }
 0x1a5   : > { %v1791_v2 = vpop.eup %1790 }
 0x1a6   : > { %v1201_v41 = vmul.f32 %v1791_v2, %v1200_v35 }
 0x1a8   : > { %1202 = vst [vmem:[#allocation4] sm:$0x1] %v1201_v41  ;;  %v1204_v62 = vmul.f32 %v1201_v41, %v1193_v23 }
 0x1aa   : > { %v1205_v47 = vsub.f32 %v1203_v42, %v1204_v62 }
 0x1ac   : > { %1206 = vst [vmem:[#allocation5] sm:$0x1] %v1205_v47 }
 0x1ad PF: > { %p1485_p7 = scmp.ne.s32.totalorder %s1806_s18, 1 }
 0x1ae   : > { %v2421_v44 = vld [vmem:[#allocation11_spill] sm:$0xff] (!%p1485_p7)  ;;  %v2422_v42 = vld [vmem:[#allocation9_spill] sm:$0xff] (!%p1485_p7) }
 0x1af   : > { %1209 = sbr.rel (%p1485_p7) target bundleno = 459 (0x1cb), region = 56  ;;  %v2291_v6 = vld [vmem:[#allocation4] ss:$0 sm:$0xff] (!%p1485_p7) }
 0x1b0   : > { %v1218_v27 = vmul.f32 (!%p1485_p7), %v2291_v6, %v2087_v50  ;;  %v1219_v40 = vmul.f32 (!%p1485_p7), %v2291_v6, %v2091_v54  ;;  %v1238_v37 = vmul.f32 (!%p1485_p7), %v2291_v6, %v2101_v13  ;;  %v1239_v51 = vmul.f32 (!%p1485_p7), %v2291_v6, %v2108_v33 }
 0x1b1   : > { %v1259_v58 = vmul.f32 (!%p1485_p7), %v2291_v6, %v2127_v20  ;;  %v1260_v11 = vmul.f32 (!%p1485_p7), %v2291_v6, %v2131_v29  ;;  %v1273_v32 = vmul.f32 (!%p1485_p7), %v2291_v6, %v2169_v7  ;;  %v1274_v50 = vmul.f32 (!%p1485_p7), %v2291_v6, %v2133_v36 }
 0x1b2   : > { %v1220_v36 = vmul.f32 (!%p1485_p7), %v2291_v6, %v2085_v46  ;;  %v1221_v60 = vmul.f32 (!%p1485_p7), %v2291_v6, %v2089_v53  ;;  %v1240_v26 = vmul.f32 (!%p1485_p7), %v2291_v6, %v2111_v38  ;;  %v1241_v4 = vmul.f32 (!%p1485_p7), %v2291_v6, %v2113_v39 }
 0x1b3   : > { %v2293_v49 = vld [vmem:[#allocation5] ss:$0 sm:$0xff] (!%p1485_p7)  ;;  %v1261_v12 = vmul.f32 (!%p1485_p7), %v2291_v6, %v2141_v48  ;;  %v1262_v46 = vmul.f32 (!%p1485_p7), %v2291_v6, %v2147_v61  ;;  %v1275_v22 = vmul.f32 (!%p1485_p7), %v2291_v6, %v2136_v43  ;;  %v1276_v24 = vmul.f32 (!%p1485_p7), %v2291_v6, %v2154_v16 }
 0x1b4   : > { %v1231_v54 = vadd.f32 (!%p1485_p7), %v2293_v49, %v1218_v27  ;;  %v1232_v52 = vadd.f32 (!%p1485_p7), %v2293_v49, %v1219_v40  ;;  %v1245_v13 = vadd.f32 (!%p1485_p7), %v2293_v49, %v1238_v37  ;;  %v1246_v33 = vadd.f32 (!%p1485_p7), %v2293_v49, %v1239_v51  ;;  %v2423_v40 = vld [vmem:[#allocation8_spill] sm:$0xff] (!%p1485_p7) }
 0x1b5   : > { %v1266_v55 = vadd.f32 (!%p1485_p7), %v2293_v49, %v1259_v58  ;;  %v1267_v20 = vadd.f32 (!%p1485_p7), %v2293_v49, %v1260_v11  ;;  %v1280_v29 = vadd.f32 (!%p1485_p7), %v2293_v49, %v1273_v32  ;;  %v1281_v56 = vadd.f32 (!%p1485_p7), %v2293_v49, %v1274_v50  ;;  %v2424_v11 = vld [vmem:[#allocation6_spill] sm:$0xff] (!%p1485_p7)  ;;  %v2425_v50 = vld [vmem:[#allocation7_spill] sm:$0xff] (!%p1485_p7) }
 0x1b6   : > { %v1252_v7 = vmax.f32 %v1231_v54, %v1245_v13  ;;  %v1253_v57 = vmax.f32 %v1232_v52, %v1246_v33  ;;  %v1233_v9 = vadd.f32 %v2293_v49, %v1220_v36  ;;  %v1234_v14 = vadd.f32 %v2293_v49, %v1221_v60  ;;  %v2426_v33 = vld [vmem:[#allocation12_spill] sm:$0xff] }
 0x1b7   : > { %v1287_v63 = vmax.f32 %v1266_v55, %v1280_v29  ;;  %v1288_v0 = vmax.f32 %v1267_v20, %v1281_v56  ;;  %v1247_v31 = vadd.f32 %v2293_v49, %v1240_v26  ;;  %v1248_v21 = vadd.f32 %v2293_v49, %v1241_v4 }
 0x1b8   : > { %v1268_v38 = vadd.f32 %v2293_v49, %v1261_v12  ;;  %v1269_v39 = vadd.f32 %v2293_v49, %v1262_v46  ;;  %v1222_v61 = vmul.f32 %v2291_v6, %v2099_v10  ;;  %v1282_v30 = vadd.f32 %v2293_v49, %v1275_v22  ;;  %v2420_v10 = vld [vmem:[#allocation10_spill] sm:$0xff] }
 0x1b9   : > { %v1294_v17 = vmax.f32 %v1252_v7, %v1287_v63  ;;  %v1295_v53 = vmax.f32 %v1253_v57, %v1288_v0  ;;  %v1254_v3 = vmax.f32 %v1233_v9, %v1247_v31  ;;  %v1255_v19 = vmax.f32 %v1234_v14, %v1248_v21 }
 0x1ba   : > { %v1283_v8 = vadd.f32 %v2293_v49, %v1276_v24  ;;  %v1223_v5 = vmul.f32 %v2291_v6, %v2103_v15  ;;  %v1242_v1 = vmul.f32 %v2291_v6, %v2115_v45  ;;  %v1235_v43 = vadd.f32 %v2293_v49, %v1222_v61 }
 0x1bb   : > { %v1511_v48 = vpack.c.bf16 %v1295_v53, %v1294_v17  ;;  %v1243_v16 = vmul.f32 %v2291_v6, %v2119_v59  ;;  %v1263_v23 = vmul.f32 %v2291_v6, %v2420_v10  ;;  %v1264_v25 = vmul.f32 %v2291_v6, %v2421_v44 }
 0x1bc   : > { %v1289_v28 = vmax.f32 %v1268_v38, %v1282_v30  ;;  %v1290_v15 = vmax.f32 %v1269_v39, %v1283_v8  ;;  %v1236_v34 = vadd.f32 %v2293_v49, %v1223_v5  ;;  %v1249_v45 = vadd.f32 %v2293_v49, %v1242_v1 }
 0x1bd   : > { %1512 = vst [vmem:[%s2405_s5] sm:$0xff] %v1511_v48   ;;  %v1250_v35 = vadd.f32 %v2293_v49, %v1243_v16  ;;  %v1270_v2 = vadd.f32 %v2293_v49, %v1263_v23  ;;  %v1271_v41 = vadd.f32 %v2293_v49, %v1264_v25  ;;  %v1277_v59 = vmul.f32 %v2291_v6, %v2422_v42 }
 0x1be   : > { %v1296_v62 = vmax.f32 %v1254_v3, %v1289_v28  ;;  %v1297_v47 = vmax.f32 %v1255_v19, %v1290_v15  ;;  %v1256_v27 = vmax.f32 %v1235_v43, %v1249_v45  ;;  %v1278_v37 = vmul.f32 %v2291_v6, %v2423_v40 }
 0x1bf   : > { %v1257_v51 = vmax.f32 %v1236_v34, %v1250_v35  ;;  %v1284_v58 = vadd.f32 %v2293_v49, %v1277_v59  ;;  %v1224_v32 = vmul.f32 %v2291_v6, %v2424_v11  ;;  %v1244_v54 = vmul.f32 %v2291_v6, %v2425_v50 }
 0x1c0   : > { %v1516_v52 = vpack.c.bf16 %v1297_v47, %v1296_v62  ;;  %v1285_v13 = vadd.f32 %v2293_v49, %v1278_v37  ;;  %v1265_v55 = vmul.f32 %v2291_v6, %v2426_v33  ;;  %v1279_v20 = vmul.f32 %v2291_v6, %v2156_v18 }
 0x1c1   : > { %v1291_v29 = vmax.f32 %v1270_v2, %v1284_v58  ;;  %v1237_v56 = vadd.f32 %v2293_v49, %v1224_v32  ;;  %v1251_v7 = vadd.f32 %v2293_v49, %v1244_v54 }
 0x1c2   : > { %1523 = vst [vmem:[%s2405_s5 + $0x8] sm:$0xff] %v1516_v52   ;;  %v1292_v57 = vmax.f32 %v1271_v41, %v1285_v13  ;;  %v1272_v36 = vadd.f32 %v2293_v49, %v1265_v55  ;;  %v1286_v60 = vadd.f32 %v2293_v49, %v1279_v20 }
 0x1c3   : > { %v1298_v63 = vmax.f32 %v1256_v27, %v1291_v29  ;;  %v1258_v0 = vmax.f32 %v1237_v56, %v1251_v7 }
 0x1c4   : > { %v1299_v26 = vmax.f32 %v1257_v51, %v1292_v57  ;;  %v1293_v4 = vmax.f32 %v1272_v36, %v1286_v60 }
 0x1c6   : > { %v1521_v9 = vpack.c.bf16 %v1299_v26, %v1298_v63  ;;  %v1300_v18 = vmax.f32 %v1258_v0, %v1293_v4 }
 0x1c8   : > { %1524 = vst [vmem:[%s2405_s5 + $0x10] sm:$0xff] %v1521_v9   ;;  %v1507_v6 = vpack.c.bf16 %v1300_v18, %v1300_v18 }
 0x1ca   : > { %1336 = vst [vmem:[%s2405_s5 + $0x18] sm:$0xf] %v1507_v6 }
 0x1cb PF: > { %s15_s20 = sadd.s32 1, %s1814_s20   ;;  %s2427_s18 = smov %s1810_s19 }
 0x1cc   : > { %p12_p8 = scmp.ge.s32.totalorder %s15_s20, 4   ;;  %s2428_s19 = smov %s2430_s21 }
 0x1ce   :  { %14 = sbr.rel (!%p12_p8) target bundleno = 2 (0x2), region = 86 }

// kernel: network_forward.5
= control target key start
LH: loop header
LB: loop body
LE: loop exit
PB: predicated region body
PF: predicated region fallthrough
CT: control target
= control target key end

     0   :  { %12 = vsyncpa [#allocation4], 0  ;;  %s3388_s24 = smov 0   ;;  %s3830_s0 = inlined_call_operand.vmem [shape: bf16[2,2,800], index: 0, kind: input, shape index: {}]   ;;  %s3831_s1 = inlined_call_operand.vmem [shape: bf16[1600,512], index: 1, kind: input, shape index: {}]   ;;  %s3832_s2 = inlined_call_operand.vmem [shape: f32[1,512], index: 2, kind: input, shape index: {}]   ;;  %s3833_s3 = inlined_call_operand.vmem [shape: f32[1,512], index: 3, kind: input, shape index: {}]   ;;  %s3834_s4 = inlined_call_operand.vmem [shape: f32[1,512], index: 4, kind: input, shape index: {}]   ;;  %s3835_s5 = inlined_call_operand.vmem [shape: bf16[512,128], index: 5, kind: input, shape index: {}]   ;;  %s3836_s6 = inlined_call_operand.vmem [shape: f32[1,128], index: 6, kind: input, shape index: {}]   ;;  %s3837_s7 = inlined_call_operand.hbm [shape: f32[2,128], index: 7, kind: output, shape index: {}]  }
   0x1 LB: > { %s3394_s25 = sadd.s32 4294967295, %s3341_s24   ;;  %p2631_p0 = scmp.ge.s32.totalorder %s3341_s24, 1  ;;  %s3341_s24 = sphi %s3388_s24, %s18_s24  }
   0x2   : > { %p244_p1 = scmp.lt.s32.totalorder %s3341_s24, 3 }
   0x4   : > { %p245_p2 = pnand %p2631_p0, %p244_p1 }
   0x5   : > { %p276_p3 = scmp.lt.s32.totalorder (!%p245_p2), %s3394_s25, 1  ;;  %s280_s26 = smul.u32 (!%p245_p2), 100, %s3394_s25 }
   0x6   : > { %248 = sbr.rel (%p245_p2) target bundleno = 765 (0x2fd), region = 48  ;;  %p2634_p5 = scmp.ne.s32.totalorder (!%p245_p2), %s3394_s25, 0 }
   0x7   : > { %p281_p4 = scmp.lt.s32.totalorder (!%p245_p2), %s280_s26, 199 }
   0xd   : > { %s277_s27 = scalar_select %p276_p3, %s3394_s25, 1 }
   0xe   : > { %s3839_s26 = smov (!%p281_p4, %s280_s26), 199  ;;  %291 = sbr.rel (%p2634_p5) target bundleno = 21 (0x15), region = 52 }
   0xf   : > { %s2944_s28 = smul.u32 7, %s277_s27  ;;  %s2875_s9 = sshll.u32 %s3839_s26, 4  ;;  %v3343_v0 = vmov (!%p2634_p5), 0.0  }
  0x10   : > { %s3409_s12 = scalar_lea.vmem %s3831_s1, %s2875_s9  ;;  %292 = vst [vmem:[#allocation2] sm:$0xff] (!%p2634_p5), %v3343_v0 }
  0x11   : > { %s3404_s8 = scalar_lea.vmem %s3830_s0, %s2944_s28 }
  0x15 PF: > { %v2964_v1 = vld [vmem:[%s3409_s12 + $0x4] ss:$16 sps:$4 sm:$0xff]   ;;  %v2966_v2 = vld [vmem:[%s3409_s12 + $0xc] ss:$16 sps:$4 sm:$0xff]   ;;  %v2968_v3 = vld [vmem:[%s3409_s12] ss:$16 sps:$4 sm:$0xff]   ;;  %v500_v39 = vlaneseq }
  0x16   : > { %1554 = vmatprep.subr.bf16.mxu0 %v2964_v1  ;;  %v2969_v4 = vld [vmem:[%s3409_s12 + $0x8] ss:$16 sps:$4 sm:$0xff]   ;;  %1718 = vmatprep.subr.bf16.mxu1 %v2966_v2  ;;  %v2970_v5 = vld [vmem:[%s3409_s12 + $0x24] ss:$16 sps:$4 sm:$0xff]   ;;  %v2972_v6 = vld [vmem:[%s3409_s12 + $0x2c] ss:$16 sps:$4 sm:$0xff]  }
  0x17   : > { %1555 = vmatpush1.bf16.msra.mxu0 %v2968_v3  ;;  %1719 = vmatpush1.bf16.msra.mxu1 %v2969_v4  ;;  %v2974_v7 = vld [vmem:[%s3409_s12 + $0x20] ss:$16 sps:$4 sm:$0xff]   ;;  %v2975_v8 = vld [vmem:[%s3409_s12 + $0x28] ss:$16 sps:$4 sm:$0xff]   ;;  %v2976_v9 = vld [vmem:[%s3409_s12 + $0x44] ss:$16 sps:$4 sm:$0xff]  }
  0x18   : > { %1556 = vmatprep.subr.bf16.mxu0 %v2970_v5  ;;  %1720 = vmatprep.subr.bf16.mxu1 %v2972_v6  ;;  %v2978_v10 = vld [vmem:[%s3409_s12 + $0x4c] ss:$16 sps:$4 sm:$0xff]   ;;  %v2980_v11 = vld [vmem:[%s3409_s12 + $0x40] ss:$16 sps:$4 sm:$0xff]   ;;  %v2981_v12 = vld [vmem:[%s3409_s12 + $0x48] ss:$16 sps:$4 sm:$0xff]  }
  0x19   : > { %v2982_v13 = vld [vmem:[%s3409_s12 + $0x64] ss:$16 sps:$4 sm:$0xff]   ;;  %v2984_v14 = vld [vmem:[%s3409_s12 + $0x6c] ss:$16 sps:$4 sm:$0xff]   ;;  %v2986_v15 = vld [vmem:[%s3409_s12 + $0x60] ss:$16 sps:$4 sm:$0xff]  }
  0x1a   : > { %v2987_v16 = vld [vmem:[%s3409_s12 + $0x68] ss:$16 sps:$4 sm:$0xff]   ;;  %v2988_v17 = vld [vmem:[%s3409_s12 + $0x84] ss:$16 sps:$4 sm:$0xff]   ;;  %v2990_v18 = vld [vmem:[%s3409_s12 + $0x8c] ss:$16 sps:$4 sm:$0xff]  }
  0x1b   : > { %1557 = vmatpush1.bf16.msra.mxu0 %v2974_v7  ;;  %1721 = vmatpush1.bf16.msra.mxu1 %v2975_v8  ;;  %v2992_v19 = vld [vmem:[%s3409_s12 + $0x80] ss:$16 sps:$4 sm:$0xff]   ;;  %v2993_v20 = vld [vmem:[%s3409_s12 + $0x88] ss:$16 sps:$4 sm:$0xff]   ;;  %v2994_v21 = vld [vmem:[%s3409_s12 + $0xa4] ss:$16 sps:$4 sm:$0xff]  }
  0x1c   : > { %1558 = vmatprep.subr.bf16.mxu0 %v2976_v9  ;;  %1722 = vmatprep.subr.bf16.mxu1 %v2978_v10  ;;  %v2996_v22 = vld [vmem:[%s3409_s12 + $0xac] ss:$16 sps:$4 sm:$0xff]   ;;  %v2998_v23 = vld [vmem:[%s3409_s12 + $0xa0] ss:$16 sps:$4 sm:$0xff]   ;;  %v2999_v24 = vld [vmem:[%s3409_s12 + $0xa8] ss:$16 sps:$4 sm:$0xff]  }
  0x1d   : > { %v3000_v25 = vld [vmem:[%s3409_s12 + $0xc4] ss:$16 sps:$4 sm:$0xff]   ;;  %v3002_v26 = vld [vmem:[%s3409_s12 + $0xcc] ss:$16 sps:$4 sm:$0xff]   ;;  %v3004_v27 = vld [vmem:[%s3409_s12 + $0xc0] ss:$16 sps:$4 sm:$0xff]  }
  0x1e   : > { %v3005_v28 = vld [vmem:[%s3409_s12 + $0xc8] ss:$16 sps:$4 sm:$0xff]   ;;  %v3006_v29 = vld [vmem:[%s3409_s12 + $0xe4] ss:$16 sps:$4 sm:$0xff]   ;;  %v3008_v30 = vld [vmem:[%s3409_s12 + $0xec] ss:$16 sps:$4 sm:$0xff]  }
  0x1f   : > { %1559 = vmatpush1.bf16.msra.mxu0 %v2980_v11  ;;  %1723 = vmatpush1.bf16.msra.mxu1 %v2981_v12  ;;  %v3010_v31 = vld [vmem:[%s3409_s12 + $0xe0] ss:$16 sps:$4 sm:$0xff]   ;;  %v3011_v32 = vld [vmem:[%s3409_s12 + $0xe8] ss:$16 sps:$4 sm:$0xff]   ;;  %v3012_v33 = vld [vmem:[%s3409_s12 + $0x104] ss:$16 sps:$4 sm:$0xff]  }
  0x20   : > { %1560 = vmatprep.subr.bf16.mxu0 %v2982_v13  ;;  %1724 = vmatprep.subr.bf16.mxu1 %v2984_v14  ;;  %v3014_v34 = vld [vmem:[%s3409_s12 + $0x10c] ss:$16 sps:$4 sm:$0xff]   ;;  %v3016_v35 = vld [vmem:[%s3409_s12 + $0x100] ss:$16 sps:$4 sm:$0xff]   ;;  %v3017_v36 = vld [vmem:[%s3409_s12 + $0x108] ss:$16 sps:$4 sm:$0xff]  }
  0x21   : > { %v3344_v37 = vmov 1966171168   ;;  %v3018_v40 = vld [vmem:[%s3409_s12 + $0x124] ss:$16 sps:$4 sm:$0xff]   ;;  %v3020_v41 = vld [vmem:[%s3409_s12 + $0x12c] ss:$16 sps:$4 sm:$0xff]  }
  0x22   : > { %v498_v38 = vunpack.c.l.s4 %v3344_v37  ;;  %v3022_v42 = vld [vmem:[%s3409_s12 + $0x120] ss:$16 sps:$4 sm:$0xff]   ;;  %v3451_v44 = vshrl.u32 %v500_v39, 7  ;;  %v3023_v45 = vld [vmem:[%s3409_s12 + $0x128] ss:$16 sps:$4 sm:$0xff]   ;;  %vm1550_vm0 = vcmask 261120  }
  0x23   : > { %1561 = vmatpush1.bf16.msra.mxu0 %v2986_v15  ;;  %1725 = vmatpush1.bf16.msra.mxu1 %v2987_v16  ;;  %v3024_v46 = vld [vmem:[%s3409_s12 + $0x144] ss:$16 sps:$4 sm:$0xff]   ;;  %v3026_v47 = vld [vmem:[%s3409_s12 + $0x14c] ss:$16 sps:$4 sm:$0xff]   ;;  %v3028_v48 = vld [vmem:[%s3409_s12 + $0x140] ss:$16 sps:$4 sm:$0xff]  }
  0x24   : > { %1562 = vmatprep.subr.bf16.mxu0 %v2988_v17  ;;  %1726 = vmatprep.subr.bf16.mxu1 %v2990_v18  ;;  %v499_v43 = vunpack.c.0.s8 %v498_v38  ;;  %v3029_v49 = vld [vmem:[%s3409_s12 + $0x148] ss:$16 sps:$4 sm:$0xff]   ;;  %v3030_v51 = vld [vmem:[%s3409_s12 + $0x164] ss:$16 sps:$4 sm:$0xff]   ;;  %v3032_v52 = vld [vmem:[%s3409_s12 + $0x16c] ss:$16 sps:$4 sm:$0xff]  }
  0x25   : > { %v294_v53 = vld [vmem:[%s3404_s8] sm:$0x7f]  ;;  %v3035_v56 = vld [vmem:[%s3409_s12 + $0x168] ss:$16 sps:$4 sm:$0xff]   ;;  %v3038_v58 = vld [vmem:[%s3409_s12 + $0x18c] ss:$16 sps:$4 sm:$0xff]  }
  0x26   : > { %v502_v50 = vsub.s32 %v499_v43, %v3451_v44  ;;  %v3034_v54 = vld [vmem:[%s3409_s12 + $0x160] ss:$16 sps:$4 sm:$0xff]   ;;  %v3036_v57 = vld [vmem:[%s3409_s12 + $0x184] ss:$16 sps:$4 sm:$0xff]   ;;  %v3041_v62 = vld [vmem:[%s3409_s12 + $0x188] ss:$16 sps:$4 sm:$0xff]   ;;  %v496_v9 = vcombine.high %v294_v53, %v294_v53 }
  0x27   : > { %1563 = vmatpush1.bf16.msra.mxu0 %v2992_v19  ;;  %1727 = vmatpush1.bf16.msra.mxu1 %v2993_v20  ;;  %v3040_v60 = vld [vmem:[%s3409_s12 + $0x180] ss:$16 sps:$4 sm:$0xff]   ;;  %v3042_v63 = vld [vmem:[%s3409_s12 + $0x1a4] ss:$16 sps:$4 sm:$0xff]   ;;  %v3044_v0 = vld [vmem:[%s3409_s12 + $0x1ac] ss:$16 sps:$4 sm:$0xff]  }
  0x28   : > { %1564 = vmatprep.subr.bf16.mxu0 %v2994_v21  ;;  %1728 = vmatprep.subr.bf16.mxu1 %v2996_v22  ;;  %v503_v55 = vrot.slane %v294_v53, %v502_v50  ;;  %v3046_v1 = vld [vmem:[%s3409_s12 + $0x1a0] ss:$16 sps:$4 sm:$0xff]   ;;  %v3047_v2 = vld [vmem:[%s3409_s12 + $0x1a8] ss:$16 sps:$4 sm:$0xff]   ;;  %v3048_v3 = vld [vmem:[%s3409_s12 + $0x1c4] ss:$16 sps:$4 sm:$0xff]   ;;  %v510_v12 = vrot.slane %v496_v9, %v502_v50 }
  0x29   : > { %v3050_v4 = vld [vmem:[%s3409_s12 + $0x1cc] ss:$16 sps:$4 sm:$0xff]   ;;  %v3052_v5 = vld [vmem:[%s3409_s12 + $0x1c0] ss:$16 sps:$4 sm:$0xff]   ;;  %v3053_v6 = vld [vmem:[%s3409_s12 + $0x1c8] ss:$16 sps:$4 sm:$0xff]  }
  0x2a   : > { %v511_v59 = vcombine.high %v503_v55, %v503_v55  ;;  %v3054_v7 = vld [vmem:[%s3409_s12 + $0x1e4] ss:$16 sps:$4 sm:$0xff]   ;;  %v3056_v8 = vld [vmem:[%s3409_s12 + $0x1ec] ss:$16 sps:$4 sm:$0xff]   ;;  %v3058_v10 = vld [vmem:[%s3409_s12 + $0x1e0] ss:$16 sps:$4 sm:$0xff]   ;;  %v512_v15 = vcombine.high %v510_v12, %v510_v12  ;;  %v3483_v17 = vrot.slane %v503_v55, %v502_v50  ;;  %v3488_v20 = vrot.slane %v510_v12, %v502_v50 }
  0x2b   : > { %1565 = vmatpush1.bf16.msra.mxu0 %v2998_v23  ;;  %1729 = vmatpush1.bf16.msra.mxu1 %v2999_v24  ;;  %v3059_v11 = vld [vmem:[%s3409_s12 + $0x1e8] ss:$16 sps:$4 sm:$0xff]   ;;  %v3062_v13 = vld [vmem:[%s3409_s12 + $0x204] ss:$16 sps:$4 sm:$0xff]   ;;  %v3065_v14 = vld [vmem:[%s3409_s12 + $0x20c] ss:$16 sps:$4 sm:$0xff]  }
  0x2c   : > { %1566 = vmatprep.subr.bf16.mxu0 %v3000_v25  ;;  %1730 = vmatprep.subr.bf16.mxu1 %v3002_v26  ;;  %v533_v61 = vrot.slane %v511_v59, %v502_v50  ;;  %v3060_v16 = vld [vmem:[%s3409_s12 + $0x200] ss:$16 sps:$4 sm:$0xff]   ;;  %v3063_v18 = vld [vmem:[%s3409_s12 + $0x208] ss:$16 sps:$4 sm:$0xff]   ;;  %v3486_v19 = vrot.slane %v512_v15, %v502_v50  ;;  %v3068_v21 = vld [vmem:[%s3409_s12 + $0x224] ss:$16 sps:$4 sm:$0xff]  }
  0x2d   : > { %v3071_v22 = vld [vmem:[%s3409_s12 + $0x22c] ss:$16 sps:$4 sm:$0xff]   ;;  %v3066_v24 = vld [vmem:[%s3409_s12 + $0x220] ss:$16 sps:$4 sm:$0xff]   ;;  %v3069_v25 = vld [vmem:[%s3409_s12 + $0x228] ss:$16 sps:$4 sm:$0xff]  }
  0x2e   : > { %1586 = vmatprep.mubr.bf16.mxu0 %v533_v61  ;;  %1750 = vmatprep.mubr.bf16.mxu1 %v533_v61  ;;  %v543_v23 = vcombine.high %v533_v61, %v533_v61  ;;  %v3074_v26 = vld [vmem:[%s3409_s12 + $0x244] ss:$16 sps:$4 sm:$0xff]   ;;  %v3087_v37 = vld [vmem:[%s3409_s12 + $0x288] ss:$16 sps:$4 sm:$0xff]   ;;  %v3095_v39 = vld [vmem:[%s3409_s12 + $0x2ac] ss:$16 sps:$4 sm:$0xff]  }
  0x2f   : > { %1567 = vmatpush1.bf16.msra.mxu0 %v3004_v27  ;;  %1731 = vmatpush1.bf16.msra.mxu1 %v3005_v28  ;;  %v3077_v27 = vld [vmem:[%s3409_s12 + $0x24c] ss:$16 sps:$4 sm:$0xff]   ;;  %v3072_v28 = vld [vmem:[%s3409_s12 + $0x240] ss:$16 sps:$4 sm:$0xff]   ;;  %v3092_v38 = vld [vmem:[%s3409_s12 + $0x2a4] ss:$16 sps:$4 sm:$0xff]  }
  0x30   : > { %1568 = vmatprep.subr.bf16.mxu0 %v3006_v29  ;;  %1732 = vmatprep.subr.bf16.mxu1 %v3008_v30  ;;  %v3075_v29 = vld [vmem:[%s3409_s12 + $0x248] ss:$16 sps:$4 sm:$0xff]   ;;  %v3080_v30 = vld [vmem:[%s3409_s12 + $0x264] ss:$16 sps:$4 sm:$0xff]   ;;  %v3101_v43 = vld [vmem:[%s3409_s12 + $0x2cc] ss:$16 sps:$4 sm:$0xff]  }
  0x31   : > { %v3105_v50 = vld [vmem:[%s3409_s12 + $0x2e8] ss:$16 sps:$4 sm:$0xff]   ;;  %v3108_v53 = vld [vmem:[%s3409_s12 + $0x300] ss:$16 sps:$4 sm:$0xff]   ;;  %v3116_v55 = vld [vmem:[%s3409_s12 + $0x324] ss:$16 sps:$4 sm:$0xff]  }
  0x32   : > { %v3122_v59 = vld [vmem:[%s3409_s12 + $0x344] ss:$16 sps:$4 sm:$0xff]   ;;  %v3120_v61 = vld [vmem:[%s3409_s12 + $0x340] ss:$16 sps:$4 sm:$0xff]   ;;  %v3149_v12 = vld [vmem:[%s3409_s12 + $0x3cc] ss:$16 sps:$4 sm:$0xff]  }
  0x33   : > { %1569 = vmatpush1.bf16.msra.mxu0 %v3010_v31  ;;  %1733 = vmatpush1.bf16.msra.mxu1 %v3011_v32  ;;  %v3083_v31 = vld [vmem:[%s3409_s12 + $0x26c] ss:$16 sps:$4 sm:$0xff]   ;;  %v3078_v32 = vld [vmem:[%s3409_s12 + $0x260] ss:$16 sps:$4 sm:$0xff]   ;;  %v3152_v15 = vld [vmem:[%s3409_s12 + $0x3e4] ss:$16 sps:$4 sm:$0xff]  }
  0x34   : > { %1570 = vmatprep.subr.bf16.mxu0 %v3012_v33  ;;  %1734 = vmatprep.subr.bf16.mxu1 %v3014_v34  ;;  %v3081_v33 = vld [vmem:[%s3409_s12 + $0x268] ss:$16 sps:$4 sm:$0xff]   ;;  %v3086_v34 = vld [vmem:[%s3409_s12 + $0x284] ss:$16 sps:$4 sm:$0xff]   ;;  %v3138_v9 = vld [vmem:[%s3409_s12 + $0x3a0] ss:$16 sps:$4 sm:$0xff]  }
  0x35   : > { %p2837_p6 = scmp.ne.s32.totalorder %s3394_s25, 1 }
  0x36   : > { %vm1970_vm1 = vcmask (!%p2837_p6), 1041408  }
  0x37   : > { %1571 = vmatpush1.bf16.msra.mxu0 %v3016_v35  ;;  %1735 = vmatpush1.bf16.msra.mxu1 %v3017_v36  ;;  %v3089_v35 = vld [vmem:[%s3409_s12 + $0x28c] ss:$16 sps:$4 sm:$0xff]   ;;  %v3084_v36 = vld [vmem:[%s3409_s12 + $0x280] ss:$16 sps:$4 sm:$0xff]  }
  0x38   : > { %1572 = vmatprep.subr.bf16.mxu0 %v3018_v40  ;;  %1736 = vmatprep.subr.bf16.mxu1 %v3020_v41  ;;  %v3090_v40 = vld [vmem:[%s3409_s12 + $0x2a0] ss:$16 sps:$4 sm:$0xff]   ;;  %v3093_v41 = vld [vmem:[%s3409_s12 + $0x2a8] ss:$16 sps:$4 sm:$0xff]  }
  0x3b   : > { %1573 = vmatpush1.bf16.msra.mxu0 %v3022_v42  ;;  %1737 = vmatpush1.bf16.msra.mxu1 %v3023_v45  ;;  %v3098_v42 = vld [vmem:[%s3409_s12 + $0x2c4] ss:$16 sps:$4 sm:$0xff]   ;;  %v3096_v45 = vld [vmem:[%s3409_s12 + $0x2c0] ss:$16 sps:$4 sm:$0xff]  }
  0x3c   : > { %1574 = vmatprep.subr.bf16.mxu0 %v3024_v46  ;;  %1738 = vmatprep.subr.bf16.mxu1 %v3026_v47  ;;  %v3099_v46 = vld [vmem:[%s3409_s12 + $0x2c8] ss:$16 sps:$4 sm:$0xff]   ;;  %v3104_v47 = vld [vmem:[%s3409_s12 + $0x2e4] ss:$16 sps:$4 sm:$0xff]  }
  0x3f   : > { %1575 = vmatpush1.bf16.msra.mxu0 %v3028_v48  ;;  %1739 = vmatpush1.bf16.msra.mxu1 %v3029_v49  ;;  %v3107_v48 = vld [vmem:[%s3409_s12 + $0x2ec] ss:$16 sps:$4 sm:$0xff]   ;;  %v3102_v49 = vld [vmem:[%s3409_s12 + $0x2e0] ss:$16 sps:$4 sm:$0xff]  }
  0x40   : > { %1576 = vmatprep.subr.bf16.mxu0 %v3030_v51  ;;  %1740 = vmatprep.subr.bf16.mxu1 %v3032_v52  ;;  %v3110_v51 = vld [vmem:[%s3409_s12 + $0x304] ss:$16 sps:$4 sm:$0xff]   ;;  %v3113_v52 = vld [vmem:[%s3409_s12 + $0x30c] ss:$16 sps:$4 sm:$0xff]  }
  0x43   : > { %1577 = vmatpush1.bf16.msra.mxu0 %v3034_v54  ;;  %1741 = vmatpush1.bf16.msra.mxu1 %v3035_v56  ;;  %v3111_v54 = vld [vmem:[%s3409_s12 + $0x308] ss:$16 sps:$4 sm:$0xff]   ;;  %v3119_v56 = vld [vmem:[%s3409_s12 + $0x32c] ss:$16 sps:$4 sm:$0xff]  }
  0x44   : > { %1578 = vmatprep.subr.bf16.mxu0 %v3036_v57  ;;  %1742 = vmatprep.subr.bf16.mxu1 %v3038_v58  ;;  %v3114_v57 = vld [vmem:[%s3409_s12 + $0x320] ss:$16 sps:$4 sm:$0xff]   ;;  %v3117_v58 = vld [vmem:[%s3409_s12 + $0x328] ss:$16 sps:$4 sm:$0xff]  }
  0x47   : > { %1579 = vmatpush1.bf16.msra.mxu0 %v3040_v60  ;;  %1743 = vmatpush1.bf16.msra.mxu1 %v3041_v62  ;;  %v3125_v60 = vld [vmem:[%s3409_s12 + $0x34c] ss:$16 sps:$4 sm:$0xff]   ;;  %v3123_v62 = vld [vmem:[%s3409_s12 + $0x348] ss:$16 sps:$4 sm:$0xff]  }
  0x48   : > { %1580 = vmatprep.subr.bf16.mxu0 %v3042_v63  ;;  %1744 = vmatprep.subr.bf16.mxu1 %v3044_v0  ;;  %v3128_v63 = vld [vmem:[%s3409_s12 + $0x364] ss:$16 sps:$4 sm:$0xff]   ;;  %v3131_v0 = vld [vmem:[%s3409_s12 + $0x36c] ss:$16 sps:$4 sm:$0xff]  }
  0x4b   : > { %1581 = vmatpush1.bf16.msra.mxu0 %v3046_v1  ;;  %1745 = vmatpush1.bf16.msra.mxu1 %v3047_v2  ;;  %v3126_v1 = vld [vmem:[%s3409_s12 + $0x360] ss:$16 sps:$4 sm:$0xff]   ;;  %v3129_v2 = vld [vmem:[%s3409_s12 + $0x368] ss:$16 sps:$4 sm:$0xff]  }
  0x4c   : > { %1582 = vmatprep.subr.bf16.mxu0 %v3048_v3  ;;  %1746 = vmatprep.subr.bf16.mxu1 %v3050_v4  ;;  %v3134_v3 = vld [vmem:[%s3409_s12 + $0x384] ss:$16 sps:$4 sm:$0xff]   ;;  %v3137_v4 = vld [vmem:[%s3409_s12 + $0x38c] ss:$16 sps:$4 sm:$0xff]  }
  0x4f   : > { %1583 = vmatpush1.bf16.msra.mxu0 %v3052_v5  ;;  %1747 = vmatpush1.bf16.msra.mxu1 %v3053_v6  ;;  %v3132_v5 = vld [vmem:[%s3409_s12 + $0x380] ss:$16 sps:$4 sm:$0xff]   ;;  %v3135_v6 = vld [vmem:[%s3409_s12 + $0x388] ss:$16 sps:$4 sm:$0xff]  }
  0x50   : > { %1584 = vmatprep.subr.bf16.mxu0 %v3054_v7  ;;  %1748 = vmatprep.subr.bf16.mxu1 %v3056_v8  ;;  %v3140_v7 = vld [vmem:[%s3409_s12 + $0x3a4] ss:$16 sps:$4 sm:$0xff]   ;;  %v3143_v8 = vld [vmem:[%s3409_s12 + $0x3ac] ss:$16 sps:$4 sm:$0xff]  }
  0x53   : > { %1585 = vmatpush1.bf16.msra.mxu0 %v3058_v10  ;;  %1749 = vmatpush1.bf16.msra.mxu1 %v3059_v11  ;;  %v3141_v10 = vld [vmem:[%s3409_s12 + $0x3a8] ss:$16 sps:$4 sm:$0xff]   ;;  %v3146_v11 = vld [vmem:[%s3409_s12 + $0x3c4] ss:$16 sps:$4 sm:$0xff]  }
  0x54   : > { %1595 = vmatprep.subr.bf16.mxu0 %v3062_v13  ;;  %1759 = vmatprep.subr.bf16.mxu1 %v3065_v14  ;;  %v3144_v13 = vld [vmem:[%s3409_s12 + $0x3c0] ss:$16 sps:$4 sm:$0xff]   ;;  %v3147_v14 = vld [vmem:[%s3409_s12 + $0x3c8] ss:$16 sps:$4 sm:$0xff]  }
  0x56   : > { %1587 = vmatmul.mubr.bf16.vlgmr.msra.gmra.mrb[0].mxu0 %v3483_v17  ;;  %1751 = vmatmul.mubr.bf16.vlgmr.msra.gmra.mrb[0].mxu1 %v3483_v17 }
  0x57   : > { %1596 = vmatpush1.bf16.msra.mxu0 %v3060_v16  ;;  %1760 = vmatpush1.bf16.msra.mxu1 %v3063_v18  ;;  %v3155_v16 = vld [vmem:[%s3409_s12 + $0x3ec] ss:$16 sps:$4 sm:$0xff]   ;;  %v3150_v18 = vld [vmem:[%s3409_s12 + $0x3e0] ss:$16 sps:$4 sm:$0xff]  }
  0x58   : > { %1597 = vmatprep.subr.bf16.mxu0 %v3068_v21  ;;  %1761 = vmatprep.subr.bf16.mxu1 %v3071_v22  ;;  %v3153_v21 = vld [vmem:[%s3409_s12 + $0x3e8] ss:$16 sps:$4 sm:$0xff]   ;;  %v3158_v22 = vld [vmem:[%s3409_s12 + $0x404] ss:$16 sps:$4 sm:$0xff]  }
  0x59   : > { %1627 = vmatprep.mubr.bf16.mxu0 %v543_v23  ;;  %1791 = vmatprep.mubr.bf16.mxu1 %v543_v23  ;;  %v3161_v23 = vld [vmem:[%s3409_s12 + $0x40c] ss:$16 sps:$4 sm:$0xff]  }
  0x5b   : > { %1598 = vmatpush1.bf16.msra.mxu0 %v3066_v24  ;;  %1762 = vmatpush1.bf16.msra.mxu1 %v3069_v25  ;;  %v3156_v24 = vld [vmem:[%s3409_s12 + $0x400] ss:$16 sps:$4 sm:$0xff]   ;;  %v541_v25 = vcombine.high %v3483_v17, %v3483_v17  ;;  %v3170_v17 = vld [vmem:[%s3409_s12 + $0x444] ss:$16 sps:$4 sm:$0xff]  }
  0x5c   : > { %1599 = vmatprep.subr.bf16.mxu0 %v3074_v26  ;;  %1763 = vmatprep.subr.bf16.mxu1 %v3077_v27  ;;  %v3159_v26 = vld [vmem:[%s3409_s12 + $0x408] ss:$16 sps:$4 sm:$0xff]   ;;  %v3164_v27 = vld [vmem:[%s3409_s12 + $0x424] ss:$16 sps:$4 sm:$0xff]  }
  0x5f   : > { %1600 = vmatpush1.bf16.msra.mxu0 %v3072_v28  ;;  %1764 = vmatpush1.bf16.msra.mxu1 %v3075_v29  ;;  %v3167_v28 = vld [vmem:[%s3409_s12 + $0x42c] ss:$16 sps:$4 sm:$0xff]   ;;  %v3162_v29 = vld [vmem:[%s3409_s12 + $0x420] ss:$16 sps:$4 sm:$0xff]  }
  0x60   : > { %1601 = vmatprep.subr.bf16.mxu0 %v3080_v30  ;;  %1765 = vmatprep.subr.bf16.mxu1 %v3083_v31  ;;  %v3165_v30 = vld [vmem:[%s3409_s12 + $0x428] ss:$16 sps:$4 sm:$0xff]   ;;  %v3173_v31 = vld [vmem:[%s3409_s12 + $0x44c] ss:$16 sps:$4 sm:$0xff]  }
  0x63   : > { %1602 = vmatpush1.bf16.msra.mxu0 %v3078_v32  ;;  %1766 = vmatpush1.bf16.msra.mxu1 %v3081_v33  ;;  %v3168_v32 = vld [vmem:[%s3409_s12 + $0x440] ss:$16 sps:$4 sm:$0xff]   ;;  %v3171_v33 = vld [vmem:[%s3409_s12 + $0x448] ss:$16 sps:$4 sm:$0xff]  }
  0x64   : > { %1603 = vmatprep.subr.bf16.mxu0 %v3086_v34  ;;  %1767 = vmatprep.subr.bf16.mxu1 %v3089_v35  ;;  %v3176_v34 = vld [vmem:[%s3409_s12 + $0x464] ss:$16 sps:$4 sm:$0xff]   ;;  %v3179_v35 = vld [vmem:[%s3409_s12 + $0x46c] ss:$16 sps:$4 sm:$0xff]  }
  0x67   : > { %1604 = vmatpush1.bf16.msra.mxu0 %v3084_v36  ;;  %1768 = vmatpush1.bf16.msra.mxu1 %v3087_v37  ;;  %v3174_v36 = vld [vmem:[%s3409_s12 + $0x460] ss:$16 sps:$4 sm:$0xff]   ;;  %v3177_v37 = vld [vmem:[%s3409_s12 + $0x468] ss:$16 sps:$4 sm:$0xff]  }
  0x68   : > { %1605 = vmatprep.subr.bf16.mxu0 %v3092_v38  ;;  %1769 = vmatprep.subr.bf16.mxu1 %v3095_v39  ;;  %v3185_v38 = vld [vmem:[%s3409_s12 + $0x48c] ss:$16 sps:$4 sm:$0xff]   ;;  %v3180_v39 = vld [vmem:[%s3409_s12 + $0x480] ss:$16 sps:$4 sm:$0xff]  }
  0x6b   : > { %1606 = vmatpush1.bf16.msra.mxu0 %v3090_v40  ;;  %1770 = vmatpush1.bf16.msra.mxu1 %v3093_v41  ;;  %v3183_v40 = vld [vmem:[%s3409_s12 + $0x488] ss:$16 sps:$4 sm:$0xff]   ;;  %v3188_v41 = vld [vmem:[%s3409_s12 + $0x4a4] ss:$16 sps:$4 sm:$0xff]  }
  0x6c   : > { %1607 = vmatprep.subr.bf16.mxu0 %v3098_v42  ;;  %1771 = vmatprep.subr.bf16.mxu1 %v3101_v43  ;;  %v3191_v42 = vld [vmem:[%s3409_s12 + $0x4ac] ss:$16 sps:$4 sm:$0xff]   ;;  %v3186_v43 = vld [vmem:[%s3409_s12 + $0x4a0] ss:$16 sps:$4 sm:$0xff]  }
  0x6f   : > { %1608 = vmatpush1.bf16.msra.mxu0 %v3096_v45  ;;  %1772 = vmatpush1.bf16.msra.mxu1 %v3099_v46  ;;  %v3189_v45 = vld [vmem:[%s3409_s12 + $0x4a8] ss:$16 sps:$4 sm:$0xff]   ;;  %v3194_v46 = vld [vmem:[%s3409_s12 + $0x4c4] ss:$16 sps:$4 sm:$0xff]  }
  0x70   : > { %1609 = vmatprep.subr.bf16.mxu0 %v3104_v47  ;;  %1773 = vmatprep.subr.bf16.mxu1 %v3107_v48  ;;  %v3197_v47 = vld [vmem:[%s3409_s12 + $0x4cc] ss:$16 sps:$4 sm:$0xff]   ;;  %v3192_v48 = vld [vmem:[%s3409_s12 + $0x4c0] ss:$16 sps:$4 sm:$0xff]  }
  0x73   : > { %1610 = vmatpush1.bf16.msra.mxu0 %v3102_v49  ;;  %1774 = vmatpush1.bf16.msra.mxu1 %v3105_v50  ;;  %v3195_v49 = vld [vmem:[%s3409_s12 + $0x4c8] ss:$16 sps:$4 sm:$0xff]   ;;  %v3200_v50 = vld [vmem:[%s3409_s12 + $0x4e4] ss:$16 sps:$4 sm:$0xff]  }
  0x74   : > { %1611 = vmatprep.subr.bf16.mxu0 %v3110_v51  ;;  %1775 = vmatprep.subr.bf16.mxu1 %v3113_v52  ;;  %v3203_v51 = vld [vmem:[%s3409_s12 + $0x4ec] ss:$16 sps:$4 sm:$0xff]   ;;  %v3198_v52 = vld [vmem:[%s3409_s12 + $0x4e0] ss:$16 sps:$4 sm:$0xff]  }
  0x77   : > { %1612 = vmatpush1.bf16.msra.mxu0 %v3108_v53  ;;  %1776 = vmatpush1.bf16.msra.mxu1 %v3111_v54  ;;  %v3201_v53 = vld [vmem:[%s3409_s12 + $0x4e8] ss:$16 sps:$4 sm:$0xff]   ;;  %v3206_v54 = vld [vmem:[%s3409_s12 + $0x504] ss:$16 sps:$4 sm:$0xff]  }
  0x78   : > { %1613 = vmatprep.subr.bf16.mxu0 %v3116_v55  ;;  %1777 = vmatprep.subr.bf16.mxu1 %v3119_v56  ;;  %v3209_v55 = vld [vmem:[%s3409_s12 + $0x50c] ss:$16 sps:$4 sm:$0xff]   ;;  %v3204_v56 = vld [vmem:[%s3409_s12 + $0x500] ss:$16 sps:$4 sm:$0xff]  }
  0x7b   : > { %1614 = vmatpush1.bf16.msra.mxu0 %v3114_v57  ;;  %1778 = vmatpush1.bf16.msra.mxu1 %v3117_v58  ;;  %v3207_v57 = vld [vmem:[%s3409_s12 + $0x508] ss:$16 sps:$4 sm:$0xff]   ;;  %v3212_v58 = vld [vmem:[%s3409_s12 + $0x524] ss:$16 sps:$4 sm:$0xff]  }
  0x7c   : > { %1615 = vmatprep.subr.bf16.mxu0 %v3122_v59  ;;  %1779 = vmatprep.subr.bf16.mxu1 %v3125_v60  ;;  %v3215_v59 = vld [vmem:[%s3409_s12 + $0x52c] ss:$16 sps:$4 sm:$0xff]   ;;  %v3210_v60 = vld [vmem:[%s3409_s12 + $0x520] ss:$16 sps:$4 sm:$0xff]  }
  0x7f   : > { %1616 = vmatpush1.bf16.msra.mxu0 %v3120_v61  ;;  %1780 = vmatpush1.bf16.msra.mxu1 %v3123_v62  ;;  %v3213_v61 = vld [vmem:[%s3409_s12 + $0x528] ss:$16 sps:$4 sm:$0xff]   ;;  %v3218_v62 = vld [vmem:[%s3409_s12 + $0x544] ss:$16 sps:$4 sm:$0xff]  }
  0x80   : > { %1617 = vmatprep.subr.bf16.mxu0 %v3128_v63  ;;  %1781 = vmatprep.subr.bf16.mxu1 %v3131_v0  ;;  %v3221_v63 = vld [vmem:[%s3409_s12 + $0x54c] ss:$16 sps:$4 sm:$0xff]   ;;  %v3216_v0 = vld [vmem:[%s3409_s12 + $0x540] ss:$16 sps:$4 sm:$0xff]  }
  0x83   : > { %1618 = vmatpush1.bf16.msra.mxu0 %v3126_v1  ;;  %1782 = vmatpush1.bf16.msra.mxu1 %v3129_v2  ;;  %v3219_v1 = vld [vmem:[%s3409_s12 + $0x548] ss:$16 sps:$4 sm:$0xff]   ;;  %v3224_v2 = vld [vmem:[%s3409_s12 + $0x564] ss:$16 sps:$4 sm:$0xff]  }
  0x84   : > { %1619 = vmatprep.subr.bf16.mxu0 %v3134_v3  ;;  %1783 = vmatprep.subr.bf16.mxu1 %v3137_v4  ;;  %v3227_v3 = vld [vmem:[%s3409_s12 + $0x56c] ss:$16 sps:$4 sm:$0xff]   ;;  %v3222_v4 = vld [vmem:[%s3409_s12 + $0x560] ss:$16 sps:$4 sm:$0xff]  }
  0x87   : > { %1620 = vmatpush1.bf16.msra.mxu0 %v3132_v5  ;;  %1784 = vmatpush1.bf16.msra.mxu1 %v3135_v6  ;;  %v3225_v5 = vld [vmem:[%s3409_s12 + $0x568] ss:$16 sps:$4 sm:$0xff]   ;;  %v3230_v6 = vld [vmem:[%s3409_s12 + $0x584] ss:$16 sps:$4 sm:$0xff]  }
  0x88   : > { %1621 = vmatprep.subr.bf16.mxu0 %v3140_v7  ;;  %1785 = vmatprep.subr.bf16.mxu1 %v3143_v8  ;;  %v3233_v7 = vld [vmem:[%s3409_s12 + $0x58c] ss:$16 sps:$4 sm:$0xff]   ;;  %v3228_v8 = vld [vmem:[%s3409_s12 + $0x580] ss:$16 sps:$4 sm:$0xff]  }
  0x8b   : > { %1622 = vmatpush1.bf16.msra.mxu0 %v3138_v9  ;;  %1786 = vmatpush1.bf16.msra.mxu1 %v3141_v10  ;;  %v3231_v9 = vld [vmem:[%s3409_s12 + $0x588] ss:$16 sps:$4 sm:$0xff]   ;;  %v3236_v10 = vld [vmem:[%s3409_s12 + $0x5a4] ss:$16 sps:$4 sm:$0xff]  }
  0x8c   : > { %1623 = vmatprep.subr.bf16.mxu0 %v3146_v11  ;;  %1787 = vmatprep.subr.bf16.mxu1 %v3149_v12  ;;  %v3239_v11 = vld [vmem:[%s3409_s12 + $0x5ac] ss:$16 sps:$4 sm:$0xff]   ;;  %v3234_v12 = vld [vmem:[%s3409_s12 + $0x5a0] ss:$16 sps:$4 sm:$0xff]  }
  0x8f   : > { %1624 = vmatpush1.bf16.msra.mxu0 %v3144_v13  ;;  %1788 = vmatpush1.bf16.msra.mxu1 %v3147_v14  ;;  %v3237_v13 = vld [vmem:[%s3409_s12 + $0x5a8] ss:$16 sps:$4 sm:$0xff]   ;;  %v3242_v14 = vld [vmem:[%s3409_s12 + $0x5c4] ss:$16 sps:$4 sm:$0xff]  }
  0x90   : > { %1625 = vmatprep.subr.bf16.mxu0 %v3152_v15  ;;  %1789 = vmatprep.subr.bf16.mxu1 %v3155_v16  ;;  %v3245_v15 = vld [vmem:[%s3409_s12 + $0x5cc] ss:$16 sps:$4 sm:$0xff]   ;;  %v3240_v16 = vld [vmem:[%s3409_s12 + $0x5c0] ss:$16 sps:$4 sm:$0xff]  }
  0x93   : > { %1626 = vmatpush1.bf16.msra.mxu0 %v3150_v18  ;;  %1790 = vmatpush1.bf16.msra.mxu1 %v3153_v21  ;;  %v3243_v18 = vld [vmem:[%s3409_s12 + $0x5c8] ss:$16 sps:$4 sm:$0xff]   ;;  %v3248_v21 = vld [vmem:[%s3409_s12 + $0x5e4] ss:$16 sps:$4 sm:$0xff]  }
  0x94   : > { %1636 = vmatprep.subr.bf16.mxu0 %v3158_v22  ;;  %1800 = vmatprep.subr.bf16.mxu1 %v3161_v23  ;;  %v3251_v22 = vld [vmem:[%s3409_s12 + $0x5ec] ss:$16 sps:$4 sm:$0xff]   ;;  %v3246_v23 = vld [vmem:[%s3409_s12 + $0x5e0] ss:$16 sps:$4 sm:$0xff]  }
  0x96   : > { %1628 = vmatmul.mubr.bf16.vlgmr.msra.gmra.mrb[0].mxu0 %v541_v25  ;;  %1792 = vmatmul.mubr.bf16.vlgmr.msra.gmra.mrb[0].mxu1 %v541_v25  ;;  %v3255_v25 = vld [vmem:[%s3409_s12 + $0x604] ss:$16 sps:$4 sm:$0xff]  }
  0x97   : > { %1637 = vmatpush1.bf16.msra.mxu0 %v3156_v24  ;;  %1801 = vmatpush1.bf16.msra.mxu1 %v3159_v26  ;;  %v3249_v24 = vld [vmem:[%s3409_s12 + $0x5e8] ss:$16 sps:$4 sm:$0xff]   ;;  %v3258_v26 = vld [vmem:[%s3409_s12 + $0x60c] ss:$16 sps:$4 sm:$0xff]  }
  0x98   : > { %1638 = vmatprep.subr.bf16.mxu0 %v3164_v27  ;;  %1802 = vmatprep.subr.bf16.mxu1 %v3167_v28  ;;  %v3253_v27 = vld [vmem:[%s3409_s12 + $0x600] ss:$16 sps:$4 sm:$0xff]   ;;  %v3256_v28 = vld [vmem:[%s3409_s12 + $0x608] ss:$16 sps:$4 sm:$0xff]  }
  0x99   : > { %1668 = vmatprep.mubr.bf16.mxu0 %v3486_v19  ;;  %1832 = vmatprep.mubr.bf16.mxu1 %v3486_v19  ;;  %v3182_v19 = vld [vmem:[%s3409_s12 + $0x484] ss:$16 sps:$4 sm:$0xff]  }
  0x9b   : > { %1639 = vmatpush1.bf16.msra.mxu0 %v3162_v29  ;;  %1803 = vmatpush1.bf16.msra.mxu1 %v3165_v30  ;;  %v3261_v29 = vld [vmem:[%s3409_s12 + $0x624] ss:$16 sps:$4 sm:$0xff]   ;;  %v3264_v30 = vld [vmem:[%s3409_s12 + $0x62c] ss:$16 sps:$4 sm:$0xff]  }
  0x9c   : > { %1640 = vmatprep.subr.bf16.mxu0 %v3170_v17  ;;  %1804 = vmatprep.subr.bf16.mxu1 %v3173_v31  ;;  %v3259_v17 = vld [vmem:[%s3409_s12 + $0x620] ss:$16 sps:$4 sm:$0xff]   ;;  %v3262_v31 = vld [vmem:[%s3409_s12 + $0x628] ss:$16 sps:$4 sm:$0xff]  }
  0x9f   : > { %1641 = vmatpush1.bf16.msra.mxu0 %v3168_v32  ;;  %1805 = vmatpush1.bf16.msra.mxu1 %v3171_v33  ;;  %v3345_v32 = vmov 0   ;;  %v542_v33 = vcombine.high %v3488_v20, %v3488_v20 }
  0xa0   : > { %1642 = vmatprep.subr.bf16.mxu0 %v3176_v34  ;;  %1806 = vmatprep.subr.bf16.mxu1 %v3179_v35  ;;  %v3346_v34 = vmov 1983009808  }
  0xa1   : > { %v1889_v35 = vunpack.c.l.s4 %v3346_v34 }
  0xa3   : > { %1643 = vmatpush1.bf16.msra.mxu0 %v3174_v36  ;;  %1807 = vmatpush1.bf16.msra.mxu1 %v3177_v37  ;;  %v1890_v36 = vunpack.c.0.s8 %v1889_v35 }
  0xa4   : > { %1644 = vmatprep.subr.bf16.mxu0 %v3182_v19  ;;  %1808 = vmatprep.subr.bf16.mxu1 %v3185_v38 }
  0xa5   : > { %v3633_v38 = vsub.s32 %v1890_v36, %v3451_v44 }
  0xa7   : > { %1645 = vmatpush1.bf16.msra.mxu0 %v3180_v39  ;;  %1809 = vmatpush1.bf16.msra.mxu1 %v3183_v40 }
  0xa8   : > { %1646 = vmatprep.subr.bf16.mxu0 %v3188_v41  ;;  %1810 = vmatprep.subr.bf16.mxu1 %v3191_v42 }
  0xab   : > { %1647 = vmatpush1.bf16.msra.mxu0 %v3186_v43  ;;  %1811 = vmatpush1.bf16.msra.mxu1 %v3189_v45 }
  0xac   : > { %1648 = vmatprep.subr.bf16.mxu0 %v3194_v46  ;;  %1812 = vmatprep.subr.bf16.mxu1 %v3197_v47 }
  0xaf   : > { %1649 = vmatpush1.bf16.msra.mxu0 %v3192_v48  ;;  %1813 = vmatpush1.bf16.msra.mxu1 %v3195_v49  ;;  %v293_v49 = vld [vmem:[#allocation2] sm:$0xff] }
  0xb0   : > { %1650 = vmatprep.subr.bf16.mxu0 %v3200_v50  ;;  %1814 = vmatprep.subr.bf16.mxu1 %v3203_v51 }
  0xb3   : > { %1651 = vmatpush1.bf16.msra.mxu0 %v3198_v52  ;;  %1815 = vmatpush1.bf16.msra.mxu1 %v3201_v53  ;;  %v3265_v52 = vld [vmem:[%s3835_s5 + $0x40] sm:$0xff] (!%p2837_p6)  }
  0xb4   : > { %1652 = vmatprep.subr.bf16.mxu0 %v3206_v54  ;;  %1816 = vmatprep.subr.bf16.mxu1 %v3209_v55  ;;  %v3266_v53 = vld [vmem:[%s3835_s5] sm:$0xff] (!%p2837_p6)  }
  0xb5   : > { %v3267_v54 = vld [vmem:[%s3835_s5 + $0xc0] sm:$0xff] (!%p2837_p6)  }
  0xb6   : > { %v3268_v55 = vld [vmem:[%s3835_s5 + $0x80] sm:$0xff] (!%p2837_p6)  }
  0xb7   : > { %1653 = vmatpush1.bf16.msra.mxu0 %v3204_v56  ;;  %1817 = vmatpush1.bf16.msra.mxu1 %v3207_v57  ;;  %v3269_v56 = vld [vmem:[%s3835_s5 + $0x48] sm:$0xff] (!%p2837_p6)  }
  0xb8   : > { %1654 = vmatprep.subr.bf16.mxu0 %v3212_v58  ;;  %1818 = vmatprep.subr.bf16.mxu1 %v3215_v59  ;;  %v3270_v57 = vld [vmem:[%s3835_s5 + $0x8] sm:$0xff] (!%p2837_p6)  }
  0xb9   : > { %v3271_v58 = vld [vmem:[%s3835_s5 + $0xc8] sm:$0xff] (!%p2837_p6)  }
  0xba   : > { %v3272_v59 = vld [vmem:[%s3835_s5 + $0x88] sm:$0xff] (!%p2837_p6)  }
  0xbb   : > { %1655 = vmatpush1.bf16.msra.mxu0 %v3210_v60  ;;  %1819 = vmatpush1.bf16.msra.mxu1 %v3213_v61  ;;  %v3273_v60 = vld [vmem:[%s3835_s5 + $0x50] sm:$0xff] (!%p2837_p6)  }
  0xbc   : > { %1656 = vmatprep.subr.bf16.mxu0 %v3218_v62  ;;  %1820 = vmatprep.subr.bf16.mxu1 %v3221_v63  ;;  %v3274_v61 = vld [vmem:[%s3835_s5 + $0x10] sm:$0xff] (!%p2837_p6)  }
  0xbd   : > { %v3275_v62 = vld [vmem:[%s3835_s5 + $0xd0] sm:$0xff] (!%p2837_p6)  }
  0xbe   : > { %v3276_v63 = vld [vmem:[%s3835_s5 + $0x90] sm:$0xff] (!%p2837_p6)  }
  0xbf   : > { %1657 = vmatpush1.bf16.msra.mxu0 %v3216_v0  ;;  %1821 = vmatpush1.bf16.msra.mxu1 %v3219_v1  ;;  %v3277_v0 = vld [vmem:[%s3835_s5 + $0x58] sm:$0xff] (!%p2837_p6)  }
  0xc0   : > { %1658 = vmatprep.subr.bf16.mxu0 %v3224_v2  ;;  %1822 = vmatprep.subr.bf16.mxu1 %v3227_v3  ;;  %v3278_v1 = vld [vmem:[%s3835_s5 + $0x18] sm:$0xff] (!%p2837_p6)  }
  0xc1   : > { %v3279_v2 = vld [vmem:[%s3835_s5 + $0xd8] sm:$0xff] (!%p2837_p6)  }
  0xc2   : > { %v3280_v3 = vld [vmem:[%s3835_s5 + $0x98] sm:$0xff] (!%p2837_p6)  }
  0xc3   : > { %1659 = vmatpush1.bf16.msra.mxu0 %v3222_v4  ;;  %1823 = vmatpush1.bf16.msra.mxu1 %v3225_v5  ;;  %v3281_v4 = vld [vmem:[%s3835_s5 + $0x60] sm:$0xff] (!%p2837_p6)  }
  0xc4   : > { %1660 = vmatprep.subr.bf16.mxu0 %v3230_v6  ;;  %1824 = vmatprep.subr.bf16.mxu1 %v3233_v7  ;;  %v3282_v5 = vld [vmem:[%s3835_s5 + $0x20] sm:$0xff] (!%p2837_p6)  }
  0xc5   : > { %v3283_v6 = vld [vmem:[%s3835_s5 + $0xe0] sm:$0xff] (!%p2837_p6)  }
  0xc6   : > { %v3284_v7 = vld [vmem:[%s3835_s5 + $0xa0] sm:$0xff] (!%p2837_p6)  }
  0xc7   : > { %1661 = vmatpush1.bf16.msra.mxu0 %v3228_v8  ;;  %1825 = vmatpush1.bf16.msra.mxu1 %v3231_v9  ;;  %v3285_v8 = vld [vmem:[%s3835_s5 + $0x68] sm:$0xff] (!%p2837_p6)  }
  0xc8   : > { %1662 = vmatprep.subr.bf16.mxu0 %v3236_v10  ;;  %1826 = vmatprep.subr.bf16.mxu1 %v3239_v11  ;;  %v3286_v9 = vld [vmem:[%s3835_s5 + $0x28] sm:$0xff] (!%p2837_p6)  }
  0xc9   : > { %v3287_v10 = vld [vmem:[%s3835_s5 + $0xe8] sm:$0xff] (!%p2837_p6)  }
  0xca   : > { %v3288_v11 = vld [vmem:[%s3835_s5 + $0xa8] sm:$0xff] (!%p2837_p6)  }
  0xcb   : > { %1663 = vmatpush1.bf16.msra.mxu0 %v3234_v12  ;;  %1827 = vmatpush1.bf16.msra.mxu1 %v3237_v13  ;;  %v3289_v12 = vld [vmem:[%s3835_s5 + $0x70] sm:$0xff] (!%p2837_p6)  }
  0xcc   : > { %1664 = vmatprep.subr.bf16.mxu0 %v3242_v14  ;;  %1828 = vmatprep.subr.bf16.mxu1 %v3245_v15  ;;  %v3290_v13 = vld [vmem:[%s3835_s5 + $0x30] sm:$0xff] (!%p2837_p6)   ;;  %v3717_v14 = vsub.s32 (!%p2837_p6), 0, %v3451_v44 }
  0xcd   : > { %v3291_v15 = vld [vmem:[%s3835_s5 + $0xf0] sm:$0xff] (!%p2837_p6)  }
  0xcf   : > { %1665 = vmatpush1.bf16.msra.mxu0 %v3240_v16  ;;  %1829 = vmatpush1.bf16.msra.mxu1 %v3243_v18  ;;  %v3723_v16 = vsub.s32 (!%p2837_p6), 1, %v3451_v44  ;;  %v3292_v18 = vld [vmem:[%s3835_s5 + $0xb0] sm:$0xff] (!%p2837_p6)  }
  0xd0   : > { %1666 = vmatprep.subr.bf16.mxu0 %v3248_v21  ;;  %1830 = vmatprep.subr.bf16.mxu1 %v3251_v22  ;;  %v3729_v21 = vsub.s32 (!%p2837_p6), 2, %v3451_v44  ;;  %v3293_v22 = vld [vmem:[%s3835_s5 + $0x78] sm:$0xff] (!%p2837_p6)  }
  0xd3   : > { %1667 = vmatpush1.bf16.msra.mxu0 %v3246_v23  ;;  %1831 = vmatpush1.bf16.msra.mxu1 %v3249_v24  ;;  %v3735_v23 = vsub.s32 (!%p2837_p6), 3, %v3451_v44  ;;  %v3294_v24 = vld [vmem:[%s3835_s5 + $0x38] sm:$0xff] (!%p2837_p6)  }
  0xd4   : > { %1677 = vmatprep.subr.bf16.mxu0 %v3255_v25  ;;  %1841 = vmatprep.subr.bf16.mxu1 %v3258_v26  ;;  %v3295_v25 = vld [vmem:[%s3835_s5 + $0xf8] sm:$0xff] (!%p2837_p6)   ;;  %v1911_v26 = vld [vmem:[%s3832_s2] sm:$0xf] (!%p2837_p6) }
  0xd5   : > { %v1920_v44 = vrot.slane (!%p2837_p6), %v1911_v26, %v3723_v16 }
  0xd6   : > { %1669 = vmatmul.mubr.bf16.vlgmr.msra.gmra.mrb[0].mxu0 %v3488_v20  ;;  %1833 = vmatmul.mubr.bf16.vlgmr.msra.gmra.mrb[0].mxu1 %v3488_v20 }
  0xd7   : > { %1678 = vmatpush1.bf16.msra.mxu0 %v3253_v27  ;;  %1842 = vmatpush1.bf16.msra.mxu1 %v3256_v28  ;;  %v1916_v27 = vrot.slane (!%p2837_p6), %v1911_v26, %v3717_v14  ;;  %v1924_v28 = vrot.slane (!%p2837_p6), %v1911_v26, %v3729_v21 }
  0xd8   : > { %1679 = vmatprep.subr.bf16.mxu0 %v3261_v29  ;;  %1843 = vmatprep.subr.bf16.mxu1 %v3264_v30  ;;  %v1928_v29 = vrot.slane (!%p2837_p6), %v1911_v26, %v3735_v23  ;;  %v3296_v30 = vld [vmem:[%s3835_s5 + $0xb8] sm:$0xff] (!%p2837_p6)  }
  0xd9   : > { %1709 = vmatprep.mubr.bf16.mxu0 %v3345_v32  ;;  %1873 = vmatprep.mubr.bf16.mxu1 %v3345_v32 }
  0xdb   : > { %1680 = vmatpush1.bf16.msra.mxu0 %v3259_v17  ;;  %1844 = vmatpush1.bf16.msra.mxu1 %v3262_v31  ;;  %v1929_v17 = vcombine.low (!%p2837_p6), %v1916_v27, %v1920_v44  ;;  %v1930_v31 = vcombine.low (!%p2837_p6), %v1924_v28, %v1928_v29 }
  0xdc   : > { %2876 = vmatprep.subr.bf16.mxu0 (!%p2837_p6), %v3265_v52  ;;  %2898 = vmatprep.subr.bf16.mxu1 (!%p2837_p6), %v3267_v54 }
  0xdd   : > { %v1937_v32 = vrot.slane (!%p2837_p6), %v1929_v17, %v3633_v38 }
  0xe2   : > { %2835 = vmatmul.mubr.msk.bf16.vlgmr.msra.gmra.mrb[0].mxu0 %vm1550_vm0, %v542_v33  ;;  %2836 = vmatmul.mubr.msk.bf16.vlgmr.msra.gmra.mrb[0].mxu1 %vm1550_vm0, %v542_v33  ;;  %v1944_v33 = vrot.slane (!%p2837_p6), %v1930_v31, %v3633_v38 }
  0xe3   : > { %2877 = vmatpush3.bf16.msra.mxu0 (!%p2837_p6), %v3266_v53  ;;  %2899 = vmatpush3.bf16.msra.mxu1 (!%p2837_p6), %v3268_v55 }
  0xe4   : > { %2878 = vmatprep.subr.bf16.mxu0 (!%p2837_p6), %v3269_v56  ;;  %2900 = vmatprep.subr.bf16.mxu1 (!%p2837_p6), %v3271_v58  ;;  %v1945_v35 = vcombine.low (!%p2837_p6), %v1937_v32, %v1944_v33 }
  0xe7   : > { %2879 = vmatpush3.bf16.msra.mxu0 (!%p2837_p6), %v3270_v57  ;;  %2901 = vmatpush3.bf16.msra.mxu1 (!%p2837_p6), %v3272_v59 }
  0xe8   : > { %2880 = vmatprep.subr.bf16.mxu0 (!%p2837_p6), %v3273_v60  ;;  %2902 = vmatprep.subr.bf16.mxu1 (!%p2837_p6), %v3275_v62 }
  0xeb   : > { %2881 = vmatpush3.bf16.msra.mxu0 (!%p2837_p6), %v3274_v61  ;;  %2903 = vmatpush3.bf16.msra.mxu1 (!%p2837_p6), %v3276_v63 }
  0xec   : > { %2882 = vmatprep.subr.bf16.mxu0 (!%p2837_p6), %v3277_v0  ;;  %2904 = vmatprep.subr.bf16.mxu1 (!%p2837_p6), %v3279_v2 }
  0xef   : > { %2883 = vmatpush3.bf16.msra.mxu0 (!%p2837_p6), %v3278_v1  ;;  %2905 = vmatpush3.bf16.msra.mxu1 (!%p2837_p6), %v3280_v3 }
  0xf0   : > { %2884 = vmatprep.subr.bf16.mxu0 (!%p2837_p6), %v3281_v4  ;;  %2906 = vmatprep.subr.bf16.mxu1 (!%p2837_p6), %v3283_v6 }
  0xf3   : > { %2885 = vmatpush3.bf16.msra.mxu0 (!%p2837_p6), %v3282_v5  ;;  %2907 = vmatpush3.bf16.msra.mxu1 (!%p2837_p6), %v3284_v7 }
  0xf4   : > { %2886 = vmatprep.subr.bf16.mxu0 (!%p2837_p6), %v3285_v8  ;;  %2908 = vmatprep.subr.bf16.mxu1 (!%p2837_p6), %v3287_v10 }
  0xf7   : > { %2887 = vmatpush3.bf16.msra.mxu0 (!%p2837_p6), %v3286_v9  ;;  %2909 = vmatpush3.bf16.msra.mxu1 (!%p2837_p6), %v3288_v11 }
  0xf8   : > { %2888 = vmatprep.subr.bf16.mxu0 (!%p2837_p6), %v3289_v12  ;;  %2910 = vmatprep.subr.bf16.mxu1 (!%p2837_p6), %v3291_v15 }
  0xfb   : > { %2889 = vmatpush3.bf16.msra.mxu0 (!%p2837_p6), %v3290_v13  ;;  %2911 = vmatpush3.bf16.msra.mxu1 (!%p2837_p6), %v3292_v18 }
  0xfc   : > { %2890 = vmatprep.subr.bf16.mxu0 (!%p2837_p6), %v3293_v22  ;;  %2912 = vmatprep.subr.bf16.mxu1 (!%p2837_p6), %v3295_v25 }
  0xff   : > { %2891 = vmatpush3.bf16.msra.mxu0 (!%p2837_p6), %v3294_v24  ;;  %2913 = vmatpush3.bf16.msra.mxu1 (!%p2837_p6), %v3296_v30 }
 0x1b5   : > { %v1711_v37 = vpop.f32.mrb[0].mxu0  ;;  %v1875_v19 = vpop.f32.mrb[0].mxu1 }
 0x1b6   : > { %v1713_v39 = vpop.f32.mrb[1].mxu0  ;;  %v1877_v40 = vpop.f32.mrb[1].mxu1 }
 0x1b7   : > { %v1886_v41 = vcombine.low %v1711_v37, %v1713_v39  ;;  %v1887_v42 = vcombine.low %v1875_v19, %v1877_v40  ;;  %v1715_v43 = vpop.f32.mrb[2].mxu0  ;;  %v1879_v45 = vpop.f32.mrb[2].mxu1 }
 0x1b8   : > { %v1716_v46 = vpop.f32.mrb[3].mxu0  ;;  %v1880_v47 = vpop.f32.mrb[3].mxu1 }
 0x1b9   : > { %v1894_v20 = vrot.slane %v1886_v41, %v3633_v38  ;;  %v1901_v48 = vrot.slane %v1887_v42, %v3633_v38  ;;  %1909 = sbr.rel (%p2837_p6) target bundleno = 740 (0x2e4), region = 56 }
 0x1bb   : > { %v1902_v50 = vcombine.low %v1894_v20, %v1901_v48 }
 0x1bd   : > { %v1904_v51 = vadd.f32 %v1902_v50, %v293_v49 }
 0x1bf   : > { %1905 = vst [vmem:[#allocation2] sm:$0xff] %v1904_v51 }
 0x1c6   : > { %v1910_v34 = vld [vmem:[#allocation2] sm:$0xff] }
 0x1c7   : > { %v3755_v36 = vadd.f32 %v1945_v35, %v1910_v34 }
 0x1c9   : > { %v1949_v37 = vcombine.high %v3755_v36, %v3755_v36  ;;  %v1956_v19 = vrot.slane %v3755_v36, %v3633_v38  ;;  %v2003_v39 = vmul.f32 %v3755_v36, %v3755_v36 }
 0x1cb   : > { %v1963_v40 = vrot.slane %v1949_v37, %v3633_v38  ;;  %v1964_v41 = vcombine.high %v1956_v19, %v1956_v19  ;;  %v1971_v42 = vsel %vm1970_vm1, %v1956_v19, 0.0  ;;  %v2005_v43 = vcombine.high %v2003_v39, %v2003_v39 }
 0x1cc   : > { %v1972_v45 = vrot.slane %v1971_v42, 4  ;;  %v2012_v46 = vrot.slane %v2003_v39, %v3633_v38 }
 0x1cd   : > { %v1965_v47 = vcombine.high %v1963_v40, %v1963_v40  ;;  %v1978_v20 = vsel %vm1970_vm1, %v1964_v41, 0.0  ;;  %v1985_v48 = vsel %vm1970_vm1, %v1963_v40, 0.0  ;;  %v2019_v49 = vrot.slane %v2005_v43, %v3633_v38 }
 0x1ce   : > { %v1973_v50 = vadd.f32 %v1972_v45, %v1971_v42  ;;  %v1979_v51 = vrot.slane %v1978_v20, 4  ;;  %v1986_v52 = vrot.slane %v1985_v48, 4  ;;  %v2020_v53 = vcombine.high %v2012_v46, %v2012_v46 }
 0x1cf   : > { %v1992_v54 = vsel %vm1970_vm1, %v1965_v47, 0.0  ;;  %v2021_v55 = vcombine.high %v2019_v49, %v2019_v49  ;;  %v2026_v56 = vsel %vm1970_vm1, %v2012_v46, 0.0  ;;  %v2040_v57 = vsel %vm1970_vm1, %v2019_v49, 0.0 }
 0x1d0   : > { %v1974_v58 = vrot.slane %v1973_v50, 2  ;;  %v1980_v59 = vadd.f32 %v1979_v51, %v1978_v20  ;;  %v1987_v60 = vadd.f32 %v1986_v52, %v1985_v48  ;;  %v1993_v61 = vrot.slane %v1992_v54, 4 }
 0x1d1   : > { %v2027_v62 = vrot.slane %v2026_v56, 4  ;;  %v2033_v63 = vsel %vm1970_vm1, %v2020_v53, 0.0  ;;  %v2041_v0 = vrot.slane %v2040_v57, 4  ;;  %v2047_v1 = vsel %vm1970_vm1, %v2021_v55, 0.0 }
 0x1d2   : > { %v1975_v2 = vadd.f32 %v1974_v58, %v1973_v50  ;;  %v1981_v3 = vrot.slane %v1980_v59, 2  ;;  %v1988_v4 = vrot.slane %v1987_v60, 2  ;;  %v1994_v5 = vadd.f32 %v1993_v61, %v1992_v54 }
 0x1d3   : > { %v2028_v6 = vadd.f32 %v2027_v62, %v2026_v56  ;;  %v2034_v7 = vrot.slane %v2033_v63, 4  ;;  %v2042_v8 = vadd.f32 %v2041_v0, %v2040_v57  ;;  %v2048_v9 = vrot.slane %v2047_v1, 4 }
 0x1d4   : > { %v1976_v10 = vrot.slane %v1975_v2, 1  ;;  %v1982_v11 = vadd.f32 %v1981_v3, %v1980_v59  ;;  %v1989_v12 = vadd.f32 %v1988_v4, %v1987_v60  ;;  %v1995_v13 = vrot.slane %v1994_v5, 2  ;;  %v2162_v4 = vld [vmem:[%s3834_s4] sm:$0xf] }
 0x1d5   : > { %v2029_v15 = vrot.slane %v2028_v6, 2  ;;  %v2035_v18 = vadd.f32 %v2034_v7, %v2033_v63  ;;  %v2043_v22 = vrot.slane %v2042_v8, 2  ;;  %v2049_v24 = vadd.f32 %v2048_v9, %v2047_v1 }
 0x1d6   : > { %v1977_v25 = vadd.f32 %v1976_v10, %v1975_v2  ;;  %v1983_v26 = vrot.slane %v1982_v11, 1  ;;  %v1990_v27 = vrot.slane %v1989_v12, 1  ;;  %v1996_v44 = vadd.f32 %v1995_v13, %v1994_v5  ;;  %v2097_v2 = vld [vmem:[%s3833_s3] sm:$0xf] }
 0x1d7   : > { %v2030_v28 = vadd.f32 %v2029_v15, %v2028_v6  ;;  %v2036_v29 = vrot.slane %v2035_v18, 2  ;;  %v2044_v30 = vadd.f32 %v2043_v22, %v2042_v8  ;;  %v2050_v17 = vrot.slane %v2049_v24, 2 }
 0x1d8   : > { %v1984_v31 = vadd.f32 %v1983_v26, %v1982_v11  ;;  %v1991_v32 = vadd.f32 %v1990_v27, %v1989_v12  ;;  %v1997_v33 = vrot.slane %v1996_v44, 1  ;;  %v1999_v34 = vmul.f32 0.5, %v1977_v25 }
 0x1d9   : > { %v2031_v35 = vrot.slane %v2030_v28, 1  ;;  %v2037_v37 = vadd.f32 %v2036_v29, %v2035_v18  ;;  %v2045_v19 = vrot.slane %v2044_v30, 1  ;;  %v2051_v39 = vadd.f32 %v2050_v17, %v2049_v24 }
 0x1da   : > { %v1998_v40 = vadd.f32 %v1997_v33, %v1996_v44  ;;  %v2000_v41 = vmul.f32 0.5, %v1984_v31  ;;  %v2001_v42 = vmul.f32 0.5, %v1991_v32  ;;  %v2058_v43 = vmul.f32 %v1999_v34, %v1999_v34 }
 0x1db   : > { %v2032_v45 = vadd.f32 %v2031_v35, %v2030_v28  ;;  %v2038_v46 = vrot.slane %v2037_v37, 1  ;;  %v2046_v47 = vadd.f32 %v2045_v19, %v2044_v30  ;;  %v2052_v20 = vrot.slane %v2051_v39, 1 }
 0x1dc   : > { %v2002_v48 = vmul.f32 0.5, %v1998_v40  ;;  %v2059_v49 = vmul.f32 %v2000_v41, %v2000_v41  ;;  %v2060_v50 = vmul.f32 %v2001_v42, %v2001_v42  ;;  %v2102_v3 = vrot.slane %v2097_v2, %v3717_v14 }
 0x1dd   : > { %v2039_v51 = vadd.f32 %v2038_v46, %v2037_v37  ;;  %v2053_v52 = vadd.f32 %v2052_v20, %v2051_v39  ;;  %v2054_v53 = vmul.f32 0.5, %v2032_v45  ;;  %v2056_v54 = vmul.f32 0.5, %v2046_v47 }
 0x1de   : > { %v2061_v55 = vmul.f32 %v2002_v48, %v2002_v48  ;;  %v2070_v5 = vcombine.low %v1999_v34, %v2000_v41  ;;  %v2071_v6 = vcombine.low %v2001_v42, %v2002_v48  ;;  %v2110_v7 = vrot.slane %v2097_v2, %v3729_v21 }
 0x1df   : > { %v2055_v56 = vmul.f32 0.5, %v2039_v51  ;;  %v2057_v57 = vmul.f32 0.5, %v2053_v52  ;;  %v2062_v58 = vsub.f32 %v2054_v53, %v2058_v43  ;;  %v2064_v59 = vsub.f32 %v2056_v54, %v2060_v50  ;;  %v2838_v54 = vld [vmem:[%s3836_s6] ss:$0 sm:$0xff] }
 0x1e0   : > { %v2106_v8 = vrot.slane %v2097_v2, %v3723_v16  ;;  %v2114_v9 = vrot.slane %v2097_v2, %v3735_v23  ;;  %v2167_v11 = vrot.slane %v2162_v4, %v3717_v14  ;;  %v2171_v12 = vrot.slane %v2162_v4, %v3723_v16 }
 0x1e1   : > { %v2063_v60 = vsub.f32 %v2055_v56, %v2059_v49  ;;  %v2065_v61 = vsub.f32 %v2057_v57, %v2061_v55  ;;  %v2089_v62 = vadd.f32 1e-05, %v2062_v58  ;;  %v2091_v63 = vadd.f32 1e-05, %v2064_v59 }
 0x1e2   : > { %v2175_v13 = vrot.slane %v2162_v4, %v3729_v21  ;;  %v2179_v15 = vrot.slane %v2162_v4, %v3735_v23  ;;  %v2078_v25 = vrot.slane %v2070_v5, %v3633_v38  ;;  %v2085_v26 = vrot.slane %v2071_v6, %v3633_v38 }
 0x1e3   : > { %v2090_v0 = vadd.f32 1e-05, %v2063_v60  ;;  %v2092_v1 = vadd.f32 1e-05, %v2065_v61  ;;  %3297 = vrsqrt.f32 %v2089_v62  ;;  %v2180_v16 = vcombine.low %v2167_v11, %v2171_v12 }
 0x1e4   : > { %3299 = vrsqrt.f32 %v2091_v63  ;;  %v2181_v31 = vcombine.low %v2175_v13, %v2179_v15  ;;  %v2086_v23 = vcombine.low %v2078_v25, %v2085_v26 }
 0x1e5   : > { %3301 = vrsqrt.f32 %v2090_v0  ;;  %v2188_v35 = vrot.slane %v2180_v16, %v3633_v38 }
 0x1e6   : > { %3303 = vrsqrt.f32 %v2092_v1  ;;  %v2195_v37 = vrot.slane %v2181_v31, %v3633_v38  ;;  %v2088_v39 = vsub.f32 %v3755_v36, %v2086_v23 }
 0x1e8   : > { %v2196_v42 = vcombine.low %v2188_v35, %v2195_v37 }
 0x1ed   : > { %v3298_v10 = vpop.eup %3297 }
 0x1ee   : > { %v3300_v18 = vpop.eup %3299  ;;  %v2119_v22 = vmul.f32 %v3298_v10, %v2102_v3 }
 0x1ef   : > { %v3302_v24 = vpop.eup %3301  ;;  %v2121_v27 = vmul.f32 %v3300_v18, %v2110_v7 }
 0x1f0   : > { %v3304_v44 = vpop.eup %3303  ;;  %v2120_v28 = vmul.f32 %v3302_v24, %v2106_v8  ;;  %v2126_v29 = vrot.slane %v2119_v22, %v3717_v14 }
 0x1f1   : > { %v2122_v30 = vmul.f32 %v3304_v44, %v2114_v9  ;;  %v2134_v17 = vrot.slane %v2121_v27, %v3717_v14 }
 0x1f2   : > { %v2130_v21 = vrot.slane %v2120_v28, %v3717_v14 }
 0x1f3   : > { %v2138_v32 = vrot.slane %v2122_v30, %v3717_v14 }
 0x1f4   : > { %v2143_v33 = vcombine.low %v2126_v29, %v2130_v21 }
 0x1f5   : > { %v2144_v34 = vcombine.low %v2134_v17, %v2138_v32 }
 0x1f6   : > { %v2151_v19 = vrot.slane %v2143_v33, %v3633_v38 }
 0x1f7   : > { %v2158_v40 = vrot.slane %v2144_v34, %v3633_v38 }
 0x1f9   : > { %v2159_v41 = vcombine.low %v2151_v19, %v2158_v40 }
 0x1fb   : > { %v2161_v43 = vmul.f32 %v2159_v41, %v2088_v39 }
 0x1fd   : > { %v2198_v45 = vadd.f32 %v2196_v42, %v2161_v43 }
 0x1ff   : > { %v2199_v46 = vmax.f32 %v2198_v45, 0.0 }
 0x201   : > { %v2208_v47 = vrot.slane %v2199_v46, %v3633_v38  ;;  %v2201_v14 = vcombine.high %v2199_v46, %v2199_v46 }
 0x203   : > { %v2216_v20 = vcombine.high %v2208_v47, %v2208_v47  ;;  %v2215_v48 = vrot.slane %v2201_v14, %v3633_v38  ;;  %v2222_v49 = vpack.c.bf16 %v2208_v47, %v2208_v47 }
 0x205   : > { %v2223_v50 = vpack.c.bf16 %v2216_v20, %v2216_v20  ;;  %v2217_v51 = vcombine.high %v2215_v48, %v2215_v48  ;;  %v2224_v52 = vpack.c.bf16 %v2215_v48, %v2215_v48 }
 0x207   : > { %2521 = vmatprep.mubr.bf16.mxu0 %v2223_v50  ;;  %v2225_v53 = vpack.c.bf16 %v2217_v51, %v2217_v51 }
 0x208   : > { %2522 = vmatmul.mubr.bf16.vlgmr.msra.gmra.mrb[0].mxu0 %v2222_v49 }
 0x209   : > { %2561 = vmatprep.mubr.bf16.mxu1 %v2225_v53 }
 0x20a   : > { %2562 = vmatmul.mubr.bf16.vlgmr.msra.gmra.mrb[0].mxu1 %v2224_v52 }
 0x2db   : > { %v2892_v36 = vpop.f32.mrb[0].mxu0 }
 0x2dc   : > { %v2893_v55 = vpop.f32.mrb[1].mxu0 }
 0x2dd   : > { %v2894_v56 = vadd.f32 %v2893_v55, %v2892_v36  ;;  %v2895_v57 = vpop.f32.mrb[2].mxu0  ;;  %v2914_v58 = vpop.f32.mrb[0].mxu1 }
 0x2de   : > { %v2896_v59 = vpop.f32.mrb[3].mxu0  ;;  %v2915_v38 = vpop.f32.mrb[1].mxu1 }
 0x2df   : > { %v2524_v60 = vadd.f32 %v2894_v56, %v2838_v54  ;;  %v2916_v61 = vadd.f32 %v2915_v38, %v2914_v58  ;;  %v2917_v62 = vpop.f32.mrb[2].mxu1 }
 0x2e0   : > { %v2918_v63 = vpop.f32.mrb[3].mxu1 }
 0x2e1   : > { %v2564_v0 = vadd.f32 %v2916_v61, %v2524_v60 }
 0x2e3   : > { %2569 = vst [vmem:[#allocation3] sm:$0x3] %v2564_v0 }
 0x2e4 PF: > { %p2949_p7 = scmp.eq.s32.totalorder %s3394_s25, 1  ;;  %s3347_s22 = smov [#allocation3]  }
 0x2e5   : > { %s2577_s23 = sshll.u32 %s3347_s22, 4  ;;  %s2578_s23 = int_to_ptr.vmem [resolvable:$true] %s2577_s23 }
 0x2e6   : > { %s3305_s26 = scalar_lea.vmem %s2578_s23, 32  ;;  %p3312_p11 = scmp.lt.s32.totalorder %s2578_s23, %s2578_s23 }
 0x2e7   : > { %p3306_p8 = scmp.ne.s32.totalorder %s2578_s23, %s3305_s26  ;;  %p3313_p12 = scmp.lt.s32.totalorder %s3305_s26, %s3305_s26 }
 0x2e9   : > { %p3307_p9 = pnand %p3306_p8, %p2949_p7  ;;  %p3314_p13 = por %p3313_p12, %p3312_p11 }
 0x2eb   : > { %p3308_p10 = pneg %p3307_p9 }
 0x2ed   : > { %p3315_p0 = pnand %p3314_p13, %p3308_p10 }
 0x2ef   : > { %3318 = shalt.err (!%p3315_p0)
}
 0x2f0   : > { %s3319_s29 = scalar_lea.hbm %s3837_s7, 32 }
 0x2f1   : > { %p3320_p1 = scmp.ne.s32.totalorder %s3837_s7, %s3319_s29  ;;  %p3325_p4 = scmp.lt.u32.totalorder %s3319_s29, %s3837_s7 }
 0x2f3   : > { %p3321_p2 = pnand %p3320_p1, %p2949_p7 }
 0x2f5   : > { %p3322_p3 = pneg %p3321_p2 }
 0x2f7   : > { %p3327_p5 = pnand %p3325_p4, %p3322_p3 }
 0x2f9   : > { %3330 = shalt.err (!%p3327_p5)
}
 0x2fa   : > { %2946 = dma.vmem_to_hbm [thread:$0]  (%p2949_p7), %s2578_s23, 32, %s3837_s7, [#allocation4]  }
 0x2fb   : > { %3336 = dma.done.wait (%p2949_p7), [#allocation4], 32  }
 0x2fc   : > { %3338 = vsyncadd (%p2949_p7), [#allocation4], 4294967264 }
 0x2fd PF: > { %s18_s24 = sadd.s32 1, %s3341_s24  }
 0x2fe   : > { %p15_p6 = scmp.ge.s32.totalorder %s18_s24, 4  }
 0x300   :  { %17 = sbr.rel (!%p15_p6) target bundleno = 1 (0x1), region = 86 }
 0x307   :  { %2590 = vsyncpa [#allocation4], 1 }
 0x308   :  { %2592 = vsyncpa [#allocation4 + $0x1], 1 }

</bundles_post_ra>
